<compile_context>
chip_gen: v7x
topology: tpu7x:2x2x1
jax: 0.10.0
libtpu: 0.0.40
codegen_flags: <defaults>
</compile_context>

<pallas_src>
import functools
import math

import jax
import jax.numpy as jnp
from jax import lax
from jax.experimental import pallas as pl
from jax.experimental.pallas import tpu as pltpu


def _round_up(x, m):
    return (x + m - 1) // m * m


# ------------------------------ Pallas kernel -------------------------------

def _conv_tanh_instnorm_kernel(x_ref, w_ref, mask_ref, o_ref, xcat_ref, *,
                               taps, cin_p, s_out, inv_count, eps):
    """Fused Conv3d (tap-stacked single matmul) + Tanh + InstanceNorm3d, one sample.

    x_ref:    (1, P, Cin_p, S_in)        bf16  phase-decomposed, flattened input
    w_ref:    (Cout_p, KT*Cin_p)         bf16  tap-stacked weight slab
    mask_ref: (1, S_out)                 f32   1.0 at valid output-raster positions
    o_ref:    (1, Cout_p, S_out)         f32   channel-major, lane-dense output
    xcat_ref: (KT*Cin_p, S_out)          bf16  VMEM scratch: stacked tap windows
    """
    # Stack the 27 tap windows along the contraction (sublane) axis.  Each copy
    # is a lane-shifted load + one aligned full-tile store; all lane realignment
    # work happens here once, then a single large-K MXU matmul does the conv.
    for k_idx, (p, off) in enumerate(taps):
        xcat_ref[pl.ds(k_idx * cin_p, cin_p), :] = x_ref[0, p, :, pl.ds(off, s_out)]

    y = jnp.dot(w_ref[...], xcat_ref[...],           # (Cout_p, S_out) f32
                preferred_element_type=jnp.float32)
    y = jnp.tanh(y)                                  # EUP, f32

    m = mask_ref[...]                                # (1, S_out)
    ym = y * m
    # Single-pass masked stats (biased variance, like PyTorch InstanceNorm3d).
    mean = jnp.sum(ym, axis=-1, keepdims=True) * inv_count
    ex2 = jnp.sum(ym * ym, axis=-1, keepdims=True) * inv_count
    var = ex2 - mean * mean
    o_ref[0] = (y - mean) * lax.rsqrt(var + eps)


# ------------------------------ ConvBlock3D ---------------------------------

def conv_block_3d(x, weight, stride, padding, eps=1e-5):
    """ConvBlock3D forward: Conv3d(bias=False, groups=1) -> Tanh -> InstanceNorm3d.

    x:      [N, Cin, T, H, W]        float32
    weight: [Cout, Cin, kT, kH, kW]  (PyTorch Conv3d layout)
    stride: (1, sh, sw)              (time stride must be 1 in this module)
    padding: (pt, ph, pw)
    """
    n, cin, t, h, w = x.shape
    cout, cin_w, kt_, kh_, kw_ = weight.shape
    assert cin_w == cin
    st, sh, sw = stride
    pt, ph, pw = padding
    if st != 1:
        raise NotImplementedError("time stride != 1 not used by this module")

    tp, hp, wp = t + 2 * pt, h + 2 * ph, w + 2 * pw
    to = tp - kt_ + 1
    ho = (hp - kh_) // sh + 1
    wo = (wp - kw_) // sw + 1

    cin_p = _round_up(cin, 16)            # 16: bf16 sublane packing alignment
    cout_p = _round_up(cout, 8)
    hc = -(-hp // sh)                     # per-phase H extent
    wc = -(-wp // sw)                     # per-phase W extent
    n_ph = sh * sw                        # number of (h, w) stride phases
    kt_n = kt_ * kh_ * kw_

    s_raster = to * hc * wc               # full output raster (incl. invalid cols)
    s_out = _round_up(s_raster, 128)      # lane-dense output width
    max_off = (kt_ - 1) * hc * wc + ((kh_ - 1) // sh) * wc + ((kw_ - 1) // sw)
    s_in = _round_up(max_off + s_out, 128)

    # ---- JAX glue (read-once): pad (conv + channel + phase alignment),
    #      phase-split the strided H/W dims, flatten to the raster.
    xp = jnp.pad(x, ((0, 0), (0, cin_p - cin), (pt, pt),
                     (ph, hc * sh - hp + ph), (pw, wc * sw - wp + pw)))
    xp = xp.reshape(n, cin_p, tp, hc, sh, wc, sw)
    xp = xp.transpose(0, 4, 6, 1, 2, 3, 5)        # [N, sh, sw, Cin_p, Tp, Hc, Wc]
    xp = xp.reshape(n, n_ph, cin_p, tp * hc * wc)
    xp = jnp.pad(xp, ((0, 0), (0, 0), (0, 0), (0, s_in - tp * hc * wc)))
    x_flat = xp.astype(jnp.bfloat16)

    # Tap-stacked weight slab [Cout_p, KT*Cin_p]; K order = (kt, kh, kw, cin),
    # matching the in-kernel scratch stacking order.
    wpad = jnp.pad(weight, ((0, cout_p - cout), (0, cin_p - cin),
                            (0, 0), (0, 0), (0, 0)))
    w_slab = wpad.transpose(0, 2, 3, 4, 1).reshape(cout_p, kt_n * cin_p)
    w_slab = w_slab.astype(jnp.bfloat16)

    # Static tap table: (phase index, constant lane offset into the flat raster).
    taps = []
    for kt in range(kt_):
        for kh in range(kh_):
            for kw in range(kw_):
                taps.append(((kh % sh) * sw + (kw % sw),
                             kt * hc * wc + (kh // sh) * wc + (kw // sw)))
    taps = tuple(taps)

    # Validity mask of the output raster (garbage columns excluded from stats).
    s_idx = jnp.arange(s_out, dtype=jnp.int32)
    valid = ((s_idx < s_raster)
             & (s_idx % wc < wo)
             & ((s_idx // wc) % hc < ho))
    mask = valid.astype(jnp.float32)[None, :]

    kernel = functools.partial(
        _conv_tanh_instnorm_kernel,
        taps=taps, cin_p=cin_p, s_out=s_out,
        inv_count=1.0 / float(to * ho * wo), eps=eps)

    y_raster = pl.pallas_call(
        kernel,
        out_shape=jax.ShapeDtypeStruct((n, cout_p, s_out), jnp.float32),
        grid_spec=pltpu.PrefetchScalarGridSpec(
            num_scalar_prefetch=0,
            grid=(n,),
            in_specs=[
                pl.BlockSpec((1, n_ph, cin_p, s_in), lambda i: (i, 0, 0, 0)),
                pl.BlockSpec((cout_p, kt_n * cin_p), lambda i: (0, 0)),
                pl.BlockSpec((1, s_out), lambda i: (0, 0)),
            ],
            out_specs=pl.BlockSpec((1, cout_p, s_out), lambda i: (i, 0, 0)),
            scratch_shapes=[pltpu.VMEM((kt_n * cin_p, s_out), jnp.bfloat16)],
        ),
        compiler_params=pltpu.CompilerParams(
            dimension_semantics=("parallel",)),
    )(x_flat, w_slab, mask)

    # Compact the raster: drop padded channels, padded lanes, invalid H/W columns.
    y = y_raster[:, :cout, :s_raster].reshape(n, cout, to, hc, wc)
    return y[:, :, :, :ho, :wo]


# ----------------------- Thermal_BVP_FeatureExtractor -----------------------

def thermal_bvp_feature_extractor(x, w1, w2, w3, eps=1e-5):
    """Forward pass (inference mode) of Thermal_BVP_FeatureExtractor."""
    y = conv_block_3d(x, w1, (1, 2, 2), (1, 0, 0), eps)
    y = conv_block_3d(y, w2, (1, 1, 1), (1, 0, 0), eps)
    # TODO(synk): nn.Dropout3d(p=0.1) is identity at inference; training-mode
    # stochastic channel dropout is not implemented here.
    y = conv_block_3d(y, w3, (1, 1, 1), (1, 0, 0), eps)
    return y


# ------------------------------ pure-JAX reference --------------------------

def _reference_block(x, w, stride, padding, eps=1e-5):
    conv = lax.conv_general_dilated(
        x, w, window_strides=tuple(stride),
        padding=[(p, p) for p in padding],
        dimension_numbers=("NCDHW", "OIDHW", "NCDHW"))
    y = jnp.tanh(conv)
    mean = jnp.mean(y, axis=(2, 3, 4), keepdims=True)
    var = jnp.mean(jnp.square(y - mean), axis=(2, 3, 4), keepdims=True)
    return (y - mean) * lax.rsqrt(var + eps)


def _reference_forward(x, w1, w2, w3):
    y = _reference_block(x, w1, (1, 2, 2), (1, 0, 0))
    y = _reference_block(y, w2, (1, 1, 1), (1, 0, 0))
    return _reference_block(y, w3, (1, 1, 1), (1, 0, 0))


# ---------------------------------- main ------------------------------------

if __name__ == "__main__":
    key = jax.random.PRNGKey(0)
    kx, k1, k2, k3 = jax.random.split(key, 4)

    # Small shapes consistent with the module: input is [N, inCh=1, T, H, W].
    N, Cin, T, H, W = 2, 1, 8, 16, 16
    nf = (8, 12, 16)   # nf_BVP

    x = jax.random.normal(kx, (N, Cin, T, H, W), jnp.float32)
    w1 = jax.random.normal(k1, (nf[0], Cin, 3, 3, 3), jnp.float32) / math.sqrt(Cin * 27)
    w2 = jax.random.normal(k2, (nf[1], nf[0], 3, 3, 3), jnp.float32) / math.sqrt(nf[0] * 27)
    w3 = jax.random.normal(k3, (nf[2], nf[1], 3, 3, 3), jnp.float32) / math.sqrt(nf[1] * 27)

    fwd = jax.jit(thermal_bvp_feature_extractor)
    out = jax.block_until_ready(fwd(x, w1, w2, w3))

    ref = _reference_forward(x, w1, w2, w3)
    if out.shape != ref.shape:
        raise AssertionError(f"shape mismatch: {out.shape} vs {ref.shape}")
    if not bool(jnp.all(jnp.isfinite(out))):
        raise AssertionError("non-finite values in Pallas output")
    rel = jnp.linalg.norm(out - ref) / jnp.linalg.norm(ref)
    # bf16 matmul operands across 3 stacked blocks -> expect ~1-2% rel-L2; a real
    # bug (tap/offset/mask error) would be O(1).
    if not bool(rel < 5e-2):
        raise AssertionError(
            f"Pallas forward mismatch vs reference: rel_l2={float(rel):.4f}")
    print("KERNEL_OK")
</pallas_src>

<mosaic_0001>
module attributes {stable_mosaic.version = 11 : i64} {
  func.func @_conv_tanh_instnorm_kernel(%arg0: i32, %arg1: memref<1x4x16x768xbf16, #tpu.memory_space<vmem>>, %arg2: memref<8x432xbf16, #tpu.memory_space<vmem>>, %arg3: memref<1x512xf32, #tpu.memory_space<vmem>>, %arg4: memref<1x8x512xf32, #tpu.memory_space<vmem>>, %arg5: memref<432x512xbf16, #tpu.memory_space<vmem>>) attributes {dimension_semantics = [#tpu.dimension_semantics<parallel>], iteration_bounds = array<i64: 2>, scalar_prefetch = 0 : i64, scratch_operands = 1 : i64, tpu.core_type = #tpu.core_type<tc>, window_params = [{transform_indices = @transform_0, window_bounds = array<i64: 1, 4, 16, 768>}, {pipeline_mode = #tpu.pipeline_mode<synchronous>, transform_indices = @transform_1, window_bounds = array<i64: 8, 432>}, {pipeline_mode = #tpu.pipeline_mode<synchronous>, transform_indices = @transform_2, window_bounds = array<i64: 1, 512>}, {transform_indices = @transform_3, window_bounds = array<i64: 1, 8, 512>}]} {
    %c0 = arith.constant 0 : index
    %c0_0 = arith.constant 0 : index
    %c0_1 = arith.constant 0 : index
    %c0_2 = arith.constant 0 : index
    %0 = vector.load %arg1[%c0, %c0_0, %c0_1, %c0_2] : memref<1x4x16x768xbf16, #tpu.memory_space<vmem>>, vector<1x1x16x512xbf16>
    %1 = vector.shape_cast %0 : vector<1x1x16x512xbf16> to vector<16x512xbf16>
    %c0_3 = arith.constant 0 : index
    %c0_4 = arith.constant 0 : index
    %2 = vector.load %arg5[%c0_3, %c0_4] : memref<432x512xbf16, #tpu.memory_space<vmem>>, vector<16x512xbf16>
    tpu.vector_store %arg5[%c0_3, %c0_4], %1 {strides = array<i32>} : memref<432x512xbf16, #tpu.memory_space<vmem>>, vector<16x512xbf16>,
    %c0_5 = arith.constant 0 : index
    %c1 = arith.constant 1 : index
    %c0_6 = arith.constant 0 : index
    %c0_7 = arith.constant 0 : index
    %3 = vector.load %arg1[%c0_5, %c1, %c0_6, %c0_7] : memref<1x4x16x768xbf16, #tpu.memory_space<vmem>>, vector<1x1x16x512xbf16>
    %4 = vector.shape_cast %3 : vector<1x1x16x512xbf16> to vector<16x512xbf16>
    %c16 = arith.constant 16 : index
    %c0_8 = arith.constant 0 : index
    %5 = vector.load %arg5[%c16, %c0_8] : memref<432x512xbf16, #tpu.memory_space<vmem>>, vector<16x512xbf16>
    tpu.vector_store %arg5[%c16, %c0_8], %4 {strides = array<i32>} : memref<432x512xbf16, #tpu.memory_space<vmem>>, vector<16x512xbf16>,
    %c0_9 = arith.constant 0 : index
    %c0_10 = arith.constant 0 : index
    %c0_11 = arith.constant 0 : index
    %c1_12 = arith.constant 1 : index
    %6 = vector.load %arg1[%c0_9, %c0_10, %c0_11, %c1_12] : memref<1x4x16x768xbf16, #tpu.memory_space<vmem>>, vector<1x1x16x512xbf16>
    %7 = vector.shape_cast %6 : vector<1x1x16x512xbf16> to vector<16x512xbf16>
    %c32 = arith.constant 32 : index
    %c0_13 = arith.constant 0 : index
    %8 = vector.load %arg5[%c32, %c0_13] : memref<432x512xbf16, #tpu.memory_space<vmem>>, vector<16x512xbf16>
    tpu.vector_store %arg5[%c32, %c0_13], %7 {strides = array<i32>} : memref<432x512xbf16, #tpu.memory_space<vmem>>, vector<16x512xbf16>,
    %c0_14 = arith.constant 0 : index
    %c2 = arith.constant 2 : index
    %c0_15 = arith.constant 0 : index
    %c0_16 = arith.constant 0 : index
    %9 = vector.load %arg1[%c0_14, %c2, %c0_15, %c0_16] : memref<1x4x16x768xbf16, #tpu.memory_space<vmem>>, vector<1x1x16x512xbf16>
    %10 = vector.shape_cast %9 : vector<1x1x16x512xbf16> to vector<16x512xbf16>
    %c48 = arith.constant 48 : index
    %c0_17 = arith.constant 0 : index
    %11 = vector.load %arg5[%c48, %c0_17] : memref<432x512xbf16, #tpu.memory_space<vmem>>, vector<16x512xbf16>
    tpu.vector_store %arg5[%c48, %c0_17], %10 {strides = array<i32>} : memref<432x512xbf16, #tpu.memory_space<vmem>>, vector<16x512xbf16>,
    %c0_18 = arith.constant 0 : index
    %c3 = arith.constant 3 : index
    %c0_19 = arith.constant 0 : index
    %c0_20 = arith.constant 0 : index
    %12 = vector.load %arg1[%c0_18, %c3, %c0_19, %c0_20] : memref<1x4x16x768xbf16, #tpu.memory_space<vmem>>, vector<1x1x16x512xbf16>
    %13 = vector.shape_cast %12 : vector<1x1x16x512xbf16> to vector<16x512xbf16>
    %c64 = arith.constant 64 : index
    %c0_21 = arith.constant 0 : index
    %14 = vector.load %arg5[%c64, %c0_21] : memref<432x512xbf16, #tpu.memory_space<vmem>>, vector<16x512xbf16>
    tpu.vector_store %arg5[%c64, %c0_21], %13 {strides = array<i32>} : memref<432x512xbf16, #tpu.memory_space<vmem>>, vector<16x512xbf16>,
    %c0_22 = arith.constant 0 : index
    %c2_23 = arith.constant 2 : index
    %c0_24 = arith.constant 0 : index
    %c1_25 = arith.constant 1 : index
    %15 = vector.load %arg1[%c0_22, %c2_23, %c0_24, %c1_25] : memref<1x4x16x768xbf16, #tpu.memory_space<vmem>>, vector<1x1x16x512xbf16>
    %16 = vector.shape_cast %15 : vector<1x1x16x512xbf16> to vector<16x512xbf16>
    %c80 = arith.constant 80 : index
    %c0_26 = arith.constant 0 : index
    %17 = vector.load %arg5[%c80, %c0_26] : memref<432x512xbf16, #tpu.memory_space<vmem>>, vector<16x512xbf16>
    tpu.vector_store %arg5[%c80, %c0_26], %16 {strides = array<i32>} : memref<432x512xbf16, #tpu.memory_space<vmem>>, vector<16x512xbf16>,
    %c0_27 = arith.constant 0 : index
    %c0_28 = arith.constant 0 : index
    %c0_29 = arith.constant 0 : index
    %c8 = arith.constant 8 : index
    %18 = vector.load %arg1[%c0_27, %c0_28, %c0_29, %c8] : memref<1x4x16x768xbf16, #tpu.memory_space<vmem>>, vector<1x1x16x512xbf16>
    %19 = vector.shape_cast %18 : vector<1x1x16x512xbf16> to vector<16x512xbf16>
    %c96 = arith.constant 96 : index
    %c0_30 = arith.constant 0 : index
    %20 = vector.load %arg5[%c96, %c0_30] : memref<432x512xbf16, #tpu.memory_space<vmem>>, vector<16x512xbf16>
    tpu.vector_store %arg5[%c96, %c0_30], %19 {strides = array<i32>} : memref<432x512xbf16, #tpu.memory_space<vmem>>, vector<16x512xbf16>,
    %c0_31 = arith.constant 0 : index
    %c1_32 = arith.constant 1 : index
    %c0_33 = arith.constant 0 : index
    %c8_34 = arith.constant 8 : index
    %21 = vector.load %arg1[%c0_31, %c1_32, %c0_33, %c8_34] : memref<1x4x16x768xbf16, #tpu.memory_space<vmem>>, vector<1x1x16x512xbf16>
    %22 = vector.shape_cast %21 : vector<1x1x16x512xbf16> to vector<16x512xbf16>
    %c112 = arith.constant 112 : index
    %c0_35 = arith.constant 0 : index
    %23 = vector.load %arg5[%c112, %c0_35] : memref<432x512xbf16, #tpu.memory_space<vmem>>, vector<16x512xbf16>
    tpu.vector_store %arg5[%c112, %c0_35], %22 {strides = array<i32>} : memref<432x512xbf16, #tpu.memory_space<vmem>>, vector<16x512xbf16>,
    %c0_36 = arith.constant 0 : index
    %c0_37 = arith.constant 0 : index
    %c0_38 = arith.constant 0 : index
    %c9 = arith.constant 9 : index
    %24 = vector.load %arg1[%c0_36, %c0_37, %c0_38, %c9] : memref<1x4x16x768xbf16, #tpu.memory_space<vmem>>, vector<1x1x16x512xbf16>
    %25 = vector.shape_cast %24 : vector<1x1x16x512xbf16> to vector<16x512xbf16>
    %c128 = arith.constant 128 : index
    %c0_39 = arith.constant 0 : index
    %26 = vector.load %arg5[%c128, %c0_39] : memref<432x512xbf16, #tpu.memory_space<vmem>>, vector<16x512xbf16>
    tpu.vector_store %arg5[%c128, %c0_39], %25 {strides = array<i32>} : memref<432x512xbf16, #tpu.memory_space<vmem>>, vector<16x512xbf16>,
    %c0_40 = arith.constant 0 : index
    %c0_41 = arith.constant 0 : index
    %c0_42 = arith.constant 0 : index
    %c64_43 = arith.constant 64 : index
    %27 = vector.load %arg1[%c0_40, %c0_41, %c0_42, %c64_43] : memref<1x4x16x768xbf16, #tpu.memory_space<vmem>>, vector<1x1x16x512xbf16>
    %28 = vector.shape_cast %27 : vector<1x1x16x512xbf16> to vector<16x512xbf16>
    %c144 = arith.constant 144 : index
    %c0_44 = arith.constant 0 : index
    %29 = vector.load %arg5[%c144, %c0_44] : memref<432x512xbf16, #tpu.memory_space<vmem>>, vector<16x512xbf16>
    tpu.vector_store %arg5[%c144, %c0_44], %28 {strides = array<i32>} : memref<432x512xbf16, #tpu.memory_space<vmem>>, vector<16x512xbf16>,
    %c0_45 = arith.constant 0 : index
    %c1_46 = arith.constant 1 : index
    %c0_47 = arith.constant 0 : index
    %c64_48 = arith.constant 64 : index
    %30 = vector.load %arg1[%c0_45, %c1_46, %c0_47, %c64_48] : memref<1x4x16x768xbf16, #tpu.memory_space<vmem>>, vector<1x1x16x512xbf16>
    %31 = vector.shape_cast %30 : vector<1x1x16x512xbf16> to vector<16x512xbf16>
    %c160 = arith.constant 160 : index
    %c0_49 = arith.constant 0 : index
    %32 = vector.load %arg5[%c160, %c0_49] : memref<432x512xbf16, #tpu.memory_space<vmem>>, vector<16x512xbf16>
    tpu.vector_store %arg5[%c160, %c0_49], %31 {strides = array<i32>} : memref<432x512xbf16, #tpu.memory_space<vmem>>, vector<16x512xbf16>,
    %c0_50 = arith.constant 0 : index
    %c0_51 = arith.constant 0 : index
    %c0_52 = arith.constant 0 : index
    %c65 = arith.constant 65 : index
    %33 = vector.load %arg1[%c0_50, %c0_51, %c0_52, %c65] : memref<1x4x16x768xbf16, #tpu.memory_space<vmem>>, vector<1x1x16x512xbf16>
    %34 = vector.shape_cast %33 : vector<1x1x16x512xbf16> to vector<16x512xbf16>
    %c176 = arith.constant 176 : index
    %c0_53 = arith.constant 0 : index
    %35 = vector.load %arg5[%c176, %c0_53] : memref<432x512xbf16, #tpu.memory_space<vmem>>, vector<16x512xbf16>
    tpu.vector_store %arg5[%c176, %c0_53], %34 {strides = array<i32>} : memref<432x512xbf16, #tpu.memory_space<vmem>>, vector<16x512xbf16>,
    %c0_54 = arith.constant 0 : index
    %c2_55 = arith.constant 2 : index
    %c0_56 = arith.constant 0 : index
    %c64_57 = arith.constant 64 : index
    %36 = vector.load %arg1[%c0_54, %c2_55, %c0_56, %c64_57] : memref<1x4x16x768xbf16, #tpu.memory_space<vmem>>, vector<1x1x16x512xbf16>
    %37 = vector.shape_cast %36 : vector<1x1x16x512xbf16> to vector<16x512xbf16>
    %c192 = arith.constant 192 : index
    %c0_58 = arith.constant 0 : index
    %38 = vector.load %arg5[%c192, %c0_58] : memref<432x512xbf16, #tpu.memory_space<vmem>>, vector<16x512xbf16>
    tpu.vector_store %arg5[%c192, %c0_58], %37 {strides = array<i32>} : memref<432x512xbf16, #tpu.memory_space<vmem>>, vector<16x512xbf16>,
    %c0_59 = arith.constant 0 : index
    %c3_60 = arith.constant 3 : index
    %c0_61 = arith.constant 0 : index
    %c64_62 = arith.constant 64 : index
    %39 = vector.load %arg1[%c0_59, %c3_60, %c0_61, %c64_62] : memref<1x4x16x768xbf16, #tpu.memory_space<vmem>>, vector<1x1x16x512xbf16>
    %40 = vector.shape_cast %39 : vector<1x1x16x512xbf16> to vector<16x512xbf16>
    %c208 = arith.constant 208 : index
    %c0_63 = arith.constant 0 : index
    %41 = vector.load %arg5[%c208, %c0_63] : memref<432x512xbf16, #tpu.memory_space<vmem>>, vector<16x512xbf16>
    tpu.vector_store %arg5[%c208, %c0_63], %40 {strides = array<i32>} : memref<432x512xbf16, #tpu.memory_space<vmem>>, vector<16x512xbf16>,
    %c0_64 = arith.constant 0 : index
    %c2_65 = arith.constant 2 : index
    %c0_66 = arith.constant 0 : index
    %c65_67 = arith.constant 65 : index
    %42 = vector.load %arg1[%c0_64, %c2_65, %c0_66, %c65_67] : memref<1x4x16x768xbf16, #tpu.memory_space<vmem>>, vector<1x1x16x512xbf16>
    %43 = vector.shape_cast %42 : vector<1x1x16x512xbf16> to vector<16x512xbf16>
    %c224 = arith.constant 224 : index
    %c0_68 = arith.constant 0 : index
    %44 = vector.load %arg5[%c224, %c0_68] : memref<432x512xbf16, #tpu.memory_space<vmem>>, vector<16x512xbf16>
    tpu.vector_store %arg5[%c224, %c0_68], %43 {strides = array<i32>} : memref<432x512xbf16, #tpu.memory_space<vmem>>, vector<16x512xbf16>,
    %c0_69 = arith.constant 0 : index
    %c0_70 = arith.constant 0 : index
    %c0_71 = arith.constant 0 : index
    %c72 = arith.constant 72 : index
    %45 = vector.load %arg1[%c0_69, %c0_70, %c0_71, %c72] : memref<1x4x16x768xbf16, #tpu.memory_space<vmem>>, vector<1x1x16x512xbf16>
    %46 = vector.shape_cast %45 : vector<1x1x16x512xbf16> to vector<16x512xbf16>
    %c240 = arith.constant 240 : index
    %c0_72 = arith.constant 0 : index
    %47 = vector.load %arg5[%c240, %c0_72] : memref<432x512xbf16, #tpu.memory_space<vmem>>, vector<16x512xbf16>
    tpu.vector_store %arg5[%c240, %c0_72], %46 {strides = array<i32>} : memref<432x512xbf16, #tpu.memory_space<vmem>>, vector<16x512xbf16>,
    %c0_73 = arith.constant 0 : index
    %c1_74 = arith.constant 1 : index
    %c0_75 = arith.constant 0 : index
    %c72_76 = arith.constant 72 : index
    %48 = vector.load %arg1[%c0_73, %c1_74, %c0_75, %c72_76] : memref<1x4x16x768xbf16, #tpu.memory_space<vmem>>, vector<1x1x16x512xbf16>
    %49 = vector.shape_cast %48 : vector<1x1x16x512xbf16> to vector<16x512xbf16>
    %c256 = arith.constant 256 : index
    %c0_77 = arith.constant 0 : index
    %50 = vector.load %arg5[%c256, %c0_77] : memref<432x512xbf16, #tpu.memory_space<vmem>>, vector<16x512xbf16>
    tpu.vector_store %arg5[%c256, %c0_77], %49 {strides = array<i32>} : memref<432x512xbf16, #tpu.memory_space<vmem>>, vector<16x512xbf16>,
    %c0_78 = arith.constant 0 : index
    %c0_79 = arith.constant 0 : index
    %c0_80 = arith.constant 0 : index
    %c73 = arith.constant 73 : index
    %51 = vector.load %arg1[%c0_78, %c0_79, %c0_80, %c73] : memref<1x4x16x768xbf16, #tpu.memory_space<vmem>>, vector<1x1x16x512xbf16>
    %52 = vector.shape_cast %51 : vector<1x1x16x512xbf16> to vector<16x512xbf16>
    %c272 = arith.constant 272 : index
    %c0_81 = arith.constant 0 : index
    %53 = vector.load %arg5[%c272, %c0_81] : memref<432x512xbf16, #tpu.memory_space<vmem>>, vector<16x512xbf16>
    tpu.vector_store %arg5[%c272, %c0_81], %52 {strides = array<i32>} : memref<432x512xbf16, #tpu.memory_space<vmem>>, vector<16x512xbf16>,
    %c0_82 = arith.constant 0 : index
    %c0_83 = arith.constant 0 : index
    %c0_84 = arith.constant 0 : index
    %c128_85 = arith.constant 128 : index
    %54 = vector.load %arg1[%c0_82, %c0_83, %c0_84, %c128_85] : memref<1x4x16x768xbf16, #tpu.memory_space<vmem>>, vector<1x1x16x512xbf16>
    %55 = vector.shape_cast %54 : vector<1x1x16x512xbf16> to vector<16x512xbf16>
    %c288 = arith.constant 288 : index
    %c0_86 = arith.constant 0 : index
    %56 = vector.load %arg5[%c288, %c0_86] : memref<432x512xbf16, #tpu.memory_space<vmem>>, vector<16x512xbf16>
    tpu.vector_store %arg5[%c288, %c0_86], %55 {strides = array<i32>} : memref<432x512xbf16, #tpu.memory_space<vmem>>, vector<16x512xbf16>,
    %c0_87 = arith.constant 0 : index
    %c1_88 = arith.constant 1 : index
    %c0_89 = arith.constant 0 : index
    %c128_90 = arith.constant 128 : index
    %57 = vector.load %arg1[%c0_87, %c1_88, %c0_89, %c128_90] : memref<1x4x16x768xbf16, #tpu.memory_space<vmem>>, vector<1x1x16x512xbf16>
    %58 = vector.shape_cast %57 : vector<1x1x16x512xbf16> to vector<16x512xbf16>
    %c304 = arith.constant 304 : index
    %c0_91 = arith.constant 0 : index
    %59 = vector.load %arg5[%c304, %c0_91] : memref<432x512xbf16, #tpu.memory_space<vmem>>, vector<16x512xbf16>
    tpu.vector_store %arg5[%c304, %c0_91], %58 {strides = array<i32>} : memref<432x512xbf16, #tpu.memory_space<vmem>>, vector<16x512xbf16>,
    %c0_92 = arith.constant 0 : index
    %c0_93 = arith.constant 0 : index
    %c0_94 = arith.constant 0 : index
    %c129 = arith.constant 129 : index
    %60 = vector.load %arg1[%c0_92, %c0_93, %c0_94, %c129] : memref<1x4x16x768xbf16, #tpu.memory_space<vmem>>, vector<1x1x16x512xbf16>
    %61 = vector.shape_cast %60 : vector<1x1x16x512xbf16> to vector<16x512xbf16>
    %c320 = arith.constant 320 : index
    %c0_95 = arith.constant 0 : index
    %62 = vector.load %arg5[%c320, %c0_95] : memref<432x512xbf16, #tpu.memory_space<vmem>>, vector<16x512xbf16>
    tpu.vector_store %arg5[%c320, %c0_95], %61 {strides = array<i32>} : memref<432x512xbf16, #tpu.memory_space<vmem>>, vector<16x512xbf16>,
    %c0_96 = arith.constant 0 : index
    %c2_97 = arith.constant 2 : index
    %c0_98 = arith.constant 0 : index
    %c128_99 = arith.constant 128 : index
    %63 = vector.load %arg1[%c0_96, %c2_97, %c0_98, %c128_99] : memref<1x4x16x768xbf16, #tpu.memory_space<vmem>>, vector<1x1x16x512xbf16>
    %64 = vector.shape_cast %63 : vector<1x1x16x512xbf16> to vector<16x512xbf16>
    %c336 = arith.constant 336 : index
    %c0_100 = arith.constant 0 : index
    %65 = vector.load %arg5[%c336, %c0_100] : memref<432x512xbf16, #tpu.memory_space<vmem>>, vector<16x512xbf16>
    tpu.vector_store %arg5[%c336, %c0_100], %64 {strides = array<i32>} : memref<432x512xbf16, #tpu.memory_space<vmem>>, vector<16x512xbf16>,
    %c0_101 = arith.constant 0 : index
    %c3_102 = arith.constant 3 : index
    %c0_103 = arith.constant 0 : index
    %c128_104 = arith.constant 128 : index
    %66 = vector.load %arg1[%c0_101, %c3_102, %c0_103, %c128_104] : memref<1x4x16x768xbf16, #tpu.memory_space<vmem>>, vector<1x1x16x512xbf16>
    %67 = vector.shape_cast %66 : vector<1x1x16x512xbf16> to vector<16x512xbf16>
    %c352 = arith.constant 352 : index
    %c0_105 = arith.constant 0 : index
    %68 = vector.load %arg5[%c352, %c0_105] : memref<432x512xbf16, #tpu.memory_space<vmem>>, vector<16x512xbf16>
    tpu.vector_store %arg5[%c352, %c0_105], %67 {strides = array<i32>} : memref<432x512xbf16, #tpu.memory_space<vmem>>, vector<16x512xbf16>,
    %c0_106 = arith.constant 0 : index
    %c2_107 = arith.constant 2 : index
    %c0_108 = arith.constant 0 : index
    %c129_109 = arith.constant 129 : index
    %69 = vector.load %arg1[%c0_106, %c2_107, %c0_108, %c129_109] : memref<1x4x16x768xbf16, #tpu.memory_space<vmem>>, vector<1x1x16x512xbf16>
    %70 = vector.shape_cast %69 : vector<1x1x16x512xbf16> to vector<16x512xbf16>
    %c368 = arith.constant 368 : index
    %c0_110 = arith.constant 0 : index
    %71 = vector.load %arg5[%c368, %c0_110] : memref<432x512xbf16, #tpu.memory_space<vmem>>, vector<16x512xbf16>
    tpu.vector_store %arg5[%c368, %c0_110], %70 {strides = array<i32>} : memref<432x512xbf16, #tpu.memory_space<vmem>>, vector<16x512xbf16>,
    %c0_111 = arith.constant 0 : index
    %c0_112 = arith.constant 0 : index
    %c0_113 = arith.constant 0 : index
    %c136 = arith.constant 136 : index
    %72 = vector.load %arg1[%c0_111, %c0_112, %c0_113, %c136] : memref<1x4x16x768xbf16, #tpu.memory_space<vmem>>, vector<1x1x16x512xbf16>
    %73 = vector.shape_cast %72 : vector<1x1x16x512xbf16> to vector<16x512xbf16>
    %c384 = arith.constant 384 : index
    %c0_114 = arith.constant 0 : index
    %74 = vector.load %arg5[%c384, %c0_114] : memref<432x512xbf16, #tpu.memory_space<vmem>>, vector<16x512xbf16>
    tpu.vector_store %arg5[%c384, %c0_114], %73 {strides = array<i32>} : memref<432x512xbf16, #tpu.memory_space<vmem>>, vector<16x512xbf16>,
    %c0_115 = arith.constant 0 : index
    %c1_116 = arith.constant 1 : index
    %c0_117 = arith.constant 0 : index
    %c136_118 = arith.constant 136 : index
    %75 = vector.load %arg1[%c0_115, %c1_116, %c0_117, %c136_118] : memref<1x4x16x768xbf16, #tpu.memory_space<vmem>>, vector<1x1x16x512xbf16>
    %76 = vector.shape_cast %75 : vector<1x1x16x512xbf16> to vector<16x512xbf16>
    %c400 = arith.constant 400 : index
    %c0_119 = arith.constant 0 : index
    %77 = vector.load %arg5[%c400, %c0_119] : memref<432x512xbf16, #tpu.memory_space<vmem>>, vector<16x512xbf16>
    tpu.vector_store %arg5[%c400, %c0_119], %76 {strides = array<i32>} : memref<432x512xbf16, #tpu.memory_space<vmem>>, vector<16x512xbf16>,
    %c0_120 = arith.constant 0 : index
    %c0_121 = arith.constant 0 : index
    %c0_122 = arith.constant 0 : index
    %c137 = arith.constant 137 : index
    %78 = vector.load %arg1[%c0_120, %c0_121, %c0_122, %c137] : memref<1x4x16x768xbf16, #tpu.memory_space<vmem>>, vector<1x1x16x512xbf16>
    %79 = vector.shape_cast %78 : vector<1x1x16x512xbf16> to vector<16x512xbf16>
    %c416 = arith.constant 416 : index
    %c0_123 = arith.constant 0 : index
    %80 = vector.load %arg5[%c416, %c0_123] : memref<432x512xbf16, #tpu.memory_space<vmem>>, vector<16x512xbf16>
    tpu.vector_store %arg5[%c416, %c0_123], %79 {strides = array<i32>} : memref<432x512xbf16, #tpu.memory_space<vmem>>, vector<16x512xbf16>,
    %c0_124 = arith.constant 0 : index
    %c0_125 = arith.constant 0 : index
    %81 = vector.load %arg2[%c0_124, %c0_125] : memref<8x432xbf16, #tpu.memory_space<vmem>>, vector<8x432xbf16>
    %c0_126 = arith.constant 0 : index
    %c0_127 = arith.constant 0 : index
    %82 = vector.load %arg5[%c0_126, %c0_127] : memref<432x512xbf16, #tpu.memory_space<vmem>>, vector<432x512xbf16>
    %cst = arith.constant dense<0.000000e+00> : vector<8x512xf32>
    %83 = tpu.matmul %81, %82, %cst {dimension_numbers = #tpu.dot_dimension_numbers<[1], [0], [0], [1], [0, 0, 1, 1], [], []>} : vector<8x432xbf16>, vector<432x512xbf16>, vector<8x512xf32> -> vector<8x512xf32>
    %84 = math.tanh %83 : vector<8x512xf32>
    %c0_128 = arith.constant 0 : index
    %c0_129 = arith.constant 0 : index
    %85 = vector.load %arg3[%c0_128, %c0_129] : memref<1x512xf32, #tpu.memory_space<vmem>>, vector<1x512xf32>
    %86 = vector.broadcast %85 : vector<1x512xf32> to vector<8x512xf32>
    %87 = arith.mulf %84, %86 : vector<8x512xf32>
    %cst_130 = arith.constant dense<0.000000e+00> : vector<8xf32>
    %88 = vector.multi_reduction <add>, %87, %cst_130 [1] : vector<8x512xf32> to vector<8xf32>
    %89 = vector.shape_cast %88 : vector<8xf32> to vector<8x1xf32>
    %cst_131 = arith.constant 0.00255102036 : f32
    %90 = vector.broadcast %cst_131 : f32 to vector<8x1xf32>
    %91 = arith.mulf %89, %90 : vector<8x1xf32>
    %92 = arith.mulf %87, %87 : vector<8x512xf32>
    %cst_132 = arith.constant dense<0.000000e+00> : vector<8xf32>
    %93 = vector.multi_reduction <add>, %92, %cst_132 [1] : vector<8x512xf32> to vector<8xf32>
    %94 = vector.shape_cast %93 : vector<8xf32> to vector<8x1xf32>
    %cst_133 = arith.constant 0.00255102036 : f32
    %95 = vector.broadcast %cst_133 : f32 to vector<8x1xf32>
    %96 = arith.mulf %94, %95 : vector<8x1xf32>
    %97 = arith.mulf %91, %91 : vector<8x1xf32>
    %98 = arith.subf %96, %97 : vector<8x1xf32>
    %99 = vector.broadcast %91 : vector<8x1xf32> to vector<8x512xf32>
    %100 = arith.subf %84, %99 : vector<8x512xf32>
    %cst_134 = arith.constant 9.99999974E-6 : f32
    %101 = vector.broadcast %cst_134 : f32 to vector<8x1xf32>
    %102 = arith.addf %98, %101 : vector<8x1xf32>
    %103 = math.rsqrt %102 : vector<8x1xf32>
    %104 = vector.broadcast %103 : vector<8x1xf32> to vector<8x512xf32>
    %105 = arith.mulf %100, %104 : vector<8x512xf32>
    %c0_135 = arith.constant 0 : index
    %c0_136 = arith.constant 0 : index
    %c0_137 = arith.constant 0 : index
    %106 = vector.load %arg4[%c0_135, %c0_136, %c0_137] : memref<1x8x512xf32, #tpu.memory_space<vmem>>, vector<1x8x512xf32>
    %107 = vector.shape_cast %106 : vector<1x8x512xf32> to vector<8x512xf32>
    %108 = vector.shape_cast %105 : vector<8x512xf32> to vector<1x8x512xf32>
    tpu.vector_store %arg4[%c0_135, %c0_136, %c0_137], %108 {strides = array<i32>} : memref<1x8x512xf32, #tpu.memory_space<vmem>>, vector<1x8x512xf32>,
    return
  }
  func.func @transform_0(%arg0: i32) -> (i32, i32, i32, i32) {
    %c0_i32 = arith.constant 0 : i32
    %c0_i32_0 = arith.constant 0 : i32
    %c0_i32_1 = arith.constant 0 : i32
    %c0_i32_2 = arith.constant 0 : i32
    return %arg0, %c0_i32, %c0_i32_0, %c0_i32_1 : i32, i32, i32, i32
  }
  func.func @transform_1(%arg0: i32) -> (i32, i32) {
    %c0_i32 = arith.constant 0 : i32
    %c0_i32_0 = arith.constant 0 : i32
    %c0_i32_1 = arith.constant 0 : i32
    return %c0_i32, %c0_i32_0 : i32, i32
  }
  func.func @transform_2(%arg0: i32) -> (i32, i32) {
    %c0_i32 = arith.constant 0 : i32
    %c0_i32_0 = arith.constant 0 : i32
    %c0_i32_1 = arith.constant 0 : i32
    return %c0_i32, %c0_i32_0 : i32, i32
  }
  func.func @transform_3(%arg0: i32) -> (i32, i32, i32) {
    %c0_i32 = arith.constant 0 : i32
    %c0_i32_0 = arith.constant 0 : i32
    %c0_i32_1 = arith.constant 0 : i32
    return %arg0, %c0_i32, %c0_i32_0 : i32, i32, i32
  }
}

module attributes {stable_mosaic.version = 11 : i64} {
  func.func @_conv_tanh_instnorm_kernel(%arg0: i32, %arg1: memref<1x1x16x640xbf16, #tpu.memory_space<vmem>>, %arg2: memref<16x432xbf16, #tpu.memory_space<vmem>>, %arg3: memref<1x512xf32, #tpu.memory_space<vmem>>, %arg4: memref<1x16x512xf32, #tpu.memory_space<vmem>>, %arg5: memref<432x512xbf16, #tpu.memory_space<vmem>>) attributes {dimension_semantics = [#tpu.dimension_semantics<parallel>], iteration_bounds = array<i64: 2>, scalar_prefetch = 0 : i64, scratch_operands = 1 : i64, tpu.core_type = #tpu.core_type<tc>, window_params = [{transform_indices = @transform_0, window_bounds = array<i64: 1, 1, 16, 640>}, {pipeline_mode = #tpu.pipeline_mode<synchronous>, transform_indices = @transform_1, window_bounds = array<i64: 16, 432>}, {pipeline_mode = #tpu.pipeline_mode<synchronous>, transform_indices = @transform_2, window_bounds = array<i64: 1, 512>}, {transform_indices = @transform_3, window_bounds = array<i64: 1, 16, 512>}]} {
    %c0 = arith.constant 0 : index
    %c0_0 = arith.constant 0 : index
    %c0_1 = arith.constant 0 : index
    %c0_2 = arith.constant 0 : index
    %0 = vector.load %arg1[%c0, %c0_0, %c0_1, %c0_2] : memref<1x1x16x640xbf16, #tpu.memory_space<vmem>>, vector<1x1x16x512xbf16>
    %1 = vector.shape_cast %0 : vector<1x1x16x512xbf16> to vector<16x512xbf16>
    %c0_3 = arith.constant 0 : index
    %c0_4 = arith.constant 0 : index
    %2 = vector.load %arg5[%c0_3, %c0_4] : memref<432x512xbf16, #tpu.memory_space<vmem>>, vector<16x512xbf16>
    tpu.vector_store %arg5[%c0_3, %c0_4], %1 {strides = array<i32>} : memref<432x512xbf16, #tpu.memory_space<vmem>>, vector<16x512xbf16>,
    %c0_5 = arith.constant 0 : index
    %c0_6 = arith.constant 0 : index
    %c0_7 = arith.constant 0 : index
    %c1 = arith.constant 1 : index
    %3 = vector.load %arg1[%c0_5, %c0_6, %c0_7, %c1] : memref<1x1x16x640xbf16, #tpu.memory_space<vmem>>, vector<1x1x16x512xbf16>
    %4 = vector.shape_cast %3 : vector<1x1x16x512xbf16> to vector<16x512xbf16>
    %c16 = arith.constant 16 : index
    %c0_8 = arith.constant 0 : index
    %5 = vector.load %arg5[%c16, %c0_8] : memref<432x512xbf16, #tpu.memory_space<vmem>>, vector<16x512xbf16>
    tpu.vector_store %arg5[%c16, %c0_8], %4 {strides = array<i32>} : memref<432x512xbf16, #tpu.memory_space<vmem>>, vector<16x512xbf16>,
    %c0_9 = arith.constant 0 : index
    %c0_10 = arith.constant 0 : index
    %c0_11 = arith.constant 0 : index
    %c2 = arith.constant 2 : index
    %6 = vector.load %arg1[%c0_9, %c0_10, %c0_11, %c2] : memref<1x1x16x640xbf16, #tpu.memory_space<vmem>>, vector<1x1x16x512xbf16>
    %7 = vector.shape_cast %6 : vector<1x1x16x512xbf16> to vector<16x512xbf16>
    %c32 = arith.constant 32 : index
    %c0_12 = arith.constant 0 : index
    %8 = vector.load %arg5[%c32, %c0_12] : memref<432x512xbf16, #tpu.memory_space<vmem>>, vector<16x512xbf16>
    tpu.vector_store %arg5[%c32, %c0_12], %7 {strides = array<i32>} : memref<432x512xbf16, #tpu.memory_space<vmem>>, vector<16x512xbf16>,
    %c0_13 = arith.constant 0 : index
    %c0_14 = arith.constant 0 : index
    %c0_15 = arith.constant 0 : index
    %c7 = arith.constant 7 : index
    %9 = vector.load %arg1[%c0_13, %c0_14, %c0_15, %c7] : memref<1x1x16x640xbf16, #tpu.memory_space<vmem>>, vector<1x1x16x512xbf16>
    %10 = vector.shape_cast %9 : vector<1x1x16x512xbf16> to vector<16x512xbf16>
    %c48 = arith.constant 48 : index
    %c0_16 = arith.constant 0 : index
    %11 = vector.load %arg5[%c48, %c0_16] : memref<432x512xbf16, #tpu.memory_space<vmem>>, vector<16x512xbf16>
    tpu.vector_store %arg5[%c48, %c0_16], %10 {strides = array<i32>} : memref<432x512xbf16, #tpu.memory_space<vmem>>, vector<16x512xbf16>,
    %c0_17 = arith.constant 0 : index
    %c0_18 = arith.constant 0 : index
    %c0_19 = arith.constant 0 : index
    %c8 = arith.constant 8 : index
    %12 = vector.load %arg1[%c0_17, %c0_18, %c0_19, %c8] : memref<1x1x16x640xbf16, #tpu.memory_space<vmem>>, vector<1x1x16x512xbf16>
    %13 = vector.shape_cast %12 : vector<1x1x16x512xbf16> to vector<16x512xbf16>
    %c64 = arith.constant 64 : index
    %c0_20 = arith.constant 0 : index
    %14 = vector.load %arg5[%c64, %c0_20] : memref<432x512xbf16, #tpu.memory_space<vmem>>, vector<16x512xbf16>
    tpu.vector_store %arg5[%c64, %c0_20], %13 {strides = array<i32>} : memref<432x512xbf16, #tpu.memory_space<vmem>>, vector<16x512xbf16>,
    %c0_21 = arith.constant 0 : index
    %c0_22 = arith.constant 0 : index
    %c0_23 = arith.constant 0 : index
    %c9 = arith.constant 9 : index
    %15 = vector.load %arg1[%c0_21, %c0_22, %c0_23, %c9] : memref<1x1x16x640xbf16, #tpu.memory_space<vmem>>, vector<1x1x16x512xbf16>
    %16 = vector.shape_cast %15 : vector<1x1x16x512xbf16> to vector<16x512xbf16>
    %c80 = arith.constant 80 : index
    %c0_24 = arith.constant 0 : index
    %17 = vector.load %arg5[%c80, %c0_24] : memref<432x512xbf16, #tpu.memory_space<vmem>>, vector<16x512xbf16>
    tpu.vector_store %arg5[%c80, %c0_24], %16 {strides = array<i32>} : memref<432x512xbf16, #tpu.memory_space<vmem>>, vector<16x512xbf16>,
    %c0_25 = arith.constant 0 : index
    %c0_26 = arith.constant 0 : index
    %c0_27 = arith.constant 0 : index
    %c14 = arith.constant 14 : index
    %18 = vector.load %arg1[%c0_25, %c0_26, %c0_27, %c14] : memref<1x1x16x640xbf16, #tpu.memory_space<vmem>>, vector<1x1x16x512xbf16>
    %19 = vector.shape_cast %18 : vector<1x1x16x512xbf16> to vector<16x512xbf16>
    %c96 = arith.constant 96 : index
    %c0_28 = arith.constant 0 : index
    %20 = vector.load %arg5[%c96, %c0_28] : memref<432x512xbf16, #tpu.memory_space<vmem>>, vector<16x512xbf16>
    tpu.vector_store %arg5[%c96, %c0_28], %19 {strides = array<i32>} : memref<432x512xbf16, #tpu.memory_space<vmem>>, vector<16x512xbf16>,
    %c0_29 = arith.constant 0 : index
    %c0_30 = arith.constant 0 : index
    %c0_31 = arith.constant 0 : index
    %c15 = arith.constant 15 : index
    %21 = vector.load %arg1[%c0_29, %c0_30, %c0_31, %c15] : memref<1x1x16x640xbf16, #tpu.memory_space<vmem>>, vector<1x1x16x512xbf16>
    %22 = vector.shape_cast %21 : vector<1x1x16x512xbf16> to vector<16x512xbf16>
    %c112 = arith.constant 112 : index
    %c0_32 = arith.constant 0 : index
    %23 = vector.load %arg5[%c112, %c0_32] : memref<432x512xbf16, #tpu.memory_space<vmem>>, vector<16x512xbf16>
    tpu.vector_store %arg5[%c112, %c0_32], %22 {strides = array<i32>} : memref<432x512xbf16, #tpu.memory_space<vmem>>, vector<16x512xbf16>,
    %c0_33 = arith.constant 0 : index
    %c0_34 = arith.constant 0 : index
    %c0_35 = arith.constant 0 : index
    %c16_36 = arith.constant 16 : index
    %24 = vector.load %arg1[%c0_33, %c0_34, %c0_35, %c16_36] : memref<1x1x16x640xbf16, #tpu.memory_space<vmem>>, vector<1x1x16x512xbf16>
    %25 = vector.shape_cast %24 : vector<1x1x16x512xbf16> to vector<16x512xbf16>
    %c128 = arith.constant 128 : index
    %c0_37 = arith.constant 0 : index
    %26 = vector.load %arg5[%c128, %c0_37] : memref<432x512xbf16, #tpu.memory_space<vmem>>, vector<16x512xbf16>
    tpu.vector_store %arg5[%c128, %c0_37], %25 {strides = array<i32>} : memref<432x512xbf16, #tpu.memory_space<vmem>>, vector<16x512xbf16>,
    %c0_38 = arith.constant 0 : index
    %c0_39 = arith.constant 0 : index
    %c0_40 = arith.constant 0 : index
    %c49 = arith.constant 49 : index
    %27 = vector.load %arg1[%c0_38, %c0_39, %c0_40, %c49] : memref<1x1x16x640xbf16, #tpu.memory_space<vmem>>, vector<1x1x16x512xbf16>
    %28 = vector.shape_cast %27 : vector<1x1x16x512xbf16> to vector<16x512xbf16>
    %c144 = arith.constant 144 : index
    %c0_41 = arith.constant 0 : index
    %29 = vector.load %arg5[%c144, %c0_41] : memref<432x512xbf16, #tpu.memory_space<vmem>>, vector<16x512xbf16>
    tpu.vector_store %arg5[%c144, %c0_41], %28 {strides = array<i32>} : memref<432x512xbf16, #tpu.memory_space<vmem>>, vector<16x512xbf16>,
    %c0_42 = arith.constant 0 : index
    %c0_43 = arith.constant 0 : index
    %c0_44 = arith.constant 0 : index
    %c50 = arith.constant 50 : index
    %30 = vector.load %arg1[%c0_42, %c0_43, %c0_44, %c50] : memref<1x1x16x640xbf16, #tpu.memory_space<vmem>>, vector<1x1x16x512xbf16>
    %31 = vector.shape_cast %30 : vector<1x1x16x512xbf16> to vector<16x512xbf16>
    %c160 = arith.constant 160 : index
    %c0_45 = arith.constant 0 : index
    %32 = vector.load %arg5[%c160, %c0_45] : memref<432x512xbf16, #tpu.memory_space<vmem>>, vector<16x512xbf16>
    tpu.vector_store %arg5[%c160, %c0_45], %31 {strides = array<i32>} : memref<432x512xbf16, #tpu.memory_space<vmem>>, vector<16x512xbf16>,
    %c0_46 = arith.constant 0 : index
    %c0_47 = arith.constant 0 : index
    %c0_48 = arith.constant 0 : index
    %c51 = arith.constant 51 : index
    %33 = vector.load %arg1[%c0_46, %c0_47, %c0_48, %c51] : memref<1x1x16x640xbf16, #tpu.memory_space<vmem>>, vector<1x1x16x512xbf16>
    %34 = vector.shape_cast %33 : vector<1x1x16x512xbf16> to vector<16x512xbf16>
    %c176 = arith.constant 176 : index
    %c0_49 = arith.constant 0 : index
    %35 = vector.load %arg5[%c176, %c0_49] : memref<432x512xbf16, #tpu.memory_space<vmem>>, vector<16x512xbf16>
    tpu.vector_store %arg5[%c176, %c0_49], %34 {strides = array<i32>} : memref<432x512xbf16, #tpu.memory_space<vmem>>, vector<16x512xbf16>,
    %c0_50 = arith.constant 0 : index
    %c0_51 = arith.constant 0 : index
    %c0_52 = arith.constant 0 : index
    %c56 = arith.constant 56 : index
    %36 = vector.load %arg1[%c0_50, %c0_51, %c0_52, %c56] : memref<1x1x16x640xbf16, #tpu.memory_space<vmem>>, vector<1x1x16x512xbf16>
    %37 = vector.shape_cast %36 : vector<1x1x16x512xbf16> to vector<16x512xbf16>
    %c192 = arith.constant 192 : index
    %c0_53 = arith.constant 0 : index
    %38 = vector.load %arg5[%c192, %c0_53] : memref<432x512xbf16, #tpu.memory_space<vmem>>, vector<16x512xbf16>
    tpu.vector_store %arg5[%c192, %c0_53], %37 {strides = array<i32>} : memref<432x512xbf16, #tpu.memory_space<vmem>>, vector<16x512xbf16>,
    %c0_54 = arith.constant 0 : index
    %c0_55 = arith.constant 0 : index
    %c0_56 = arith.constant 0 : index
    %c57 = arith.constant 57 : index
    %39 = vector.load %arg1[%c0_54, %c0_55, %c0_56, %c57] : memref<1x1x16x640xbf16, #tpu.memory_space<vmem>>, vector<1x1x16x512xbf16>
    %40 = vector.shape_cast %39 : vector<1x1x16x512xbf16> to vector<16x512xbf16>
    %c208 = arith.constant 208 : index
    %c0_57 = arith.constant 0 : index
    %41 = vector.load %arg5[%c208, %c0_57] : memref<432x512xbf16, #tpu.memory_space<vmem>>, vector<16x512xbf16>
    tpu.vector_store %arg5[%c208, %c0_57], %40 {strides = array<i32>} : memref<432x512xbf16, #tpu.memory_space<vmem>>, vector<16x512xbf16>,
    %c0_58 = arith.constant 0 : index
    %c0_59 = arith.constant 0 : index
    %c0_60 = arith.constant 0 : index
    %c58 = arith.constant 58 : index
    %42 = vector.load %arg1[%c0_58, %c0_59, %c0_60, %c58] : memref<1x1x16x640xbf16, #tpu.memory_space<vmem>>, vector<1x1x16x512xbf16>
    %43 = vector.shape_cast %42 : vector<1x1x16x512xbf16> to vector<16x512xbf16>
    %c224 = arith.constant 224 : index
    %c0_61 = arith.constant 0 : index
    %44 = vector.load %arg5[%c224, %c0_61] : memref<432x512xbf16, #tpu.memory_space<vmem>>, vector<16x512xbf16>
    tpu.vector_store %arg5[%c224, %c0_61], %43 {strides = array<i32>} : memref<432x512xbf16, #tpu.memory_space<vmem>>, vector<16x512xbf16>,
    %c0_62 = arith.constant 0 : index
    %c0_63 = arith.constant 0 : index
    %c0_64 = arith.constant 0 : index
    %c63 = arith.constant 63 : index
    %45 = vector.load %arg1[%c0_62, %c0_63, %c0_64, %c63] : memref<1x1x16x640xbf16, #tpu.memory_space<vmem>>, vector<1x1x16x512xbf16>
    %46 = vector.shape_cast %45 : vector<1x1x16x512xbf16> to vector<16x512xbf16>
    %c240 = arith.constant 240 : index
    %c0_65 = arith.constant 0 : index
    %47 = vector.load %arg5[%c240, %c0_65] : memref<432x512xbf16, #tpu.memory_space<vmem>>, vector<16x512xbf16>
    tpu.vector_store %arg5[%c240, %c0_65], %46 {strides = array<i32>} : memref<432x512xbf16, #tpu.memory_space<vmem>>, vector<16x512xbf16>,
    %c0_66 = arith.constant 0 : index
    %c0_67 = arith.constant 0 : index
    %c0_68 = arith.constant 0 : index
    %c64_69 = arith.constant 64 : index
    %48 = vector.load %arg1[%c0_66, %c0_67, %c0_68, %c64_69] : memref<1x1x16x640xbf16, #tpu.memory_space<vmem>>, vector<1x1x16x512xbf16>
    %49 = vector.shape_cast %48 : vector<1x1x16x512xbf16> to vector<16x512xbf16>
    %c256 = arith.constant 256 : index
    %c0_70 = arith.constant 0 : index
    %50 = vector.load %arg5[%c256, %c0_70] : memref<432x512xbf16, #tpu.memory_space<vmem>>, vector<16x512xbf16>
    tpu.vector_store %arg5[%c256, %c0_70], %49 {strides = array<i32>} : memref<432x512xbf16, #tpu.memory_space<vmem>>, vector<16x512xbf16>,
    %c0_71 = arith.constant 0 : index
    %c0_72 = arith.constant 0 : index
    %c0_73 = arith.constant 0 : index
    %c65 = arith.constant 65 : index
    %51 = vector.load %arg1[%c0_71, %c0_72, %c0_73, %c65] : memref<1x1x16x640xbf16, #tpu.memory_space<vmem>>, vector<1x1x16x512xbf16>
    %52 = vector.shape_cast %51 : vector<1x1x16x512xbf16> to vector<16x512xbf16>
    %c272 = arith.constant 272 : index
    %c0_74 = arith.constant 0 : index
    %53 = vector.load %arg5[%c272, %c0_74] : memref<432x512xbf16, #tpu.memory_space<vmem>>, vector<16x512xbf16>
    tpu.vector_store %arg5[%c272, %c0_74], %52 {strides = array<i32>} : memref<432x512xbf16, #tpu.memory_space<vmem>>, vector<16x512xbf16>,
    %c0_75 = arith.constant 0 : index
    %c0_76 = arith.constant 0 : index
    %c0_77 = arith.constant 0 : index
    %c98 = arith.constant 98 : index
    %54 = vector.load %arg1[%c0_75, %c0_76, %c0_77, %c98] : memref<1x1x16x640xbf16, #tpu.memory_space<vmem>>, vector<1x1x16x512xbf16>
    %55 = vector.shape_cast %54 : vector<1x1x16x512xbf16> to vector<16x512xbf16>
    %c288 = arith.constant 288 : index
    %c0_78 = arith.constant 0 : index
    %56 = vector.load %arg5[%c288, %c0_78] : memref<432x512xbf16, #tpu.memory_space<vmem>>, vector<16x512xbf16>
    tpu.vector_store %arg5[%c288, %c0_78], %55 {strides = array<i32>} : memref<432x512xbf16, #tpu.memory_space<vmem>>, vector<16x512xbf16>,
    %c0_79 = arith.constant 0 : index
    %c0_80 = arith.constant 0 : index
    %c0_81 = arith.constant 0 : index
    %c99 = arith.constant 99 : index
    %57 = vector.load %arg1[%c0_79, %c0_80, %c0_81, %c99] : memref<1x1x16x640xbf16, #tpu.memory_space<vmem>>, vector<1x1x16x512xbf16>
    %58 = vector.shape_cast %57 : vector<1x1x16x512xbf16> to vector<16x512xbf16>
    %c304 = arith.constant 304 : index
    %c0_82 = arith.constant 0 : index
    %59 = vector.load %arg5[%c304, %c0_82] : memref<432x512xbf16, #tpu.memory_space<vmem>>, vector<16x512xbf16>
    tpu.vector_store %arg5[%c304, %c0_82], %58 {strides = array<i32>} : memref<432x512xbf16, #tpu.memory_space<vmem>>, vector<16x512xbf16>,
    %c0_83 = arith.constant 0 : index
    %c0_84 = arith.constant 0 : index
    %c0_85 = arith.constant 0 : index
    %c100 = arith.constant 100 : index
    %60 = vector.load %arg1[%c0_83, %c0_84, %c0_85, %c100] : memref<1x1x16x640xbf16, #tpu.memory_space<vmem>>, vector<1x1x16x512xbf16>
    %61 = vector.shape_cast %60 : vector<1x1x16x512xbf16> to vector<16x512xbf16>
    %c320 = arith.constant 320 : index
    %c0_86 = arith.constant 0 : index
    %62 = vector.load %arg5[%c320, %c0_86] : memref<432x512xbf16, #tpu.memory_space<vmem>>, vector<16x512xbf16>
    tpu.vector_store %arg5[%c320, %c0_86], %61 {strides = array<i32>} : memref<432x512xbf16, #tpu.memory_space<vmem>>, vector<16x512xbf16>,
    %c0_87 = arith.constant 0 : index
    %c0_88 = arith.constant 0 : index
    %c0_89 = arith.constant 0 : index
    %c105 = arith.constant 105 : index
    %63 = vector.load %arg1[%c0_87, %c0_88, %c0_89, %c105] : memref<1x1x16x640xbf16, #tpu.memory_space<vmem>>, vector<1x1x16x512xbf16>
    %64 = vector.shape_cast %63 : vector<1x1x16x512xbf16> to vector<16x512xbf16>
    %c336 = arith.constant 336 : index
    %c0_90 = arith.constant 0 : index
    %65 = vector.load %arg5[%c336, %c0_90] : memref<432x512xbf16, #tpu.memory_space<vmem>>, vector<16x512xbf16>
    tpu.vector_store %arg5[%c336, %c0_90], %64 {strides = array<i32>} : memref<432x512xbf16, #tpu.memory_space<vmem>>, vector<16x512xbf16>,
    %c0_91 = arith.constant 0 : index
    %c0_92 = arith.constant 0 : index
    %c0_93 = arith.constant 0 : index
    %c106 = arith.constant 106 : index
    %66 = vector.load %arg1[%c0_91, %c0_92, %c0_93, %c106] : memref<1x1x16x640xbf16, #tpu.memory_space<vmem>>, vector<1x1x16x512xbf16>
    %67 = vector.shape_cast %66 : vector<1x1x16x512xbf16> to vector<16x512xbf16>
    %c352 = arith.constant 352 : index
    %c0_94 = arith.constant 0 : index
    %68 = vector.load %arg5[%c352, %c0_94] : memref<432x512xbf16, #tpu.memory_space<vmem>>, vector<16x512xbf16>
    tpu.vector_store %arg5[%c352, %c0_94], %67 {strides = array<i32>} : memref<432x512xbf16, #tpu.memory_space<vmem>>, vector<16x512xbf16>,
    %c0_95 = arith.constant 0 : index
    %c0_96 = arith.constant 0 : index
    %c0_97 = arith.constant 0 : index
    %c107 = arith.constant 107 : index
    %69 = vector.load %arg1[%c0_95, %c0_96, %c0_97, %c107] : memref<1x1x16x640xbf16, #tpu.memory_space<vmem>>, vector<1x1x16x512xbf16>
    %70 = vector.shape_cast %69 : vector<1x1x16x512xbf16> to vector<16x512xbf16>
    %c368 = arith.constant 368 : index
    %c0_98 = arith.constant 0 : index
    %71 = vector.load %arg5[%c368, %c0_98] : memref<432x512xbf16, #tpu.memory_space<vmem>>, vector<16x512xbf16>
    tpu.vector_store %arg5[%c368, %c0_98], %70 {strides = array<i32>} : memref<432x512xbf16, #tpu.memory_space<vmem>>, vector<16x512xbf16>,
    %c0_99 = arith.constant 0 : index
    %c0_100 = arith.constant 0 : index
    %c0_101 = arith.constant 0 : index
    %c112_102 = arith.constant 112 : index
    %72 = vector.load %arg1[%c0_99, %c0_100, %c0_101, %c112_102] : memref<1x1x16x640xbf16, #tpu.memory_space<vmem>>, vector<1x1x16x512xbf16>
    %73 = vector.shape_cast %72 : vector<1x1x16x512xbf16> to vector<16x512xbf16>
    %c384 = arith.constant 384 : index
    %c0_103 = arith.constant 0 : index
    %74 = vector.load %arg5[%c384, %c0_103] : memref<432x512xbf16, #tpu.memory_space<vmem>>, vector<16x512xbf16>
    tpu.vector_store %arg5[%c384, %c0_103], %73 {strides = array<i32>} : memref<432x512xbf16, #tpu.memory_space<vmem>>, vector<16x512xbf16>,
    %c0_104 = arith.constant 0 : index
    %c0_105 = arith.constant 0 : index
    %c0_106 = arith.constant 0 : index
    %c113 = arith.constant 113 : index
    %75 = vector.load %arg1[%c0_104, %c0_105, %c0_106, %c113] : memref<1x1x16x640xbf16, #tpu.memory_space<vmem>>, vector<1x1x16x512xbf16>
    %76 = vector.shape_cast %75 : vector<1x1x16x512xbf16> to vector<16x512xbf16>
    %c400 = arith.constant 400 : index
    %c0_107 = arith.constant 0 : index
    %77 = vector.load %arg5[%c400, %c0_107] : memref<432x512xbf16, #tpu.memory_space<vmem>>, vector<16x512xbf16>
    tpu.vector_store %arg5[%c400, %c0_107], %76 {strides = array<i32>} : memref<432x512xbf16, #tpu.memory_space<vmem>>, vector<16x512xbf16>,
    %c0_108 = arith.constant 0 : index
    %c0_109 = arith.constant 0 : index
    %c0_110 = arith.constant 0 : index
    %c114 = arith.constant 114 : index
    %78 = vector.load %arg1[%c0_108, %c0_109, %c0_110, %c114] : memref<1x1x16x640xbf16, #tpu.memory_space<vmem>>, vector<1x1x16x512xbf16>
    %79 = vector.shape_cast %78 : vector<1x1x16x512xbf16> to vector<16x512xbf16>
    %c416 = arith.constant 416 : index
    %c0_111 = arith.constant 0 : index
    %80 = vector.load %arg5[%c416, %c0_111] : memref<432x512xbf16, #tpu.memory_space<vmem>>, vector<16x512xbf16>
    tpu.vector_store %arg5[%c416, %c0_111], %79 {strides = array<i32>} : memref<432x512xbf16, #tpu.memory_space<vmem>>, vector<16x512xbf16>,
    %c0_112 = arith.constant 0 : index
    %c0_113 = arith.constant 0 : index
    %81 = vector.load %arg2[%c0_112, %c0_113] : memref<16x432xbf16, #tpu.memory_space<vmem>>, vector<16x432xbf16>
    %c0_114 = arith.constant 0 : index
    %c0_115 = arith.constant 0 : index
    %82 = vector.load %arg5[%c0_114, %c0_115] : memref<432x512xbf16, #tpu.memory_space<vmem>>, vector<432x512xbf16>
    %cst = arith.constant dense<0.000000e+00> : vector<16x512xf32>
    %83 = tpu.matmul %81, %82, %cst {dimension_numbers = #tpu.dot_dimension_numbers<[1], [0], [0], [1], [0, 0, 1, 1], [], []>} : vector<16x432xbf16>, vector<432x512xbf16>, vector<16x512xf32> -> vector<16x512xf32>
    %84 = math.tanh %83 : vector<16x512xf32>
    %c0_116 = arith.constant 0 : index
    %c0_117 = arith.constant 0 : index
    %85 = vector.load %arg3[%c0_116, %c0_117] : memref<1x512xf32, #tpu.memory_space<vmem>>, vector<1x512xf32>
    %86 = vector.broadcast %85 : vector<1x512xf32> to vector<16x512xf32>
    %87 = arith.mulf %84, %86 : vector<16x512xf32>
    %cst_118 = arith.constant dense<0.000000e+00> : vector<16xf32>
    %88 = vector.multi_reduction <add>, %87, %cst_118 [1] : vector<16x512xf32> to vector<16xf32>
    %89 = vector.shape_cast %88 : vector<16xf32> to vector<16x1xf32>
    %cst_119 = arith.constant 5.000000e-03 : f32
    %90 = vector.broadcast %cst_119 : f32 to vector<16x1xf32>
    %91 = arith.mulf %89, %90 : vector<16x1xf32>
    %92 = arith.mulf %87, %87 : vector<16x512xf32>
    %cst_120 = arith.constant dense<0.000000e+00> : vector<16xf32>
    %93 = vector.multi_reduction <add>, %92, %cst_120 [1] : vector<16x512xf32> to vector<16xf32>
    %94 = vector.shape_cast %93 : vector<16xf32> to vector<16x1xf32>
    %cst_121 = arith.constant 5.000000e-03 : f32
    %95 = vector.broadcast %cst_121 : f32 to vector<16x1xf32>
    %96 = arith.mulf %94, %95 : vector<16x1xf32>
    %97 = arith.mulf %91, %91 : vector<16x1xf32>
    %98 = arith.subf %96, %97 : vector<16x1xf32>
    %99 = vector.broadcast %91 : vector<16x1xf32> to vector<16x512xf32>
    %100 = arith.subf %84, %99 : vector<16x512xf32>
    %cst_122 = arith.constant 9.99999974E-6 : f32
    %101 = vector.broadcast %cst_122 : f32 to vector<16x1xf32>
    %102 = arith.addf %98, %101 : vector<16x1xf32>
    %103 = math.rsqrt %102 : vector<16x1xf32>
    %104 = vector.broadcast %103 : vector<16x1xf32> to vector<16x512xf32>
    %105 = arith.mulf %100, %104 : vector<16x512xf32>
    %c0_123 = arith.constant 0 : index
    %c0_124 = arith.constant 0 : index
    %c0_125 = arith.constant 0 : index
    %106 = vector.load %arg4[%c0_123, %c0_124, %c0_125] : memref<1x16x512xf32, #tpu.memory_space<vmem>>, vector<1x16x512xf32>
    %107 = vector.shape_cast %106 : vector<1x16x512xf32> to vector<16x512xf32>
    %108 = vector.shape_cast %105 : vector<16x512xf32> to vector<1x16x512xf32>
    tpu.vector_store %arg4[%c0_123, %c0_124, %c0_125], %108 {strides = array<i32>} : memref<1x16x512xf32, #tpu.memory_space<vmem>>, vector<1x16x512xf32>,
    return
  }
  func.func @transform_0(%arg0: i32) -> (i32, i32, i32, i32) {
    %c0_i32 = arith.constant 0 : i32
    %c0_i32_0 = arith.constant 0 : i32
    %c0_i32_1 = arith.constant 0 : i32
    %c0_i32_2 = arith.constant 0 : i32
    return %arg0, %c0_i32, %c0_i32_0, %c0_i32_1 : i32, i32, i32, i32
  }
  func.func @transform_1(%arg0: i32) -> (i32, i32) {
    %c0_i32 = arith.constant 0 : i32
    %c0_i32_0 = arith.constant 0 : i32
    %c0_i32_1 = arith.constant 0 : i32
    return %c0_i32, %c0_i32_0 : i32, i32
  }
  func.func @transform_2(%arg0: i32) -> (i32, i32) {
    %c0_i32 = arith.constant 0 : i32
    %c0_i32_0 = arith.constant 0 : i32
    %c0_i32_1 = arith.constant 0 : i32
    return %c0_i32, %c0_i32_0 : i32, i32
  }
  func.func @transform_3(%arg0: i32) -> (i32, i32, i32) {
    %c0_i32 = arith.constant 0 : i32
    %c0_i32_0 = arith.constant 0 : i32
    %c0_i32_1 = arith.constant 0 : i32
    return %arg0, %c0_i32, %c0_i32_0 : i32, i32, i32
  }
}

module attributes {stable_mosaic.version = 11 : i64} {
  func.func @_conv_tanh_instnorm_kernel(%arg0: i32, %arg1: memref<1x1x16x384xbf16, #tpu.memory_space<vmem>>, %arg2: memref<16x432xbf16, #tpu.memory_space<vmem>>, %arg3: memref<1x256xf32, #tpu.memory_space<vmem>>, %arg4: memref<1x16x256xf32, #tpu.memory_space<vmem>>, %arg5: memref<432x256xbf16, #tpu.memory_space<vmem>>) attributes {dimension_semantics = [#tpu.dimension_semantics<parallel>], iteration_bounds = array<i64: 2>, scalar_prefetch = 0 : i64, scratch_operands = 1 : i64, tpu.core_type = #tpu.core_type<tc>, window_params = [{transform_indices = @transform_0, window_bounds = array<i64: 1, 1, 16, 384>}, {pipeline_mode = #tpu.pipeline_mode<synchronous>, transform_indices = @transform_1, window_bounds = array<i64: 16, 432>}, {pipeline_mode = #tpu.pipeline_mode<synchronous>, transform_indices = @transform_2, window_bounds = array<i64: 1, 256>}, {transform_indices = @transform_3, window_bounds = array<i64: 1, 16, 256>}]} {
    %c0 = arith.constant 0 : index
    %c0_0 = arith.constant 0 : index
    %c0_1 = arith.constant 0 : index
    %c0_2 = arith.constant 0 : index
    %0 = vector.load %arg1[%c0, %c0_0, %c0_1, %c0_2] : memref<1x1x16x384xbf16, #tpu.memory_space<vmem>>, vector<1x1x16x256xbf16>
    %1 = vector.shape_cast %0 : vector<1x1x16x256xbf16> to vector<16x256xbf16>
    %c0_3 = arith.constant 0 : index
    %c0_4 = arith.constant 0 : index
    %2 = vector.load %arg5[%c0_3, %c0_4] : memref<432x256xbf16, #tpu.memory_space<vmem>>, vector<16x256xbf16>
    tpu.vector_store %arg5[%c0_3, %c0_4], %1 {strides = array<i32>} : memref<432x256xbf16, #tpu.memory_space<vmem>>, vector<16x256xbf16>,
    %c0_5 = arith.constant 0 : index
    %c0_6 = arith.constant 0 : index
    %c0_7 = arith.constant 0 : index
    %c1 = arith.constant 1 : index
    %3 = vector.load %arg1[%c0_5, %c0_6, %c0_7, %c1] : memref<1x1x16x384xbf16, #tpu.memory_space<vmem>>, vector<1x1x16x256xbf16>
    %4 = vector.shape_cast %3 : vector<1x1x16x256xbf16> to vector<16x256xbf16>
    %c16 = arith.constant 16 : index
    %c0_8 = arith.constant 0 : index
    %5 = vector.load %arg5[%c16, %c0_8] : memref<432x256xbf16, #tpu.memory_space<vmem>>, vector<16x256xbf16>
    tpu.vector_store %arg5[%c16, %c0_8], %4 {strides = array<i32>} : memref<432x256xbf16, #tpu.memory_space<vmem>>, vector<16x256xbf16>,
    %c0_9 = arith.constant 0 : index
    %c0_10 = arith.constant 0 : index
    %c0_11 = arith.constant 0 : index
    %c2 = arith.constant 2 : index
    %6 = vector.load %arg1[%c0_9, %c0_10, %c0_11, %c2] : memref<1x1x16x384xbf16, #tpu.memory_space<vmem>>, vector<1x1x16x256xbf16>
    %7 = vector.shape_cast %6 : vector<1x1x16x256xbf16> to vector<16x256xbf16>
    %c32 = arith.constant 32 : index
    %c0_12 = arith.constant 0 : index
    %8 = vector.load %arg5[%c32, %c0_12] : memref<432x256xbf16, #tpu.memory_space<vmem>>, vector<16x256xbf16>
    tpu.vector_store %arg5[%c32, %c0_12], %7 {strides = array<i32>} : memref<432x256xbf16, #tpu.memory_space<vmem>>, vector<16x256xbf16>,
    %c0_13 = arith.constant 0 : index
    %c0_14 = arith.constant 0 : index
    %c0_15 = arith.constant 0 : index
    %c5 = arith.constant 5 : index
    %9 = vector.load %arg1[%c0_13, %c0_14, %c0_15, %c5] : memref<1x1x16x384xbf16, #tpu.memory_space<vmem>>, vector<1x1x16x256xbf16>
    %10 = vector.shape_cast %9 : vector<1x1x16x256xbf16> to vector<16x256xbf16>
    %c48 = arith.constant 48 : index
    %c0_16 = arith.constant 0 : index
    %11 = vector.load %arg5[%c48, %c0_16] : memref<432x256xbf16, #tpu.memory_space<vmem>>, vector<16x256xbf16>
    tpu.vector_store %arg5[%c48, %c0_16], %10 {strides = array<i32>} : memref<432x256xbf16, #tpu.memory_space<vmem>>, vector<16x256xbf16>,
    %c0_17 = arith.constant 0 : index
    %c0_18 = arith.constant 0 : index
    %c0_19 = arith.constant 0 : index
    %c6 = arith.constant 6 : index
    %12 = vector.load %arg1[%c0_17, %c0_18, %c0_19, %c6] : memref<1x1x16x384xbf16, #tpu.memory_space<vmem>>, vector<1x1x16x256xbf16>
    %13 = vector.shape_cast %12 : vector<1x1x16x256xbf16> to vector<16x256xbf16>
    %c64 = arith.constant 64 : index
    %c0_20 = arith.constant 0 : index
    %14 = vector.load %arg5[%c64, %c0_20] : memref<432x256xbf16, #tpu.memory_space<vmem>>, vector<16x256xbf16>
    tpu.vector_store %arg5[%c64, %c0_20], %13 {strides = array<i32>} : memref<432x256xbf16, #tpu.memory_space<vmem>>, vector<16x256xbf16>,
    %c0_21 = arith.constant 0 : index
    %c0_22 = arith.constant 0 : index
    %c0_23 = arith.constant 0 : index
    %c7 = arith.constant 7 : index
    %15 = vector.load %arg1[%c0_21, %c0_22, %c0_23, %c7] : memref<1x1x16x384xbf16, #tpu.memory_space<vmem>>, vector<1x1x16x256xbf16>
    %16 = vector.shape_cast %15 : vector<1x1x16x256xbf16> to vector<16x256xbf16>
    %c80 = arith.constant 80 : index
    %c0_24 = arith.constant 0 : index
    %17 = vector.load %arg5[%c80, %c0_24] : memref<432x256xbf16, #tpu.memory_space<vmem>>, vector<16x256xbf16>
    tpu.vector_store %arg5[%c80, %c0_24], %16 {strides = array<i32>} : memref<432x256xbf16, #tpu.memory_space<vmem>>, vector<16x256xbf16>,
    %c0_25 = arith.constant 0 : index
    %c0_26 = arith.constant 0 : index
    %c0_27 = arith.constant 0 : index
    %c10 = arith.constant 10 : index
    %18 = vector.load %arg1[%c0_25, %c0_26, %c0_27, %c10] : memref<1x1x16x384xbf16, #tpu.memory_space<vmem>>, vector<1x1x16x256xbf16>
    %19 = vector.shape_cast %18 : vector<1x1x16x256xbf16> to vector<16x256xbf16>
    %c96 = arith.constant 96 : index
    %c0_28 = arith.constant 0 : index
    %20 = vector.load %arg5[%c96, %c0_28] : memref<432x256xbf16, #tpu.memory_space<vmem>>, vector<16x256xbf16>
    tpu.vector_store %arg5[%c96, %c0_28], %19 {strides = array<i32>} : memref<432x256xbf16, #tpu.memory_space<vmem>>, vector<16x256xbf16>,
    %c0_29 = arith.constant 0 : index
    %c0_30 = arith.constant 0 : index
    %c0_31 = arith.constant 0 : index
    %c11 = arith.constant 11 : index
    %21 = vector.load %arg1[%c0_29, %c0_30, %c0_31, %c11] : memref<1x1x16x384xbf16, #tpu.memory_space<vmem>>, vector<1x1x16x256xbf16>
    %22 = vector.shape_cast %21 : vector<1x1x16x256xbf16> to vector<16x256xbf16>
    %c112 = arith.constant 112 : index
    %c0_32 = arith.constant 0 : index
    %23 = vector.load %arg5[%c112, %c0_32] : memref<432x256xbf16, #tpu.memory_space<vmem>>, vector<16x256xbf16>
    tpu.vector_store %arg5[%c112, %c0_32], %22 {strides = array<i32>} : memref<432x256xbf16, #tpu.memory_space<vmem>>, vector<16x256xbf16>,
    %c0_33 = arith.constant 0 : index
    %c0_34 = arith.constant 0 : index
    %c0_35 = arith.constant 0 : index
    %c12 = arith.constant 12 : index
    %24 = vector.load %arg1[%c0_33, %c0_34, %c0_35, %c12] : memref<1x1x16x384xbf16, #tpu.memory_space<vmem>>, vector<1x1x16x256xbf16>
    %25 = vector.shape_cast %24 : vector<1x1x16x256xbf16> to vector<16x256xbf16>
    %c128 = arith.constant 128 : index
    %c0_36 = arith.constant 0 : index
    %26 = vector.load %arg5[%c128, %c0_36] : memref<432x256xbf16, #tpu.memory_space<vmem>>, vector<16x256xbf16>
    tpu.vector_store %arg5[%c128, %c0_36], %25 {strides = array<i32>} : memref<432x256xbf16, #tpu.memory_space<vmem>>, vector<16x256xbf16>,
    %c0_37 = arith.constant 0 : index
    %c0_38 = arith.constant 0 : index
    %c0_39 = arith.constant 0 : index
    %c25 = arith.constant 25 : index
    %27 = vector.load %arg1[%c0_37, %c0_38, %c0_39, %c25] : memref<1x1x16x384xbf16, #tpu.memory_space<vmem>>, vector<1x1x16x256xbf16>
    %28 = vector.shape_cast %27 : vector<1x1x16x256xbf16> to vector<16x256xbf16>
    %c144 = arith.constant 144 : index
    %c0_40 = arith.constant 0 : index
    %29 = vector.load %arg5[%c144, %c0_40] : memref<432x256xbf16, #tpu.memory_space<vmem>>, vector<16x256xbf16>
    tpu.vector_store %arg5[%c144, %c0_40], %28 {strides = array<i32>} : memref<432x256xbf16, #tpu.memory_space<vmem>>, vector<16x256xbf16>,
    %c0_41 = arith.constant 0 : index
    %c0_42 = arith.constant 0 : index
    %c0_43 = arith.constant 0 : index
    %c26 = arith.constant 26 : index
    %30 = vector.load %arg1[%c0_41, %c0_42, %c0_43, %c26] : memref<1x1x16x384xbf16, #tpu.memory_space<vmem>>, vector<1x1x16x256xbf16>
    %31 = vector.shape_cast %30 : vector<1x1x16x256xbf16> to vector<16x256xbf16>
    %c160 = arith.constant 160 : index
    %c0_44 = arith.constant 0 : index
    %32 = vector.load %arg5[%c160, %c0_44] : memref<432x256xbf16, #tpu.memory_space<vmem>>, vector<16x256xbf16>
    tpu.vector_store %arg5[%c160, %c0_44], %31 {strides = array<i32>} : memref<432x256xbf16, #tpu.memory_space<vmem>>, vector<16x256xbf16>,
    %c0_45 = arith.constant 0 : index
    %c0_46 = arith.constant 0 : index
    %c0_47 = arith.constant 0 : index
    %c27 = arith.constant 27 : index
    %33 = vector.load %arg1[%c0_45, %c0_46, %c0_47, %c27] : memref<1x1x16x384xbf16, #tpu.memory_space<vmem>>, vector<1x1x16x256xbf16>
    %34 = vector.shape_cast %33 : vector<1x1x16x256xbf16> to vector<16x256xbf16>
    %c176 = arith.constant 176 : index
    %c0_48 = arith.constant 0 : index
    %35 = vector.load %arg5[%c176, %c0_48] : memref<432x256xbf16, #tpu.memory_space<vmem>>, vector<16x256xbf16>
    tpu.vector_store %arg5[%c176, %c0_48], %34 {strides = array<i32>} : memref<432x256xbf16, #tpu.memory_space<vmem>>, vector<16x256xbf16>,
    %c0_49 = arith.constant 0 : index
    %c0_50 = arith.constant 0 : index
    %c0_51 = arith.constant 0 : index
    %c30 = arith.constant 30 : index
    %36 = vector.load %arg1[%c0_49, %c0_50, %c0_51, %c30] : memref<1x1x16x384xbf16, #tpu.memory_space<vmem>>, vector<1x1x16x256xbf16>
    %37 = vector.shape_cast %36 : vector<1x1x16x256xbf16> to vector<16x256xbf16>
    %c192 = arith.constant 192 : index
    %c0_52 = arith.constant 0 : index
    %38 = vector.load %arg5[%c192, %c0_52] : memref<432x256xbf16, #tpu.memory_space<vmem>>, vector<16x256xbf16>
    tpu.vector_store %arg5[%c192, %c0_52], %37 {strides = array<i32>} : memref<432x256xbf16, #tpu.memory_space<vmem>>, vector<16x256xbf16>,
    %c0_53 = arith.constant 0 : index
    %c0_54 = arith.constant 0 : index
    %c0_55 = arith.constant 0 : index
    %c31 = arith.constant 31 : index
    %39 = vector.load %arg1[%c0_53, %c0_54, %c0_55, %c31] : memref<1x1x16x384xbf16, #tpu.memory_space<vmem>>, vector<1x1x16x256xbf16>
    %40 = vector.shape_cast %39 : vector<1x1x16x256xbf16> to vector<16x256xbf16>
    %c208 = arith.constant 208 : index
    %c0_56 = arith.constant 0 : index
    %41 = vector.load %arg5[%c208, %c0_56] : memref<432x256xbf16, #tpu.memory_space<vmem>>, vector<16x256xbf16>
    tpu.vector_store %arg5[%c208, %c0_56], %40 {strides = array<i32>} : memref<432x256xbf16, #tpu.memory_space<vmem>>, vector<16x256xbf16>,
    %c0_57 = arith.constant 0 : index
    %c0_58 = arith.constant 0 : index
    %c0_59 = arith.constant 0 : index
    %c32_60 = arith.constant 32 : index
    %42 = vector.load %arg1[%c0_57, %c0_58, %c0_59, %c32_60] : memref<1x1x16x384xbf16, #tpu.memory_space<vmem>>, vector<1x1x16x256xbf16>
    %43 = vector.shape_cast %42 : vector<1x1x16x256xbf16> to vector<16x256xbf16>
    %c224 = arith.constant 224 : index
    %c0_61 = arith.constant 0 : index
    %44 = vector.load %arg5[%c224, %c0_61] : memref<432x256xbf16, #tpu.memory_space<vmem>>, vector<16x256xbf16>
    tpu.vector_store %arg5[%c224, %c0_61], %43 {strides = array<i32>} : memref<432x256xbf16, #tpu.memory_space<vmem>>, vector<16x256xbf16>,
    %c0_62 = arith.constant 0 : index
    %c0_63 = arith.constant 0 : index
    %c0_64 = arith.constant 0 : index
    %c35 = arith.constant 35 : index
    %45 = vector.load %arg1[%c0_62, %c0_63, %c0_64, %c35] : memref<1x1x16x384xbf16, #tpu.memory_space<vmem>>, vector<1x1x16x256xbf16>
    %46 = vector.shape_cast %45 : vector<1x1x16x256xbf16> to vector<16x256xbf16>
    %c240 = arith.constant 240 : index
    %c0_65 = arith.constant 0 : index
    %47 = vector.load %arg5[%c240, %c0_65] : memref<432x256xbf16, #tpu.memory_space<vmem>>, vector<16x256xbf16>
    tpu.vector_store %arg5[%c240, %c0_65], %46 {strides = array<i32>} : memref<432x256xbf16, #tpu.memory_space<vmem>>, vector<16x256xbf16>,
    %c0_66 = arith.constant 0 : index
    %c0_67 = arith.constant 0 : index
    %c0_68 = arith.constant 0 : index
    %c36 = arith.constant 36 : index
    %48 = vector.load %arg1[%c0_66, %c0_67, %c0_68, %c36] : memref<1x1x16x384xbf16, #tpu.memory_space<vmem>>, vector<1x1x16x256xbf16>
    %49 = vector.shape_cast %48 : vector<1x1x16x256xbf16> to vector<16x256xbf16>
    %c256 = arith.constant 256 : index
    %c0_69 = arith.constant 0 : index
    %50 = vector.load %arg5[%c256, %c0_69] : memref<432x256xbf16, #tpu.memory_space<vmem>>, vector<16x256xbf16>
    tpu.vector_store %arg5[%c256, %c0_69], %49 {strides = array<i32>} : memref<432x256xbf16, #tpu.memory_space<vmem>>, vector<16x256xbf16>,
    %c0_70 = arith.constant 0 : index
    %c0_71 = arith.constant 0 : index
    %c0_72 = arith.constant 0 : index
    %c37 = arith.constant 37 : index
    %51 = vector.load %arg1[%c0_70, %c0_71, %c0_72, %c37] : memref<1x1x16x384xbf16, #tpu.memory_space<vmem>>, vector<1x1x16x256xbf16>
    %52 = vector.shape_cast %51 : vector<1x1x16x256xbf16> to vector<16x256xbf16>
    %c272 = arith.constant 272 : index
    %c0_73 = arith.constant 0 : index
    %53 = vector.load %arg5[%c272, %c0_73] : memref<432x256xbf16, #tpu.memory_space<vmem>>, vector<16x256xbf16>
    tpu.vector_store %arg5[%c272, %c0_73], %52 {strides = array<i32>} : memref<432x256xbf16, #tpu.memory_space<vmem>>, vector<16x256xbf16>,
    %c0_74 = arith.constant 0 : index
    %c0_75 = arith.constant 0 : index
    %c0_76 = arith.constant 0 : index
    %c50 = arith.constant 50 : index
    %54 = vector.load %arg1[%c0_74, %c0_75, %c0_76, %c50] : memref<1x1x16x384xbf16, #tpu.memory_space<vmem>>, vector<1x1x16x256xbf16>
    %55 = vector.shape_cast %54 : vector<1x1x16x256xbf16> to vector<16x256xbf16>
    %c288 = arith.constant 288 : index
    %c0_77 = arith.constant 0 : index
    %56 = vector.load %arg5[%c288, %c0_77] : memref<432x256xbf16, #tpu.memory_space<vmem>>, vector<16x256xbf16>
    tpu.vector_store %arg5[%c288, %c0_77], %55 {strides = array<i32>} : memref<432x256xbf16, #tpu.memory_space<vmem>>, vector<16x256xbf16>,
    %c0_78 = arith.constant 0 : index
    %c0_79 = arith.constant 0 : index
    %c0_80 = arith.constant 0 : index
    %c51 = arith.constant 51 : index
    %57 = vector.load %arg1[%c0_78, %c0_79, %c0_80, %c51] : memref<1x1x16x384xbf16, #tpu.memory_space<vmem>>, vector<1x1x16x256xbf16>
    %58 = vector.shape_cast %57 : vector<1x1x16x256xbf16> to vector<16x256xbf16>
    %c304 = arith.constant 304 : index
    %c0_81 = arith.constant 0 : index
    %59 = vector.load %arg5[%c304, %c0_81] : memref<432x256xbf16, #tpu.memory_space<vmem>>, vector<16x256xbf16>
    tpu.vector_store %arg5[%c304, %c0_81], %58 {strides = array<i32>} : memref<432x256xbf16, #tpu.memory_space<vmem>>, vector<16x256xbf16>,
    %c0_82 = arith.constant 0 : index
    %c0_83 = arith.constant 0 : index
    %c0_84 = arith.constant 0 : index
    %c52 = arith.constant 52 : index
    %60 = vector.load %arg1[%c0_82, %c0_83, %c0_84, %c52] : memref<1x1x16x384xbf16, #tpu.memory_space<vmem>>, vector<1x1x16x256xbf16>
    %61 = vector.shape_cast %60 : vector<1x1x16x256xbf16> to vector<16x256xbf16>
    %c320 = arith.constant 320 : index
    %c0_85 = arith.constant 0 : index
    %62 = vector.load %arg5[%c320, %c0_85] : memref<432x256xbf16, #tpu.memory_space<vmem>>, vector<16x256xbf16>
    tpu.vector_store %arg5[%c320, %c0_85], %61 {strides = array<i32>} : memref<432x256xbf16, #tpu.memory_space<vmem>>, vector<16x256xbf16>,
    %c0_86 = arith.constant 0 : index
    %c0_87 = arith.constant 0 : index
    %c0_88 = arith.constant 0 : index
    %c55 = arith.constant 55 : index
    %63 = vector.load %arg1[%c0_86, %c0_87, %c0_88, %c55] : memref<1x1x16x384xbf16, #tpu.memory_space<vmem>>, vector<1x1x16x256xbf16>
    %64 = vector.shape_cast %63 : vector<1x1x16x256xbf16> to vector<16x256xbf16>
    %c336 = arith.constant 336 : index
    %c0_89 = arith.constant 0 : index
    %65 = vector.load %arg5[%c336, %c0_89] : memref<432x256xbf16, #tpu.memory_space<vmem>>, vector<16x256xbf16>
    tpu.vector_store %arg5[%c336, %c0_89], %64 {strides = array<i32>} : memref<432x256xbf16, #tpu.memory_space<vmem>>, vector<16x256xbf16>,
    %c0_90 = arith.constant 0 : index
    %c0_91 = arith.constant 0 : index
    %c0_92 = arith.constant 0 : index
    %c56 = arith.constant 56 : index
    %66 = vector.load %arg1[%c0_90, %c0_91, %c0_92, %c56] : memref<1x1x16x384xbf16, #tpu.memory_space<vmem>>, vector<1x1x16x256xbf16>
    %67 = vector.shape_cast %66 : vector<1x1x16x256xbf16> to vector<16x256xbf16>
    %c352 = arith.constant 352 : index
    %c0_93 = arith.constant 0 : index
    %68 = vector.load %arg5[%c352, %c0_93] : memref<432x256xbf16, #tpu.memory_space<vmem>>, vector<16x256xbf16>
    tpu.vector_store %arg5[%c352, %c0_93], %67 {strides = array<i32>} : memref<432x256xbf16, #tpu.memory_space<vmem>>, vector<16x256xbf16>,
    %c0_94 = arith.constant 0 : index
    %c0_95 = arith.constant 0 : index
    %c0_96 = arith.constant 0 : index
    %c57 = arith.constant 57 : index
    %69 = vector.load %arg1[%c0_94, %c0_95, %c0_96, %c57] : memref<1x1x16x384xbf16, #tpu.memory_space<vmem>>, vector<1x1x16x256xbf16>
    %70 = vector.shape_cast %69 : vector<1x1x16x256xbf16> to vector<16x256xbf16>
    %c368 = arith.constant 368 : index
    %c0_97 = arith.constant 0 : index
    %71 = vector.load %arg5[%c368, %c0_97] : memref<432x256xbf16, #tpu.memory_space<vmem>>, vector<16x256xbf16>
    tpu.vector_store %arg5[%c368, %c0_97], %70 {strides = array<i32>} : memref<432x256xbf16, #tpu.memory_space<vmem>>, vector<16x256xbf16>,
    %c0_98 = arith.constant 0 : index
    %c0_99 = arith.constant 0 : index
    %c0_100 = arith.constant 0 : index
    %c60 = arith.constant 60 : index
    %72 = vector.load %arg1[%c0_98, %c0_99, %c0_100, %c60] : memref<1x1x16x384xbf16, #tpu.memory_space<vmem>>, vector<1x1x16x256xbf16>
    %73 = vector.shape_cast %72 : vector<1x1x16x256xbf16> to vector<16x256xbf16>
    %c384 = arith.constant 384 : index
    %c0_101 = arith.constant 0 : index
    %74 = vector.load %arg5[%c384, %c0_101] : memref<432x256xbf16, #tpu.memory_space<vmem>>, vector<16x256xbf16>
    tpu.vector_store %arg5[%c384, %c0_101], %73 {strides = array<i32>} : memref<432x256xbf16, #tpu.memory_space<vmem>>, vector<16x256xbf16>,
    %c0_102 = arith.constant 0 : index
    %c0_103 = arith.constant 0 : index
    %c0_104 = arith.constant 0 : index
    %c61 = arith.constant 61 : index
    %75 = vector.load %arg1[%c0_102, %c0_103, %c0_104, %c61] : memref<1x1x16x384xbf16, #tpu.memory_space<vmem>>, vector<1x1x16x256xbf16>
    %76 = vector.shape_cast %75 : vector<1x1x16x256xbf16> to vector<16x256xbf16>
    %c400 = arith.constant 400 : index
    %c0_105 = arith.constant 0 : index
    %77 = vector.load %arg5[%c400, %c0_105] : memref<432x256xbf16, #tpu.memory_space<vmem>>, vector<16x256xbf16>
    tpu.vector_store %arg5[%c400, %c0_105], %76 {strides = array<i32>} : memref<432x256xbf16, #tpu.memory_space<vmem>>, vector<16x256xbf16>,
    %c0_106 = arith.constant 0 : index
    %c0_107 = arith.constant 0 : index
    %c0_108 = arith.constant 0 : index
    %c62 = arith.constant 62 : index
    %78 = vector.load %arg1[%c0_106, %c0_107, %c0_108, %c62] : memref<1x1x16x384xbf16, #tpu.memory_space<vmem>>, vector<1x1x16x256xbf16>
    %79 = vector.shape_cast %78 : vector<1x1x16x256xbf16> to vector<16x256xbf16>
    %c416 = arith.constant 416 : index
    %c0_109 = arith.constant 0 : index
    %80 = vector.load %arg5[%c416, %c0_109] : memref<432x256xbf16, #tpu.memory_space<vmem>>, vector<16x256xbf16>
    tpu.vector_store %arg5[%c416, %c0_109], %79 {strides = array<i32>} : memref<432x256xbf16, #tpu.memory_space<vmem>>, vector<16x256xbf16>,
    %c0_110 = arith.constant 0 : index
    %c0_111 = arith.constant 0 : index
    %81 = vector.load %arg2[%c0_110, %c0_111] : memref<16x432xbf16, #tpu.memory_space<vmem>>, vector<16x432xbf16>
    %c0_112 = arith.constant 0 : index
    %c0_113 = arith.constant 0 : index
    %82 = vector.load %arg5[%c0_112, %c0_113] : memref<432x256xbf16, #tpu.memory_space<vmem>>, vector<432x256xbf16>
    %cst = arith.constant dense<0.000000e+00> : vector<16x256xf32>
    %83 = tpu.matmul %81, %82, %cst {dimension_numbers = #tpu.dot_dimension_numbers<[1], [0], [0], [1], [0, 0, 1, 1], [], []>} : vector<16x432xbf16>, vector<432x256xbf16>, vector<16x256xf32> -> vector<16x256xf32>
    %84 = math.tanh %83 : vector<16x256xf32>
    %c0_114 = arith.constant 0 : index
    %c0_115 = arith.constant 0 : index
    %85 = vector.load %arg3[%c0_114, %c0_115] : memref<1x256xf32, #tpu.memory_space<vmem>>, vector<1x256xf32>
    %86 = vector.broadcast %85 : vector<1x256xf32> to vector<16x256xf32>
    %87 = arith.mulf %84, %86 : vector<16x256xf32>
    %cst_116 = arith.constant dense<0.000000e+00> : vector<16xf32>
    %88 = vector.multi_reduction <add>, %87, %cst_116 [1] : vector<16x256xf32> to vector<16xf32>
    %89 = vector.shape_cast %88 : vector<16xf32> to vector<16x1xf32>
    %cst_117 = arith.constant 0.013888889 : f32
    %90 = vector.broadcast %cst_117 : f32 to vector<16x1xf32>
    %91 = arith.mulf %89, %90 : vector<16x1xf32>
    %92 = arith.mulf %87, %87 : vector<16x256xf32>
    %cst_118 = arith.constant dense<0.000000e+00> : vector<16xf32>
    %93 = vector.multi_reduction <add>, %92, %cst_118 [1] : vector<16x256xf32> to vector<16xf32>
    %94 = vector.shape_cast %93 : vector<16xf32> to vector<16x1xf32>
    %cst_119 = arith.constant 0.013888889 : f32
    %95 = vector.broadcast %cst_119 : f32 to vector<16x1xf32>
    %96 = arith.mulf %94, %95 : vector<16x1xf32>
    %97 = arith.mulf %91, %91 : vector<16x1xf32>
    %98 = arith.subf %96, %97 : vector<16x1xf32>
    %99 = vector.broadcast %91 : vector<16x1xf32> to vector<16x256xf32>
    %100 = arith.subf %84, %99 : vector<16x256xf32>
    %cst_120 = arith.constant 9.99999974E-6 : f32
    %101 = vector.broadcast %cst_120 : f32 to vector<16x1xf32>
    %102 = arith.addf %98, %101 : vector<16x1xf32>
    %103 = math.rsqrt %102 : vector<16x1xf32>
    %104 = vector.broadcast %103 : vector<16x1xf32> to vector<16x256xf32>
    %105 = arith.mulf %100, %104 : vector<16x256xf32>
    %c0_121 = arith.constant 0 : index
    %c0_122 = arith.constant 0 : index
    %c0_123 = arith.constant 0 : index
    %106 = vector.load %arg4[%c0_121, %c0_122, %c0_123] : memref<1x16x256xf32, #tpu.memory_space<vmem>>, vector<1x16x256xf32>
    %107 = vector.shape_cast %106 : vector<1x16x256xf32> to vector<16x256xf32>
    %108 = vector.shape_cast %105 : vector<16x256xf32> to vector<1x16x256xf32>
    tpu.vector_store %arg4[%c0_121, %c0_122, %c0_123], %108 {strides = array<i32>} : memref<1x16x256xf32, #tpu.memory_space<vmem>>, vector<1x16x256xf32>,
    return
  }
  func.func @transform_0(%arg0: i32) -> (i32, i32, i32, i32) {
    %c0_i32 = arith.constant 0 : i32
    %c0_i32_0 = arith.constant 0 : i32
    %c0_i32_1 = arith.constant 0 : i32
    %c0_i32_2 = arith.constant 0 : i32
    return %arg0, %c0_i32, %c0_i32_0, %c0_i32_1 : i32, i32, i32, i32
  }
  func.func @transform_1(%arg0: i32) -> (i32, i32) {
    %c0_i32 = arith.constant 0 : i32
    %c0_i32_0 = arith.constant 0 : i32
    %c0_i32_1 = arith.constant 0 : i32
    return %c0_i32, %c0_i32_0 : i32, i32
  }
  func.func @transform_2(%arg0: i32) -> (i32, i32) {
    %c0_i32 = arith.constant 0 : i32
    %c0_i32_0 = arith.constant 0 : i32
    %c0_i32_1 = arith.constant 0 : i32
    return %c0_i32, %c0_i32_0 : i32, i32
  }
  func.func @transform_3(%arg0: i32) -> (i32, i32, i32) {
    %c0_i32 = arith.constant 0 : i32
    %c0_i32_0 = arith.constant 0 : i32
    %c0_i32_1 = arith.constant 0 : i32
    return %arg0, %c0_i32, %c0_i32_0 : i32, i32, i32
  }
}

</mosaic_0001>

<bundles_post_ra>
// kernel: thermal_bvp_feature_extractor.3
= control target key start
LH: loop header
LB: loop body
LE: loop exit
PB: predicated region body
PF: predicated region fallthrough
CT: control target
= control target key end

     0   :  { %s2107_s12 = smov 0   ;;  %s2502_s0 = inlined_call_operand.vmem [shape: bf16[2,4,16,768], index: 0, kind: input, shape index: {}]   ;;  %s2503_s1 = inlined_call_operand.vmem [shape: bf16[8,432], index: 1, kind: input, shape index: {}]   ;;  %s2504_s2 = inlined_call_operand.vmem [shape: f32[1,512], index: 2, kind: input, shape index: {}]   ;;  %s2505_s3 = inlined_call_operand.vmem [shape: f32[2,8,512], index: 3, kind: output, shape index: {}]  }
   0x1 LB: > { %s1745_s13 = sadd.s32 4294967295, %s2078_s12   ;;  %p1749_p0 = scmp.ge.s32.totalorder %s2078_s12, 1  ;;  %s2078_s12 = sphi %s2107_s12, %s13_s12  }
   0x2   : > { %p137_p1 = scmp.lt.s32.totalorder %s2078_s12, 3 }
   0x4   : > { %p138_p2 = pnand %p1749_p0, %p137_p1 }
   0x5   : > { %p161_p3 = scmp.lt.s32.totalorder (!%p138_p2), %s1745_s13, 1  ;;  %s2080_s18 = smov (!%p138_p2), 127   ;;  %v2275_v27 = vld [vmem:[%s2503_s1] sm:$0xff] (!%p138_p2)  ;;  %vm266_vm0 = vcmask (!%p138_p2), 1039360   ;;  %vm423_vm1 = vcmask (!%p138_p2), 982016   ;;  %vm522_vm2 = vcmask (!%p138_p2), 973824  }
   0x6   : > { %141 = sbr.rel (%p138_p2) target bundleno = 720 (0x2d0), region = 32  ;;  %s2081_s19 = smov (!%p138_p2), 120   ;;  %v1959_v28 = vcombine.high (!%p138_p2), %v2275_v27, %v2275_v27  ;;  %vm572_vm3 = vcmask (!%p138_p2), 523264   ;;  %vm671_vm4 = vcmask (!%p138_p2), 515072   ;;  %vm868_vm5 = vcmask (!%p138_p2), 457728  }
   0x7   : > { %s2082_s20 = smov (!%p138_p2), 119   ;;  %s2083_s21 = smov (!%p138_p2), 64   ;;  %vm1460_vm6 = vcmask (!%p138_p2), 392192   ;;  %vm967_vm7 = vcmask (!%p138_p2), 449536  }
   0x8   : > { %s2084_s22 = smov (!%p138_p2), 63   ;;  %s2085_s23 = smov (!%p138_p2), 56   ;;  %1496 = vmatprep.mubr.bf16.mxu0 (!%p138_p2), %v1959_v28  ;;  %1578 = vmatprep.mubr.bf16.mxu1 (!%p138_p2), %v1959_v28 }
   0x9   : > { %s2086_s26 = smov (!%p138_p2), 55  }
   0xd   : > { %s2507_s13 = smov (!%p161_p3, %s1745_s13), 1 }
   0xe   : > { %s1975_s14 = smul.u32 192, %s2507_s13  ;;  %s1966_s4 = sshll.u32 %s2507_s13, 5 }
   0xf   : > { %s170_s7 = scalar_lea.vmem %s2505_s3, %s1966_s4 }
  0x10   : > { %s2121_s17 = scalar_lea.vmem %s2502_s0, %s1975_s14 }
  0x11   : > { %v2124_v0 = vld [vmem:[%s2121_s17 + $0x4] ss:$24 sps:$4 sm:$0xff]   ;;  %v2127_v1 = vld [vmem:[%s2121_s17] ss:$24 sps:$4 sm:$0xff]   ;;  %v1997_v4 = vld [vmem:[%s2121_s17 + $0x10] ss:$24 sps:$4 sm:$0xff]  }
  0x12   : > { %258 = vrot.lane.b32.xlu0 %v2124_v0, %s2080_s18  ;;  %v2132_v2 = vld [vmem:[%s2121_s17 + $0x8] ss:$24 sps:$4 sm:$0xff]   ;;  %v2135_v3 = vld [vmem:[%s2121_s17 + $0xc] ss:$24 sps:$4 sm:$0xff]   ;;  %1464 = vmatprep.subr.bf16.mxu0 %v2124_v0  ;;  %v2165_v10 = vld [vmem:[%s2121_s17 + $0x3c] ss:$24 sps:$4 sm:$0xff]  }
  0x13   : > { %256 = vrot.lane.b32.xlu1 %v2127_v1, %s2080_s18  ;;  %1465 = vmatpush1.bf16.msra.mxu0 %v2127_v1  ;;  %v2149_v5 = vld [vmem:[%s2121_s17 + $0x64] ss:$24 sps:$4 sm:$0xff]   ;;  %v2152_v6 = vld [vmem:[%s2121_s17 + $0x68] ss:$24 sps:$4 sm:$0xff]   ;;  %v2155_v7 = vld [vmem:[%s2121_s17 + $0x34] ss:$24 sps:$4 sm:$0xff]  }
  0x14   : > { %1546 = vmatprep.subr.bf16.mxu1 %v2135_v3  ;;  %v2159_v8 = vld [vmem:[%s2121_s17 + $0x60] ss:$24 sps:$4 sm:$0xff]   ;;  %v2162_v9 = vld [vmem:[%s2121_s17 + $0x30] ss:$24 sps:$4 sm:$0xff]   ;;  %1466 = vmatprep.subr.bf16.mxu0 %v2155_v7  ;;  %v2179_v12 = vld [vmem:[%s2121_s17 + $0x6c] ss:$24 sps:$4 sm:$0xff]  }
  0x15   : > { %1547 = vmatpush1.bf16.msra.mxu1 %v2132_v2  ;;  %v2170_v11 = vld [vmem:[%s2121_s17 + $0x38] ss:$24 sps:$4 sm:$0xff]   ;;  %v2018_v21 = vld [vmem:[%s2121_s17 + $0x94] ss:$24 sps:$4 sm:$0xff]   ;;  %v2316_v52 = vld [vmem:[%s2121_s17 + $0x8] ss:$24 sps:$4 sm:$0xff]  }
  0x16   : > { %260 = vrot.lane.b32.xlu0 %v2132_v2, %s2080_s18  ;;  %1548 = vmatprep.subr.bf16.mxu1 %v2165_v10  ;;  %v2004_v13 = vld [vmem:[%s2121_s17 + $0x70] ss:$24 sps:$4 sm:$0xff]   ;;  %v2012_v15 = vld [vmem:[%s2121_s17 + $0x40] ss:$24 sps:$4 sm:$0xff]   ;;  %v2023_v24 = vld [vmem:[%s2121_s17 + $0x9c] ss:$24 sps:$4 sm:$0xff]  }
  0x17   : > { %262 = vrot.lane.b32.xlu1 %v2135_v3, %s2080_s18  ;;  %1467 = vmatpush1.bf16.msra.mxu0 %v2162_v9  ;;  %v2005_v14 = vld [vmem:[%s2121_s17 + $0x10] ss:$24 sps:$4 sm:$0xff]   ;;  %v2015_v18 = vld [vmem:[%s2121_s17 + $0x40] ss:$24 sps:$4 sm:$0xff]   ;;  %v2320_v54 = vld [vmem:[%s2121_s17 + $0xc] ss:$24 sps:$4 sm:$0xff]  }
  0x18   : > { %v2013_v16 = vld [vmem:[%s2121_s17 + $0x10] ss:$24 sps:$4 sm:$0xff]   ;;  %v2024_v25 = vld [vmem:[%s2121_s17 + $0xa0] ss:$24 sps:$4 sm:$0xff]   ;;  %v2326_v58 = vld [vmem:[%s2121_s17 + $0x4] ss:$24 sps:$4 sm:$0xff]  }
  0x19   : > { %1549 = vmatpush1.bf16.msra.mxu1 %v2170_v11  ;;  %v2014_v17 = vld [vmem:[%s2121_s17 + $0x10] ss:$24 sps:$4 sm:$0xff]   ;;  %v2027_v39 = vld [vmem:[%s2121_s17 + $0x40] ss:$24 sps:$4 sm:$0xff]  }
  0x1a   : > { %264 = vrot.lane.b32.xlu0 %v1997_v4, %s2080_s18  ;;  %v2016_v19 = vld [vmem:[%s2121_s17 + $0x10] ss:$24 sps:$4 sm:$0xff]  }
  0x1b   : > { %366 = vrot.lane.b32.xlu1 %v2149_v5, %s2080_s18  ;;  %v2017_v20 = vld [vmem:[%s2121_s17 + $0x70] ss:$24 sps:$4 sm:$0xff]  }
  0x1c   : > { %v2254_v22 = vld [vmem:[%s2121_s17 + $0x98] ss:$24 sps:$4 sm:$0xff]  }
  0x1d   : > { %v2022_v23 = vld [vmem:[%s2121_s17 + $0x90] ss:$24 sps:$4 sm:$0xff]  }
  0x1e   : > { %368 = vrot.lane.b32.xlu0 %v2152_v6, %s2080_s18  ;;  %v2025_v26 = vld [vmem:[%s2121_s17 + $0x70] ss:$24 sps:$4 sm:$0xff]  }
  0x1f   : > { %364 = vrot.lane.b32.xlu1 %v2159_v8, %s2080_s18  ;;  %v2026_v29 = vld [vmem:[%s2121_s17 + $0x10] ss:$24 sps:$4 sm:$0xff]  }
  0x20   : > { %v2028_v47 = vld [vmem:[%s2121_s17 + $0x10] ss:$24 sps:$4 sm:$0xff]  }
  0x21   : > { %v2331_v59 = vld [vmem:[%s2121_s17 + $0x10] ss:$24 sps:$4 sm:$0xff]  }
  0x22   : > { %370 = vrot.lane.b32.xlu0 %v2179_v12, %s2080_s18 }
  0x23   : > { %372 = vrot.lane.b32.xlu1 %v2004_v13, %s2080_s18  ;;  %v2042_v13 = vld [vmem:[%s2121_s17 + $0x74] ss:$24 sps:$4 sm:$0xff]  }
  0x26   : > { %415 = vrot.lane.b32.xlu0 %v2124_v0, %s2081_s19 }
  0x27   : > { %417 = vrot.lane.b32.xlu1 %v2132_v2, %s2081_s19 }
  0x2a   : > { %413 = vrot.lane.b32.xlu0 %v2127_v1, %s2081_s19 }
  0x2b   : > { %419 = vrot.lane.b32.xlu1 %v2135_v3, %s2081_s19 }
  0x2e   : > { %421 = vrot.lane.b32.xlu0 %v2005_v14, %s2081_s19 }
  0x2f   : > { %465 = vrot.lane.b32.xlu1 %v2155_v7, %s2081_s19 }
  0x32   : > { %467 = vrot.lane.b32.xlu0 %v2170_v11, %s2081_s19 }
  0x33   : > { %463 = vrot.lane.b32.xlu1 %v2162_v9, %s2081_s19 }
  0x36   : > { %469 = vrot.lane.b32.xlu0 %v2165_v10, %s2081_s19 }
  0x37   : > { %471 = vrot.lane.b32.xlu1 %v2012_v15, %s2081_s19 }
  0x3a   : > { %514 = vrot.lane.b32.xlu0 %v2124_v0, %s2082_s20 }
  0x3b   : > { %516 = vrot.lane.b32.xlu1 %v2132_v2, %s2082_s20 }
  0x3e   : > { %512 = vrot.lane.b32.xlu0 %v2127_v1, %s2082_s20 }
  0x3f   : > { %518 = vrot.lane.b32.xlu1 %v2135_v3, %s2082_s20 }
  0x42   : > { %520 = vrot.lane.b32.xlu0 %v2013_v16, %s2082_s20 }
  0x43   : > { %564 = vrot.lane.b32.xlu1 %v2124_v0, %s2083_s21 }
  0x46   : > { %566 = vrot.lane.b32.xlu0 %v2132_v2, %s2083_s21 }
  0x47   : > { %562 = vrot.lane.b32.xlu1 %v2127_v1, %s2083_s21 }
  0x4a   : > { %568 = vrot.lane.b32.xlu0 %v2135_v3, %s2083_s21 }
  0x4b   : > { %570 = vrot.lane.b32.xlu1 %v2014_v17, %s2083_s21 }
  0x4e   : > { %614 = vrot.lane.b32.xlu0 %v2155_v7, %s2083_s21 }
  0x4f   : > { %616 = vrot.lane.b32.xlu1 %v2170_v11, %s2083_s21 }
  0x52   : > { %612 = vrot.lane.b32.xlu0 %v2162_v9, %s2083_s21 }
  0x53   : > { %618 = vrot.lane.b32.xlu1 %v2165_v10, %s2083_s21 }
  0x56   : > { %620 = vrot.lane.b32.xlu0 %v2015_v18, %s2083_s21 }
  0x57   : > { %663 = vrot.lane.b32.xlu1 %v2124_v0, %s2084_s22 }
  0x5a   : > { %665 = vrot.lane.b32.xlu0 %v2132_v2, %s2084_s22 }
  0x5b   : > { %661 = vrot.lane.b32.xlu1 %v2127_v1, %s2084_s22 }
  0x5e   : > { %667 = vrot.lane.b32.xlu0 %v2135_v3, %s2084_s22 }
  0x5f   : > { %669 = vrot.lane.b32.xlu1 %v2016_v19, %s2084_s22 }
  0x62   : > { %713 = vrot.lane.b32.xlu0 %v2149_v5, %s2083_s21 }
  0x63   : > { %715 = vrot.lane.b32.xlu1 %v2152_v6, %s2083_s21 }
  0x66   : > { %711 = vrot.lane.b32.xlu0 %v2159_v8, %s2083_s21 }
  0x67   : > { %717 = vrot.lane.b32.xlu1 %v2179_v12, %s2083_s21 }
  0x6a   : > { %719 = vrot.lane.b32.xlu0 %v2017_v20, %s2083_s21 }
  0x6b   : > { %762 = vrot.lane.b32.xlu1 %v2018_v21, %s2083_s21 }
  0x6e   : > { %764 = vrot.lane.b32.xlu0 %v2254_v22, %s2083_s21 }
  0x6f   : > { %760 = vrot.lane.b32.xlu1 %v2022_v23, %s2083_s21 }
  0x72   : > { %766 = vrot.lane.b32.xlu0 %v2023_v24, %s2083_s21 }
  0x73   : > { %768 = vrot.lane.b32.xlu1 %v2024_v25, %s2083_s21  ;;  %v2381_v25 = vld [vmem:[%s2121_s17 + $0x38] ss:$24 sps:$4 sm:$0xff]  }
  0x76   : > { %811 = vrot.lane.b32.xlu0 %v2149_v5, %s2084_s22 }
  0x77   : > { %813 = vrot.lane.b32.xlu1 %v2152_v6, %s2084_s22 }
  0x7a   : > { %809 = vrot.lane.b32.xlu0 %v2159_v8, %s2084_s22 }
  0x7b   : > { %815 = vrot.lane.b32.xlu1 %v2179_v12, %s2084_s22 }
  0x7e   : > { %817 = vrot.lane.b32.xlu0 %v2025_v26, %s2084_s22 }
  0x7f   : > { %860 = vrot.lane.b32.xlu1 %v2124_v0, %s2085_s23 }
  0x82   : > { %862 = vrot.lane.b32.xlu0 %v2132_v2, %s2085_s23 }
  0x83   : > { %858 = vrot.lane.b32.xlu1 %v2127_v1, %s2085_s23 }
  0x84   : > { %v259_v30 = vpop.permute.xlu0 %258 }
  0x85   : > { %v257_v31 = vpop.permute.xlu1 %256 }
  0x86   : > { %864 = vrot.lane.b32.xlu0 %v2135_v3, %s2085_s23  ;;  %v267_v35 = vsel %vm266_vm0, %v257_v31, %v259_v30  ;;  %v2387_v31 = vld [vmem:[%s2121_s17 + $0x3c] ss:$24 sps:$4 sm:$0xff]  }
  0x87   : > { %866 = vrot.lane.b32.xlu1 %v2026_v29, %s2085_s23 }
  0x88   : > { %v261_v32 = vpop.permute.xlu0 %260 }
  0x89   : > { %v263_v33 = vpop.permute.xlu1 %262  ;;  %v268_v34 = vsel %vm266_vm0, %v259_v30, %v261_v32 }
  0x8a   : > { %910 = vrot.lane.b32.xlu0 %v2155_v7, %s2085_s23  ;;  %1468 = vmatprep.subr.bf16.mxu0 %v268_v34  ;;  %v269_v40 = vsel %vm266_vm0, %v261_v32, %v263_v33  ;;  %v2352_v7 = vld [vmem:[%s2121_s17 + $0x64] ss:$24 sps:$4 sm:$0xff]   ;;  %v2392_v32 = vld [vmem:[%s2121_s17 + $0x34] ss:$24 sps:$4 sm:$0xff]  }
  0x8b   : > { %912 = vrot.lane.b32.xlu1 %v2170_v11, %s2085_s23  ;;  %1469 = vmatpush1.bf16.msra.mxu0 %v267_v35 }
  0x8c   : > { %v265_v36 = vpop.permute.xlu0 %264  ;;  %1470 = vmatprep.subr.bf16.mxu0 %v2149_v5 }
  0x8d   : > { %v367_v37 = vpop.permute.xlu1 %366  ;;  %v270_v38 = vsel %vm266_vm0, %v263_v33, %v265_v36 }
  0x8e   : > { %908 = vrot.lane.b32.xlu0 %v2162_v9, %s2085_s23  ;;  %1550 = vmatprep.subr.bf16.mxu1 %v270_v38  ;;  %v2050_v38 = vld [vmem:[%s2121_s17 + $0x44] ss:$24 sps:$4 sm:$0xff]  }
  0x8f   : > { %914 = vrot.lane.b32.xlu1 %v2165_v10, %s2085_s23  ;;  %1471 = vmatpush1.bf16.msra.mxu0 %v2159_v8 }
  0x90   : > { %1551 = vmatpush1.bf16.msra.mxu1 %v269_v40  ;;  %v369_v41 = vpop.permute.xlu0 %368  ;;  %1472 = vmatprep.subr.bf16.mxu0 %v2018_v21 }
  0x91   : > { %v365_v42 = vpop.permute.xlu1 %364  ;;  %1552 = vmatprep.subr.bf16.mxu1 %v2179_v12  ;;  %v375_v43 = vsel %vm266_vm0, %v367_v37, %v369_v41  ;;  %v2359_v12 = vld [vmem:[%s2121_s17 + $0x70] ss:$24 sps:$4 sm:$0xff]  }
  0x92   : > { %916 = vrot.lane.b32.xlu0 %v2027_v39, %s2085_s23  ;;  %v374_v46 = vsel %vm266_vm0, %v365_v42, %v367_v37  ;;  %v2399_v37 = vld [vmem:[%s2121_s17 + $0x40] ss:$24 sps:$4 sm:$0xff]  }
  0x93   : > { %959 = vrot.lane.b32.xlu1 %v2124_v0, %s2086_s26  ;;  %1473 = vmatpush1.bf16.msra.mxu0 %v2022_v23  ;;  %v2035_v0 = vld [vmem:[%s2121_s17 + $0x14] ss:$24 sps:$4 sm:$0xff]  }
  0x94   : > { %1553 = vmatpush1.bf16.msra.mxu1 %v2152_v6  ;;  %v371_v44 = vpop.permute.xlu0 %370  ;;  %1474 = vmatprep.subr.bf16.mxu0 %v375_v43  ;;  %v2347_v6 = vld [vmem:[%s2121_s17 + $0x6c] ss:$24 sps:$4 sm:$0xff]  }
  0x95   : > { %v373_v45 = vpop.permute.xlu1 %372  ;;  %1554 = vmatprep.subr.bf16.mxu1 %v2023_v24  ;;  %v376_v53 = vsel %vm266_vm0, %v369_v41, %v371_v44  ;;  %v2043_v24 = vld [vmem:[%s2121_s17 + $0x14] ss:$24 sps:$4 sm:$0xff]  }
  0x96   : > { %961 = vrot.lane.b32.xlu0 %v2132_v2, %s2086_s26  ;;  %v377_v49 = vsel %vm266_vm0, %v371_v44, %v373_v45 }
  0x97   : > { %957 = vrot.lane.b32.xlu1 %v2127_v1, %s2086_s26  ;;  %1475 = vmatpush1.bf16.msra.mxu0 %v374_v46  ;;  %v2341_v1 = vld [vmem:[%s2121_s17 + $0x68] ss:$24 sps:$4 sm:$0xff]  }
  0x98   : > { %1555 = vmatpush1.bf16.msra.mxu1 %v2254_v22  ;;  %v416_v48 = vpop.permute.xlu0 %415 }
  0x99   : > { %v418_v50 = vpop.permute.xlu1 %417  ;;  %1556 = vmatprep.subr.bf16.mxu1 %v377_v49  ;;  %v2051_v49 = vld [vmem:[%s2121_s17 + $0x14] ss:$24 sps:$4 sm:$0xff]  }
  0x9a   : > { %963 = vrot.lane.b32.xlu0 %v2135_v3, %s2086_s26  ;;  %v425_v51 = vsel %vm423_vm1, %v416_v48, %v418_v50 }
  0x9b   : > { %965 = vrot.lane.b32.xlu1 %v2028_v47, %s2086_s26  ;;  %1476 = vmatprep.subr.bf16.mxu0 %v425_v51 }
  0x9c   : > { %1557 = vmatpush1.bf16.msra.mxu1 %v376_v53  ;;  %v414_v55 = vpop.permute.xlu0 %413 }
  0x9d   : > { %v420_v56 = vpop.permute.xlu1 %419  ;;  %v424_v57 = vsel %vm423_vm1, %v414_v55, %v416_v48 }
  0x9e   : > { %1065 = vrot.lane.b32.xlu0 %v2316_v52, %s2080_s18  ;;  %1477 = vmatpush1.bf16.msra.mxu0 %v424_v57  ;;  %v426_v63 = vsel %vm423_vm1, %v418_v50, %v420_v56 }
  0x9f   : > { %1067 = vrot.lane.b32.xlu1 %v2320_v54, %s2080_s18 }
  0xa0   : > { %v422_v60 = vpop.permute.xlu0 %421 }
  0xa1   : > { %v466_v61 = vpop.permute.xlu1 %465  ;;  %v427_v62 = vsel %vm423_vm1, %v420_v56, %v422_v60 }
  0xa2   : > { %1063 = vrot.lane.b32.xlu0 %v2326_v58, %s2080_s18  ;;  %1558 = vmatprep.subr.bf16.mxu1 %v427_v62 }
  0xa3   : > { %1069 = vrot.lane.b32.xlu1 %v2331_v59, %s2080_s18  ;;  %1559 = vmatpush1.bf16.msra.mxu1 %v426_v63 }
  0xa4   : > { %v468_v2 = vpop.permute.xlu0 %467 }
  0xa5   : > { %v464_v3 = vpop.permute.xlu1 %463  ;;  %v474_v4 = vsel %vm423_vm1, %v466_v61, %v468_v2 }
  0xa6   : > { %1071 = vrot.lane.b32.xlu0 %v2035_v0, %s2080_s18  ;;  %1478 = vmatprep.subr.bf16.mxu0 %v474_v4  ;;  %v473_v5 = vsel %vm423_vm1, %v464_v3, %v466_v61 }
  0xa7   : > { %1170 = vrot.lane.b32.xlu1 %v2341_v1, %s2080_s18  ;;  %1479 = vmatpush1.bf16.msra.mxu0 %v473_v5 }
  0xa8   : > { %v470_v8 = vpop.permute.xlu0 %469 }
  0xa9   : > { %v472_v9 = vpop.permute.xlu1 %471  ;;  %v475_v10 = vsel %vm423_vm1, %v468_v2, %v470_v8 }
  0xaa   : > { %1172 = vrot.lane.b32.xlu0 %v2347_v6, %s2080_s18  ;;  %v476_v11 = vsel %vm423_vm1, %v470_v8, %v472_v9 }
  0xab   : > { %1168 = vrot.lane.b32.xlu1 %v2352_v7, %s2080_s18  ;;  %1560 = vmatprep.subr.bf16.mxu1 %v476_v11 }
  0xac   : > { %1561 = vmatpush1.bf16.msra.mxu1 %v475_v10  ;;  %v515_v14 = vpop.permute.xlu0 %514 }
  0xad   : > { %v517_v15 = vpop.permute.xlu1 %516 }
  0xae   : > { %1174 = vrot.lane.b32.xlu0 %v2359_v12, %s2080_s18  ;;  %v524_v16 = vsel %vm522_vm2, %v515_v14, %v517_v15 }
  0xaf   : > { %1176 = vrot.lane.b32.xlu1 %v2042_v13, %s2080_s18  ;;  %1480 = vmatprep.subr.bf16.mxu0 %v524_v16 }
  0xb0   : > { %v513_v17 = vpop.permute.xlu0 %512 }
  0xb1   : > { %v519_v18 = vpop.permute.xlu1 %518  ;;  %v523_v19 = vsel %vm522_vm2, %v513_v17, %v515_v14 }
  0xb2   : > { %1219 = vrot.lane.b32.xlu0 %v2316_v52, %s2081_s19  ;;  %1481 = vmatpush1.bf16.msra.mxu0 %v523_v19  ;;  %v525_v23 = vsel %vm522_vm2, %v517_v15, %v519_v18 }
  0xb3   : > { %1221 = vrot.lane.b32.xlu1 %v2320_v54, %s2081_s19 }
  0xb4   : > { %v521_v20 = vpop.permute.xlu0 %520 }
  0xb5   : > { %v565_v21 = vpop.permute.xlu1 %564  ;;  %v526_v22 = vsel %vm522_vm2, %v519_v18, %v521_v20 }
  0xb6   : > { %1217 = vrot.lane.b32.xlu0 %v2326_v58, %s2081_s19  ;;  %1562 = vmatprep.subr.bf16.mxu1 %v526_v22 }
  0xb7   : > { %1223 = vrot.lane.b32.xlu1 %v2331_v59, %s2081_s19  ;;  %1563 = vmatpush1.bf16.msra.mxu1 %v525_v23 }
  0xb8   : > { %v567_v26 = vpop.permute.xlu0 %566 }
  0xb9   : > { %v563_v28 = vpop.permute.xlu1 %562  ;;  %v574_v29 = vsel %vm572_vm3, %v565_v21, %v567_v26 }
  0xba   : > { %1225 = vrot.lane.b32.xlu0 %v2043_v24, %s2081_s19  ;;  %1482 = vmatprep.subr.bf16.mxu0 %v574_v29  ;;  %v573_v30 = vsel %vm572_vm3, %v563_v28, %v565_v21 }
  0xbb   : > { %1268 = vrot.lane.b32.xlu1 %v2381_v25, %s2081_s19  ;;  %1483 = vmatpush1.bf16.msra.mxu0 %v573_v30 }
  0xbc   : > { %v569_v33 = vpop.permute.xlu0 %568 }
  0xbd   : > { %v571_v34 = vpop.permute.xlu1 %570  ;;  %v575_v35 = vsel %vm572_vm3, %v567_v26, %v569_v33 }
  0xbe   : > { %1270 = vrot.lane.b32.xlu0 %v2387_v31, %s2081_s19  ;;  %v576_v36 = vsel %vm572_vm3, %v569_v33, %v571_v34 }
  0xbf   : > { %1266 = vrot.lane.b32.xlu1 %v2392_v32, %s2081_s19  ;;  %1564 = vmatprep.subr.bf16.mxu1 %v576_v36 }
  0xc0   : > { %1565 = vmatpush1.bf16.msra.mxu1 %v575_v35  ;;  %v615_v39 = vpop.permute.xlu0 %614  ;;  %v2440_v35 = vld [vmem:[%s2503_s1 + $0x8] sm:$0xff] }
  0xc1   : > { %v617_v40 = vpop.permute.xlu1 %616 }
  0xc2   : > { %1272 = vrot.lane.b32.xlu0 %v2399_v37, %s2081_s19  ;;  %v623_v41 = vsel %vm572_vm3, %v615_v39, %v617_v40 }
  0xc3   : > { %1274 = vrot.lane.b32.xlu1 %v2050_v38, %s2081_s19  ;;  %1484 = vmatprep.subr.bf16.mxu0 %v623_v41  ;;  %v1961_v41 = vcombine.high %v2440_v35, %v2440_v35 }
  0xc4   : > { %v613_v42 = vpop.permute.xlu0 %612 }
  0xc5   : > { %v619_v43 = vpop.permute.xlu1 %618  ;;  %v622_v44 = vsel %vm572_vm3, %v613_v42, %v615_v39 }
  0xc6   : > { %1317 = vrot.lane.b32.xlu0 %v2316_v52, %s2082_s20  ;;  %1485 = vmatpush1.bf16.msra.mxu0 %v622_v44  ;;  %v624_v48 = vsel %vm572_vm3, %v617_v40, %v619_v43  ;;  %v1958_v40 = vcombine.low %v2275_v27, %v2275_v27 }
  0xc7   : > { %1319 = vrot.lane.b32.xlu1 %v2320_v54, %s2082_s20 }
  0xc8   : > { %v621_v45 = vpop.permute.xlu0 %620 }
  0xc9   : > { %v664_v46 = vpop.permute.xlu1 %663  ;;  %v625_v47 = vsel %vm572_vm3, %v619_v43, %v621_v45 }
  0xca   : > { %1315 = vrot.lane.b32.xlu0 %v2326_v58, %s2082_s20  ;;  %1566 = vmatprep.subr.bf16.mxu1 %v625_v47 }
  0xcb   : > { %1321 = vrot.lane.b32.xlu1 %v2331_v59, %s2082_s20  ;;  %1567 = vmatpush1.bf16.msra.mxu1 %v624_v48 }
  0xcc   : > { %v666_v50 = vpop.permute.xlu0 %665 }
  0xcd   : > { %v662_v51 = vpop.permute.xlu1 %661  ;;  %v673_v53 = vsel %vm671_vm4, %v664_v46, %v666_v50 }
  0xce   : > { %1323 = vrot.lane.b32.xlu0 %v2051_v49, %s2082_s20  ;;  %1486 = vmatprep.subr.bf16.mxu0 %v673_v53  ;;  %v672_v55 = vsel %vm671_vm4, %v662_v51, %v664_v46 }
  0xcf   : > { %1487 = vmatpush1.bf16.msra.mxu0 %v672_v55 }
  0xd0   : > { %v668_v56 = vpop.permute.xlu0 %667 }
  0xd1   : > { %v670_v57 = vpop.permute.xlu1 %669  ;;  %v674_v60 = vsel %vm671_vm4, %v666_v50, %v668_v56 }
  0xd2   : > { %v675_v61 = vsel %vm671_vm4, %v668_v56, %v670_v57 }
  0xd3   : > { %1568 = vmatprep.subr.bf16.mxu1 %v675_v61 }
  0xd4   : > { %1569 = vmatpush1.bf16.msra.mxu1 %v674_v60  ;;  %v714_v62 = vpop.permute.xlu0 %713 }
  0xd5   : > { %v716_v63 = vpop.permute.xlu1 %715 }
  0xd6   : > { %v722_v0 = vsel %vm572_vm3, %v714_v62, %v716_v63 }
  0xd7   : > { %1488 = vmatprep.subr.bf16.mxu0 %v722_v0 }
  0xd8   : > { %v712_v2 = vpop.permute.xlu0 %711 }
  0xd9   : > { %v718_v3 = vpop.permute.xlu1 %717  ;;  %v721_v4 = vsel %vm572_vm3, %v712_v2, %v714_v62 }
  0xda   : > { %1489 = vmatpush1.bf16.msra.mxu0 %v721_v4  ;;  %v723_v10 = vsel %vm572_vm3, %v716_v63, %v718_v3 }
  0xdc   : > { %v720_v5 = vpop.permute.xlu0 %719 }
  0xdd   : > { %v763_v8 = vpop.permute.xlu1 %762  ;;  %v724_v9 = vsel %vm572_vm3, %v718_v3, %v720_v5 }
  0xde   : > { %1570 = vmatprep.subr.bf16.mxu1 %v724_v9 }
  0xdf   : > { %1571 = vmatpush1.bf16.msra.mxu1 %v723_v10 }
  0xe0   : > { %v765_v11 = vpop.permute.xlu0 %764 }
  0xe1   : > { %v761_v13 = vpop.permute.xlu1 %760  ;;  %v771_v14 = vsel %vm572_vm3, %v763_v8, %v765_v11 }
  0xe2   : > { %1490 = vmatprep.subr.bf16.mxu0 %v771_v14  ;;  %v770_v15 = vsel %vm572_vm3, %v761_v13, %v763_v8 }
  0xe3   : > { %1491 = vmatpush1.bf16.msra.mxu0 %v770_v15  ;;  %v2057_v15 = vld [vmem:[%s2121_s17 + $0x9c] ss:$24 sps:$4 sm:$0xff]  }
  0xe4   : > { %v767_v16 = vpop.permute.xlu0 %766 }
  0xe5   : > { %v769_v17 = vpop.permute.xlu1 %768  ;;  %v772_v18 = vsel %vm572_vm3, %v765_v11, %v767_v16  ;;  %v2054_v11 = vld [vmem:[%s2121_s17 + $0x94] ss:$24 sps:$4 sm:$0xff]  }
  0xe6   : > { %v773_v19 = vsel %vm572_vm3, %v767_v16, %v769_v17 }
  0xe7   : > { %1572 = vmatprep.subr.bf16.mxu1 %v773_v19 }
  0xe8   : > { %1573 = vmatpush1.bf16.msra.mxu1 %v772_v18  ;;  %v812_v20 = vpop.permute.xlu0 %811 }
  0xe9   : > { %v814_v21 = vpop.permute.xlu1 %813 }
  0xea   : > { %v820_v22 = vsel %vm671_vm4, %v812_v20, %v814_v21 }
  0xeb   : > { %1492 = vmatprep.subr.bf16.mxu0 %v820_v22 }
  0xec   : > { %v810_v23 = vpop.permute.xlu0 %809 }
  0xed   : > { %v816_v24 = vpop.permute.xlu1 %815  ;;  %v819_v26 = vsel %vm671_vm4, %v810_v23, %v812_v20 }
  0xee   : > { %1493 = vmatpush1.bf16.msra.mxu0 %v819_v26  ;;  %v821_v33 = vsel %vm671_vm4, %v814_v21, %v816_v24 }
  0xf0   : > { %v818_v28 = vpop.permute.xlu0 %817 }
  0xf1   : > { %v861_v29 = vpop.permute.xlu1 %860  ;;  %v822_v30 = vsel %vm671_vm4, %v816_v24, %v818_v28 }
  0xf2   : > { %1574 = vmatprep.subr.bf16.mxu1 %v822_v30 }
  0xf3   : > { %1575 = vmatpush1.bf16.msra.mxu1 %v821_v33 }
  0xf4   : > { %v863_v34 = vpop.permute.xlu0 %862 }
  0xf5   : > { %v859_v36 = vpop.permute.xlu1 %858  ;;  %v870_v38 = vsel %vm868_vm5, %v861_v29, %v863_v34 }
  0xf6   : > { %1494 = vmatprep.subr.bf16.mxu0 %v870_v38  ;;  %v869_v39 = vsel %vm868_vm5, %v859_v36, %v861_v29 }
  0xf7   : > { %1495 = vmatpush1.bf16.msra.mxu0 %v869_v39 }
  0xf8   : > { %v865_v42 = vpop.permute.xlu0 %864 }
  0xf9   : > { %v867_v43 = vpop.permute.xlu1 %866  ;;  %v871_v44 = vsel %vm868_vm5, %v863_v34, %v865_v42 }
  0xfa   : > { %v872_v45 = vsel %vm868_vm5, %v865_v42, %v867_v43  ;;  %1497 = vmatmul.mubr.bf16.vlgmr.msra.gmra.mrb[0].mxu0 %v1958_v40 }
  0xfb   : > { %1576 = vmatprep.subr.bf16.mxu1 %v872_v45  ;;  %1962 = vmatprep.mubr.msk.bf16.mxu0 %vm1460_vm6, %v1961_v41 }
  0xfc   : > { %1577 = vmatpush1.bf16.msra.mxu1 %v871_v44  ;;  %v911_v46 = vpop.permute.xlu0 %910 }
  0xfd   : > { %v913_v47 = vpop.permute.xlu1 %912 }
  0xfe   : > { %v919_v48 = vsel %vm868_vm5, %v911_v46, %v913_v47 }
  0xff   : > { %1505 = vmatprep.subr.bf16.mxu0 %v919_v48  ;;  %1579 = vmatmul.mubr.bf16.vlgmr.msra.gmra.mrb[0].mxu1 %v1958_v40 }
 0x100   : > { %v909_v27 = vpop.permute.xlu0 %908  ;;  %1963 = vmatprep.mubr.msk.bf16.mxu1 %vm1460_vm6, %v1961_v41 }
 0x101   : > { %v918_v49 = vsel %vm868_vm5, %v909_v27, %v911_v46  ;;  %v915_v50 = vpop.permute.xlu1 %914  ;;  %v1960_v46 = vcombine.low %v2440_v35, %v2440_v35 }
 0x102   : > { %1506 = vmatpush1.bf16.msra.mxu0 %v918_v49  ;;  %v920_v56 = vsel %vm868_vm5, %v913_v47, %v915_v50 }
 0x104   : > { %v917_v51 = vpop.permute.xlu0 %916 }
 0x105   : > { %v960_v53 = vpop.permute.xlu1 %959  ;;  %v921_v55 = vsel %vm868_vm5, %v915_v50, %v917_v51  ;;  %v1634_v50 = vlaneseq }
 0x106   : > { %1587 = vmatprep.subr.bf16.mxu1 %v921_v55 }
 0x107   : > { %1588 = vmatpush1.bf16.msra.mxu1 %v920_v56 }
 0x108   : > { %v962_v57 = vpop.permute.xlu0 %961 }
 0x109   : > { %v958_v60 = vpop.permute.xlu1 %957  ;;  %v969_v61 = vsel %vm967_vm7, %v960_v53, %v962_v57 }
 0x10a   : > { %v968_v62 = vsel %vm967_vm7, %v958_v60, %v960_v53  ;;  %1507 = vmatprep.subr.bf16.mxu0 %v969_v61  ;;  %v1635_v53 = vshrl.u32 %v1634_v50, 7  ;;  %v1632_v61 = vld [vmem:[%s2504_s2] sm:$0xf] }
 0x10b   : > { %1508 = vmatpush1.bf16.msra.mxu0 %v968_v62 }
 0x10c   : > { %v964_v63 = vpop.permute.xlu0 %963  ;;  %1509 = vmatprep.subr.bf16.mxu0 %v2316_v52  ;;  %v1636_v35 = vsub.s32 0, %v1635_v53  ;;  %v1640_v62 = vsub.s32 1, %v1635_v53 }
 0x10d   : > { %v970_v0 = vsel %vm967_vm7, %v962_v57, %v964_v63  ;;  %v966_v2 = vpop.permute.xlu1 %965 }
 0x10e   : > { %v971_v3 = vsel %vm967_vm7, %v964_v63, %v966_v2 }
 0x10f   : > { %1589 = vmatprep.subr.bf16.mxu1 %v971_v3  ;;  %1510 = vmatpush1.bf16.msra.mxu0 %v2326_v58  ;;  %v1637_v3 = vrot.slane %v1632_v61, %v1636_v35 }
 0x110   : > { %1590 = vmatpush1.bf16.msra.mxu1 %v970_v0  ;;  %v1066_v4 = vpop.permute.xlu0 %1065  ;;  %1511 = vmatprep.subr.bf16.mxu0 %v2381_v25 }
 0x111   : > { %v1068_v5 = vpop.permute.xlu1 %1067  ;;  %1591 = vmatprep.subr.bf16.mxu1 %v2331_v59  ;;  %v2056_v59 = vld [vmem:[%s2121_s17 + $0x98] ss:$24 sps:$4 sm:$0xff]  }
 0x112   : > { %v1074_v8 = vsel %vm266_vm0, %v1066_v4, %v1068_v5 }
 0x113   : > { %1512 = vmatpush1.bf16.msra.mxu0 %v2392_v32 }
 0x114   : > { %1592 = vmatpush1.bf16.msra.mxu1 %v2320_v54  ;;  %v1064_v52 = vpop.permute.xlu0 %1063  ;;  %1513 = vmatprep.subr.bf16.mxu0 %v1074_v8  ;;  %v1648_v8 = vsub.s32 3, %v1635_v53 }
 0x115   : > { %v1073_v9 = vsel %vm266_vm0, %v1064_v52, %v1066_v4  ;;  %v1070_v58 = vpop.permute.xlu1 %1069  ;;  %1593 = vmatprep.subr.bf16.mxu1 %v2399_v37  ;;  %v1641_v4 = vrot.slane %v1632_v61, %v1640_v62 }
 0x116   : > { %v1075_v54 = vsel %vm266_vm0, %v1068_v5, %v1070_v58  ;;  %v1644_v5 = vsub.s32 2, %v1635_v53 }
 0x117   : > { %1514 = vmatpush1.bf16.msra.mxu0 %v1073_v9 }
 0x118   : > { %1594 = vmatpush1.bf16.msra.mxu1 %v2387_v31  ;;  %v1072_v25 = vpop.permute.xlu0 %1071  ;;  %1515 = vmatprep.subr.bf16.mxu0 %v2341_v1  ;;  %v2059_v31 = vld [vmem:[%s2121_s17 + $0xa0] ss:$24 sps:$4 sm:$0xff]  }
 0x119   : > { %v1171_v32 = vpop.permute.xlu1 %1170  ;;  %v1076_v10 = vsel %vm266_vm0, %v1070_v58, %v1072_v25  ;;  %v1645_v25 = vrot.slane %v1632_v61, %v1644_v5 }
 0x11a   : > { %1595 = vmatprep.subr.bf16.mxu1 %v1076_v10 }
 0x11b   : > { %1516 = vmatpush1.bf16.msra.mxu0 %v2352_v7 }
 0x11c   : > { %1596 = vmatpush1.bf16.msra.mxu1 %v1075_v54  ;;  %v1173_v37 = vpop.permute.xlu0 %1172  ;;  %1517 = vmatprep.subr.bf16.mxu0 %v2056_v59 }
 0x11d   : > { %v1169_v13 = vpop.permute.xlu1 %1168  ;;  %1597 = vmatprep.subr.bf16.mxu1 %v2359_v12  ;;  %v1179_v1 = vsel %vm266_vm0, %v1171_v32, %v1173_v37 }
 0x11e   : > { %v1178_v7 = vsel %vm266_vm0, %v1169_v13, %v1171_v32  ;;  %v1649_v32 = vrot.slane %v1632_v61, %v1648_v8 }
 0x11f   : > { %1518 = vmatpush1.bf16.msra.mxu0 %v2054_v11 }
 0x120   : > { %1598 = vmatpush1.bf16.msra.mxu1 %v2347_v6  ;;  %v1175_v14 = vpop.permute.xlu0 %1174  ;;  %1519 = vmatprep.subr.bf16.mxu0 %v1179_v1 }
 0x121   : > { %v1177_v16 = vpop.permute.xlu1 %1176  ;;  %1599 = vmatprep.subr.bf16.mxu1 %v2059_v31  ;;  %v1180_v20 = vsel %vm266_vm0, %v1173_v37, %v1175_v14 }
 0x122   : > { %v1181_v18 = vsel %vm266_vm0, %v1175_v14, %v1177_v16 }
 0x123   : > { %1520 = vmatpush1.bf16.msra.mxu0 %v1178_v7 }
 0x124   : > { %1600 = vmatpush1.bf16.msra.mxu1 %v2057_v15  ;;  %v1220_v17 = vpop.permute.xlu0 %1219 }
 0x125   : > { %v1222_v19 = vpop.permute.xlu1 %1221  ;;  %1601 = vmatprep.subr.bf16.mxu1 %v1181_v18 }
 0x126   : > { %v1228_v12 = vsel %vm423_vm1, %v1220_v17, %v1222_v19 }
 0x127   : > { %1521 = vmatprep.subr.bf16.mxu0 %v1228_v12 }
 0x128   : > { %1602 = vmatpush1.bf16.msra.mxu1 %v1180_v20  ;;  %v1218_v6 = vpop.permute.xlu0 %1217 }
 0x129   : > { %v1227_v21 = vsel %vm423_vm1, %v1218_v6, %v1220_v17  ;;  %v1224_v22 = vpop.permute.xlu1 %1223 }
 0x12a   : > { %1522 = vmatpush1.bf16.msra.mxu0 %v1227_v21  ;;  %v1229_v28 = vsel %vm423_vm1, %v1222_v19, %v1224_v22 }
 0x12c   : > { %v1226_v23 = vpop.permute.xlu0 %1225 }
 0x12d   : > { %v1269_v24 = vpop.permute.xlu1 %1268  ;;  %v1230_v26 = vsel %vm423_vm1, %v1224_v22, %v1226_v23 }
 0x12e   : > { %1603 = vmatprep.subr.bf16.mxu1 %v1230_v26 }
 0x12f   : > { %1604 = vmatpush1.bf16.msra.mxu1 %v1229_v28 }
 0x130   : > { %v1271_v29 = vpop.permute.xlu0 %1270 }
 0x131   : > { %v1267_v30 = vpop.permute.xlu1 %1266  ;;  %v1277_v33 = vsel %vm423_vm1, %v1269_v24, %v1271_v29 }
 0x132   : > { %v1276_v34 = vsel %vm423_vm1, %v1267_v30, %v1269_v24  ;;  %1523 = vmatprep.subr.bf16.mxu0 %v1277_v33 }
 0x133   : > { %1524 = vmatpush1.bf16.msra.mxu0 %v1276_v34 }
 0x134   : > { %v1273_v36 = vpop.permute.xlu0 %1272 }
 0x135   : > { %v1278_v38 = vsel %vm423_vm1, %v1271_v29, %v1273_v36  ;;  %v1275_v39 = vpop.permute.xlu1 %1274 }
 0x136   : > { %v1279_v40 = vsel %vm423_vm1, %v1273_v36, %v1275_v39 }
 0x137   : > { %1605 = vmatprep.subr.bf16.mxu1 %v1279_v40 }
 0x138   : > { %1606 = vmatpush1.bf16.msra.mxu1 %v1278_v38  ;;  %v1318_v41 = vpop.permute.xlu0 %1317 }
 0x139   : > { %v1320_v42 = vpop.permute.xlu1 %1319 }
 0x13a   : > { %v1326_v43 = vsel %vm522_vm2, %v1318_v41, %v1320_v42 }
 0x13b   : > { %1525 = vmatprep.subr.bf16.mxu0 %v1326_v43 }
 0x13c   : > { %v1316_v44 = vpop.permute.xlu0 %1315 }
 0x13d   : > { %v1325_v45 = vsel %vm522_vm2, %v1316_v44, %v1318_v41  ;;  %v1322_v47 = vpop.permute.xlu1 %1321 }
 0x13e   : > { %1526 = vmatpush1.bf16.msra.mxu0 %v1325_v45  ;;  %v1327_v49 = vsel %vm522_vm2, %v1320_v42, %v1322_v47 }
 0x140   : > { %v1324_v48 = vpop.permute.xlu0 %1323 }
 0x141   : > { %1538 = vmatmul.mubr.bf16.vlgmr.msra.gmra.mrb[0].mxu0 %v1960_v46  ;;  %v1328_v27 = vsel %vm522_vm2, %v1322_v47, %v1324_v48 }
 0x142   : > { %1607 = vmatprep.subr.bf16.mxu1 %v1328_v27 }
 0x143   : > { %1608 = vmatpush1.bf16.msra.mxu1 %v1327_v49 }
 0x146   : > { %1620 = vmatmul.mubr.bf16.vlgmr.msra.gmra.mrb[0].mxu1 %v1960_v46 }
 0x214   : > { %v1539_v51 = vpop.f32.mrb[0].mxu0 }
 0x215   : > { %2062 = vtanh.f32 %v1539_v51  ;;  %v1541_v55 = vpop.f32.mrb[1].mxu0 }
 0x216   : > { %2064 = vtanh.f32 %v1541_v55  ;;  %v1543_v56 = vpop.f32.mrb[2].mxu0 }
 0x217   : > { %v1544_v57 = vpop.f32.mrb[3].mxu0 }
 0x219   : > { %v1621_v60 = vpop.f32.mrb[0].mxu1 }
 0x21a   : > { %2066 = vtanh.f32 %v1621_v60  ;;  %v1623_v63 = vpop.f32.mrb[1].mxu1 }
 0x21b   : > { %2068 = vtanh.f32 %v1623_v63  ;;  %v1625_v0 = vpop.f32.mrb[2].mxu1 }
 0x21c   : > { %v1626_v2 = vpop.f32.mrb[3].mxu1 }
 0x21f   : > { %v2063_v52 = vpop.eup %2062 }
 0x220   : > { %v2065_v9 = vpop.eup %2064  ;;  %v1654_v58 = vmul.f32 %v2063_v52, %v1637_v3 }
 0x221   : > { %v1655_v59 = vmul.f32 %v2065_v9, %v1641_v4 }
 0x222   : > { %v1664_v10 = vmul.f32 %v1654_v58, %v1654_v58 }
 0x223   : > { %v1665_v54 = vmul.f32 %v1655_v59, %v1655_v59  ;;  %v1658_v31 = vadd.f32 %v1655_v59, %v1654_v58 }
 0x224   : > { %v2067_v11 = vpop.eup %2066 }
 0x225   : > { %v2069_v37 = vpop.eup %2068  ;;  %v1656_v13 = vmul.f32 %v2067_v11, %v1645_v25  ;;  %v1668_v16 = vadd.f32 %v1665_v54, %v1664_v10 }
 0x226   : > { %v1657_v1 = vmul.f32 %v2069_v37, %v1649_v32 }
 0x227   : > { %v1659_v14 = vadd.f32 %v1658_v31, %v1656_v13  ;;  %v1666_v15 = vmul.f32 %v1656_v13, %v1656_v13 }
 0x228   : > { %v1667_v7 = vmul.f32 %v1657_v1, %v1657_v1 }
 0x229   : > { %v1660_v17 = vadd.f32 %v1659_v14, %v1657_v1  ;;  %v1669_v18 = vadd.f32 %v1668_v16, %v1666_v15 }
 0x22b   : > { %1661 = vadd.xlane.f32.xlu1 %v1660_v17  ;;  %v1670_v19 = vadd.f32 %v1669_v18, %v1667_v7 }
 0x22d   : > { %1671 = vadd.xlane.f32.xlu0 %v1670_v19 }
 0x2b8   : > { %v1662_v12 = vpop.xlane.xlu1 %1661 }
 0x2b9   : > { %v1663_v20 = vmul.f32 0.0025510204, %v1662_v12 }
 0x2ba   : > { %v1672_v6 = vpop.xlane.xlu0 %1671 }
 0x2bb   : > { %v1673_v21 = vmul.f32 0.0025510204, %v1672_v6  ;;  %v1674_v22 = vmul.f32 %v1663_v20, %v1663_v20  ;;  %v1676_v26 = vsub.f32 %v2063_v52, %v1663_v20  ;;  %v1677_v28 = vsub.f32 %v2065_v9, %v1663_v20 }
 0x2bc   : > { %v1678_v29 = vsub.f32 %v2067_v11, %v1663_v20  ;;  %v1679_v30 = vsub.f32 %v2069_v37, %v1663_v20 }
 0x2bd   : > { %v1675_v23 = vsub.f32 %v1673_v21, %v1674_v22 }
 0x2bf   : > { %v1680_v24 = vadd.f32 1e-05, %v1675_v23 }
 0x2c1   : > { %2070 = vrsqrt.f32 %v1680_v24 }
 0x2cb   : > { %v2071_v33 = vpop.eup %2070 }
 0x2cc   : > { %v1682_v34 = vmul.f32 %v2071_v33, %v1676_v26  ;;  %v1683_v36 = vmul.f32 %v2071_v33, %v1677_v28  ;;  %v1684_v38 = vmul.f32 %v2071_v33, %v1678_v29  ;;  %v1685_v39 = vmul.f32 %v2071_v33, %v1679_v30 }
 0x2ce   : > { %1686 = vst [vmem:[%s170_s7] sm:$0xff] %v1682_v34  ;;  %1687 = vst [vmem:[%s170_s7 + $0x8] sm:$0xff] %v1683_v36 }
 0x2cf   : > { %1688 = vst [vmem:[%s170_s7 + $0x10] sm:$0xff] %v1684_v38  ;;  %1689 = vst [vmem:[%s170_s7 + $0x18] sm:$0xff] %v1685_v39 }
 0x2d0 PF: > { %s13_s12 = sadd.s32 1, %s2078_s12  }
 0x2d1   : > { %p10_p4 = scmp.ge.s32.totalorder %s13_s12, 4  }
 0x2d3   :  { %12 = sbr.rel (!%p10_p4) target bundleno = 1 (0x1), region = 65 }

// kernel: thermal_bvp_feature_extractor.4
= control target key start
LH: loop header
LB: loop body
LE: loop exit
PB: predicated region body
PF: predicated region fallthrough
CT: control target
= control target key end

     0   :  { %s2276_s12 = smov 0   ;;  %s2546_s0 = inlined_call_operand.vmem [shape: bf16[2,1,16,640], index: 0, kind: input, shape index: {}]   ;;  %s2547_s1 = inlined_call_operand.vmem [shape: bf16[16,432], index: 1, kind: input, shape index: {}]   ;;  %s2548_s2 = inlined_call_operand.vmem [shape: f32[1,512], index: 2, kind: input, shape index: {}]   ;;  %s2549_s3 = inlined_call_operand.vmem [shape: f32[2,16,512], index: 3, kind: output, shape index: {}]  }
   0x1 LB: > { %s1964_s13 = sadd.s32 4294967295, %s2228_s12   ;;  %p1968_p0 = scmp.ge.s32.totalorder %s2228_s12, 1  ;;  %s2228_s12 = sphi %s2276_s12, %s13_s12  }
   0x2   : > { %p137_p1 = scmp.lt.s32.totalorder %s2228_s12, 3 }
   0x4   : > { %p138_p2 = pnand %p1968_p0, %p137_p1 }
   0x5   : > { %p161_p3 = scmp.lt.s32.totalorder (!%p138_p2), %s1964_s13, 1  ;;  %s2230_s18 = smov (!%p138_p2), 127   ;;  %vm237_vm0 = vcmask (!%p138_p2), 1039360   ;;  %vm287_vm1 = vcmask (!%p138_p2), 1031168   ;;  %vm337_vm2 = vcmask (!%p138_p2), 990208   ;;  %vm387_vm3 = vcmask (!%p138_p2), 982016  }
   0x6   : > { %141 = sbr.rel (%p138_p2) target bundleno = 795 (0x31b), region = 32  ;;  %s2231_s19 = smov (!%p138_p2), 126   ;;  %v2198_v42 = vld [vmem:[%s2547_s1 + $0x4] ss:$16 sps:$4 sm:$0xff] (!%p138_p2)   ;;  %vm437_vm4 = vcmask (!%p138_p2), 973824   ;;  %vm487_vm5 = vcmask (!%p138_p2), 932864  }
   0x7   : > { %s2232_s20 = smov (!%p138_p2), 121   ;;  %s2233_s21 = smov (!%p138_p2), 120   ;;  %1667 = vmatprep.mubr.bf16.mxu0 (!%p138_p2), %v2198_v42  ;;  %1753 = vmatprep.mubr.bf16.mxu1 (!%p138_p2), %v2198_v42  ;;  %vm537_vm6 = vcmask (!%p138_p2), 924672   ;;  %vm587_vm7 = vcmask (!%p138_p2), 916480   ;;  %vm637_vm8 = vcmask (!%p138_p2), 646144   ;;  %vm687_vm9 = vcmask (!%p138_p2), 637952  }
   0x8   : > { %s2234_s22 = smov (!%p138_p2), 119   ;;  %s2235_s23 = smov (!%p138_p2), 114   ;;  %vm737_vm10 = vcmask (!%p138_p2), 629760   ;;  %vm787_vm11 = vcmask (!%p138_p2), 588800   ;;  %vm837_vm12 = vcmask (!%p138_p2), 580608   ;;  %vm887_vm13 = vcmask (!%p138_p2), 572416  }
   0x9   : > { %s2236_s24 = smov (!%p138_p2), 113   ;;  %s2237_s25 = smov (!%p138_p2), 112   ;;  %vm937_vm14 = vcmask (!%p138_p2), 531456   ;;  %vm1631_vm15 = vcmask (!%p138_p2), 392192  }
   0xa   : > { %s2238_s26 = smov (!%p138_p2), 79   ;;  %s2239_s27 = smov (!%p138_p2), 78  }
   0xb   : > { %s2240_s28 = smov (!%p138_p2), 77   ;;  %s2241_s29 = smov (!%p138_p2), 72  }
   0xc   : > { %s2242_s30 = smov (!%p138_p2), 71   ;;  %s2243_s4 = smov (!%p138_p2), 70  }
   0xd   : > { %s2551_s13 = smov (!%p161_p3, %s1964_s13), 1  ;;  %s2244_s7 = smov 65  }
   0xe   : > { %s2123_s14 = smul.u32 40, %s2551_s13  ;;  %s2245_s8 = smov 64  }
   0xf   : > { %s2246_s9 = smov 63   ;;  %s2247_s10 = smov 30  }
  0x10   : > { %s2290_s17 = scalar_lea.vmem %s2546_s0, %s2123_s14  ;;  %s2248_s11 = smov 29  }
  0x11   : > { %v2293_v0 = vld [vmem:[%s2290_s17 + $0x4] ss:$20 sps:$4 sm:$0xff]   ;;  %v2296_v1 = vld [vmem:[%s2290_s17] ss:$20 sps:$4 sm:$0xff]   ;;  %v2300_v2 = vld [vmem:[%s2290_s17 + $0x8] ss:$20 sps:$4 sm:$0xff]  }
  0x12   : > { %229 = vrot.lane.b32.xlu0 %v2293_v0, %s2230_s18  ;;  %v2303_v3 = vld [vmem:[%s2290_s17 + $0xc] ss:$20 sps:$4 sm:$0xff]   ;;  %1635 = vmatprep.subr.bf16.mxu0 %v2293_v0  ;;  %v2164_v4 = vld [vmem:[%s2290_s17 + $0x10] ss:$20 sps:$4 sm:$0xff]   ;;  %s2249_s14 = smov 28   ;;  %s2250_s15 = smov 23  }
  0x13   : > { %227 = vrot.lane.b32.xlu1 %v2296_v1, %s2230_s18  ;;  %1636 = vmatpush1.bf16.msra.mxu0 %v2296_v1  ;;  %v2165_v5 = vld [vmem:[%s2290_s17 + $0x10] ss:$20 sps:$4 sm:$0xff]   ;;  %s2251_s16 = smov 22  }
  0x14   : > { %1721 = vmatprep.subr.bf16.mxu1 %v2303_v3  ;;  %v2166_v6 = vld [vmem:[%s2290_s17 + $0x10] ss:$20 sps:$4 sm:$0xff]  }
  0x15   : > { %1722 = vmatpush1.bf16.msra.mxu1 %v2300_v2  ;;  %v2167_v7 = vld [vmem:[%s2290_s17 + $0x10] ss:$20 sps:$4 sm:$0xff]  }
  0x16   : > { %231 = vrot.lane.b32.xlu0 %v2300_v2, %s2230_s18  ;;  %v2168_v8 = vld [vmem:[%s2290_s17 + $0x10] ss:$20 sps:$4 sm:$0xff]  }
  0x17   : > { %233 = vrot.lane.b32.xlu1 %v2303_v3, %s2230_s18  ;;  %v2169_v9 = vld [vmem:[%s2290_s17 + $0x10] ss:$20 sps:$4 sm:$0xff]  }
  0x18   : > { %v2170_v10 = vld [vmem:[%s2290_s17 + $0x10] ss:$20 sps:$4 sm:$0xff]  }
  0x19   : > { %v2171_v11 = vld [vmem:[%s2290_s17 + $0x10] ss:$20 sps:$4 sm:$0xff]  }
  0x1a   : > { %235 = vrot.lane.b32.xlu0 %v2164_v4, %s2230_s18  ;;  %v2172_v12 = vld [vmem:[%s2290_s17 + $0x10] ss:$20 sps:$4 sm:$0xff]   ;;  %s2252_s18 = smov 21  }
  0x1b   : > { %279 = vrot.lane.b32.xlu1 %v2293_v0, %s2231_s19  ;;  %v2173_v13 = vld [vmem:[%s2290_s17 + $0x10] ss:$20 sps:$4 sm:$0xff]  }
  0x1c   : > { %v2174_v14 = vld [vmem:[%s2290_s17 + $0x10] ss:$20 sps:$4 sm:$0xff]  }
  0x1d   : > { %v2175_v15 = vld [vmem:[%s2290_s17 + $0x10] ss:$20 sps:$4 sm:$0xff]  }
  0x1e   : > { %281 = vrot.lane.b32.xlu0 %v2300_v2, %s2231_s19  ;;  %v2176_v26 = vld [vmem:[%s2290_s17 + $0x10] ss:$20 sps:$4 sm:$0xff]  }
  0x1f   : > { %277 = vrot.lane.b32.xlu1 %v2296_v1, %s2231_s19  ;;  %v2177_v35 = vld [vmem:[%s2290_s17 + $0x10] ss:$20 sps:$4 sm:$0xff]  }
  0x20   : > { %v2178_v47 = vld [vmem:[%s2290_s17 + $0x10] ss:$20 sps:$4 sm:$0xff]  }
  0x21   : > { %v2179_v56 = vld [vmem:[%s2290_s17 + $0x10] ss:$20 sps:$4 sm:$0xff]  }
  0x22   : > { %283 = vrot.lane.b32.xlu0 %v2303_v3, %s2231_s19 }
  0x23   : > { %285 = vrot.lane.b32.xlu1 %v2165_v5, %s2231_s19  ;;  %s2253_s19 = smov 16  }
  0x26   : > { %329 = vrot.lane.b32.xlu0 %v2293_v0, %s2232_s20 }
  0x27   : > { %331 = vrot.lane.b32.xlu1 %v2300_v2, %s2232_s20 }
  0x2a   : > { %327 = vrot.lane.b32.xlu0 %v2296_v1, %s2232_s20 }
  0x2b   : > { %333 = vrot.lane.b32.xlu1 %v2303_v3, %s2232_s20 }
  0x2e   : > { %335 = vrot.lane.b32.xlu0 %v2166_v6, %s2232_s20  ;;  %s2254_s20 = smov 15  }
  0x2f   : > { %379 = vrot.lane.b32.xlu1 %v2293_v0, %s2233_s21 }
  0x32   : > { %381 = vrot.lane.b32.xlu0 %v2300_v2, %s2233_s21 }
  0x33   : > { %377 = vrot.lane.b32.xlu1 %v2296_v1, %s2233_s21 }
  0x36   : > { %383 = vrot.lane.b32.xlu0 %v2303_v3, %s2233_s21 }
  0x37   : > { %385 = vrot.lane.b32.xlu1 %v2167_v7, %s2233_s21  ;;  %v2180_v7 = vld [vmem:[%s2290_s17 + $0x10] ss:$20 sps:$4 sm:$0xff]   ;;  %s2255_s21 = smov 14  }
  0x3a   : > { %429 = vrot.lane.b32.xlu0 %v2293_v0, %s2234_s22 }
  0x3b   : > { %431 = vrot.lane.b32.xlu1 %v2300_v2, %s2234_s22 }
  0x3e   : > { %427 = vrot.lane.b32.xlu0 %v2296_v1, %s2234_s22 }
  0x3f   : > { %433 = vrot.lane.b32.xlu1 %v2303_v3, %s2234_s22 }
  0x42   : > { %435 = vrot.lane.b32.xlu0 %v2168_v8, %s2234_s22 }
  0x43   : > { %479 = vrot.lane.b32.xlu1 %v2293_v0, %s2235_s23 }
  0x46   : > { %481 = vrot.lane.b32.xlu0 %v2300_v2, %s2235_s23 }
  0x47   : > { %477 = vrot.lane.b32.xlu1 %v2296_v1, %s2235_s23 }
  0x4a   : > { %483 = vrot.lane.b32.xlu0 %v2303_v3, %s2235_s23 }
  0x4b   : > { %485 = vrot.lane.b32.xlu1 %v2169_v9, %s2235_s23 }
  0x4e   : > { %529 = vrot.lane.b32.xlu0 %v2293_v0, %s2236_s24 }
  0x4f   : > { %531 = vrot.lane.b32.xlu1 %v2300_v2, %s2236_s24 }
  0x52   : > { %527 = vrot.lane.b32.xlu0 %v2296_v1, %s2236_s24 }
  0x53   : > { %533 = vrot.lane.b32.xlu1 %v2303_v3, %s2236_s24 }
  0x56   : > { %535 = vrot.lane.b32.xlu0 %v2170_v10, %s2236_s24 }
  0x57   : > { %579 = vrot.lane.b32.xlu1 %v2293_v0, %s2237_s25 }
  0x5a   : > { %581 = vrot.lane.b32.xlu0 %v2300_v2, %s2237_s25 }
  0x5b   : > { %577 = vrot.lane.b32.xlu1 %v2296_v1, %s2237_s25 }
  0x5e   : > { %583 = vrot.lane.b32.xlu0 %v2303_v3, %s2237_s25 }
  0x5f   : > { %585 = vrot.lane.b32.xlu1 %v2171_v11, %s2237_s25 }
  0x62   : > { %629 = vrot.lane.b32.xlu0 %v2293_v0, %s2238_s26 }
  0x63   : > { %631 = vrot.lane.b32.xlu1 %v2300_v2, %s2238_s26 }
  0x66   : > { %627 = vrot.lane.b32.xlu0 %v2296_v1, %s2238_s26 }
  0x67   : > { %633 = vrot.lane.b32.xlu1 %v2303_v3, %s2238_s26 }
  0x6a   : > { %635 = vrot.lane.b32.xlu0 %v2172_v12, %s2238_s26 }
  0x6b   : > { %679 = vrot.lane.b32.xlu1 %v2293_v0, %s2239_s27 }
  0x6e   : > { %681 = vrot.lane.b32.xlu0 %v2300_v2, %s2239_s27 }
  0x6f   : > { %677 = vrot.lane.b32.xlu1 %v2296_v1, %s2239_s27 }
  0x72   : > { %683 = vrot.lane.b32.xlu0 %v2303_v3, %s2239_s27 }
  0x73   : > { %685 = vrot.lane.b32.xlu1 %v2173_v13, %s2239_s27 }
  0x76   : > { %729 = vrot.lane.b32.xlu0 %v2293_v0, %s2240_s28 }
  0x77   : > { %731 = vrot.lane.b32.xlu1 %v2300_v2, %s2240_s28 }
  0x7a   : > { %727 = vrot.lane.b32.xlu0 %v2296_v1, %s2240_s28 }
  0x7b   : > { %733 = vrot.lane.b32.xlu1 %v2303_v3, %s2240_s28 }
  0x7e   : > { %735 = vrot.lane.b32.xlu0 %v2174_v14, %s2240_s28 }
  0x7f   : > { %779 = vrot.lane.b32.xlu1 %v2293_v0, %s2241_s29 }
  0x82   : > { %781 = vrot.lane.b32.xlu0 %v2300_v2, %s2241_s29 }
  0x83   : > { %777 = vrot.lane.b32.xlu1 %v2296_v1, %s2241_s29 }
  0x84   : > { %v230_v16 = vpop.permute.xlu0 %229 }
  0x85   : > { %v228_v17 = vpop.permute.xlu1 %227 }
  0x86   : > { %783 = vrot.lane.b32.xlu0 %v2303_v3, %s2241_s29  ;;  %v238_v21 = vsel %vm237_vm0, %v228_v17, %v230_v16 }
  0x87   : > { %785 = vrot.lane.b32.xlu1 %v2175_v15, %s2241_s29  ;;  %s2114_s29 = sshll.u32 %s2551_s13, 6 }
  0x88   : > { %v232_v18 = vpop.permute.xlu0 %231  ;;  %s170_s5 = scalar_lea.vmem %s2549_s3, %s2114_s29 }
  0x89   : > { %v234_v19 = vpop.permute.xlu1 %233  ;;  %v239_v20 = vsel %vm237_vm0, %v230_v16, %v232_v18  ;;  %v2181_v16 = vld [vmem:[%s2290_s17 + $0x10] ss:$20 sps:$4 sm:$0xff]  }
  0x8a   : > { %829 = vrot.lane.b32.xlu0 %v2293_v0, %s2242_s30  ;;  %1637 = vmatprep.subr.bf16.mxu0 %v239_v20  ;;  %v240_v25 = vsel %vm237_vm0, %v232_v18, %v234_v19 }
  0x8b   : > { %831 = vrot.lane.b32.xlu1 %v2300_v2, %s2242_s30  ;;  %1638 = vmatpush1.bf16.msra.mxu0 %v238_v21 }
  0x8c   : > { %v236_v22 = vpop.permute.xlu0 %235 }
  0x8d   : > { %v280_v23 = vpop.permute.xlu1 %279  ;;  %v241_v24 = vsel %vm237_vm0, %v234_v19, %v236_v22  ;;  %vm987_vm0 = vcmask 523264  }
  0x8e   : > { %827 = vrot.lane.b32.xlu0 %v2296_v1, %s2242_s30  ;;  %1723 = vmatprep.subr.bf16.mxu1 %v241_v24 }
  0x8f   : > { %833 = vrot.lane.b32.xlu1 %v2303_v3, %s2242_s30  ;;  %1724 = vmatpush1.bf16.msra.mxu1 %v240_v25 }
  0x90   : > { %v282_v27 = vpop.permute.xlu0 %281 }
  0x91   : > { %v278_v28 = vpop.permute.xlu1 %277  ;;  %v289_v29 = vsel %vm287_vm1, %v280_v23, %v282_v27 }
  0x92   : > { %835 = vrot.lane.b32.xlu0 %v2176_v26, %s2242_s30  ;;  %1639 = vmatprep.subr.bf16.mxu0 %v289_v29  ;;  %v288_v30 = vsel %vm287_vm1, %v278_v28, %v280_v23 }
  0x93   : > { %879 = vrot.lane.b32.xlu1 %v2293_v0, %s2243_s4  ;;  %1640 = vmatpush1.bf16.msra.mxu0 %v288_v30 }
  0x94   : > { %v284_v31 = vpop.permute.xlu0 %283 }
  0x95   : > { %v286_v32 = vpop.permute.xlu1 %285  ;;  %v290_v33 = vsel %vm287_vm1, %v282_v27, %v284_v31  ;;  %v2182_v27 = vld [vmem:[%s2290_s17 + $0x10] ss:$20 sps:$4 sm:$0xff]  }
  0x96   : > { %881 = vrot.lane.b32.xlu0 %v2300_v2, %s2243_s4  ;;  %v291_v34 = vsel %vm287_vm1, %v284_v31, %v286_v32  ;;  %vm1037_vm1 = vcmask 515072  }
  0x97   : > { %877 = vrot.lane.b32.xlu1 %v2296_v1, %s2243_s4  ;;  %1725 = vmatprep.subr.bf16.mxu1 %v291_v34 }
  0x98   : > { %1726 = vmatpush1.bf16.msra.mxu1 %v290_v33  ;;  %v330_v36 = vpop.permute.xlu0 %329 }
  0x99   : > { %v332_v37 = vpop.permute.xlu1 %331 }
  0x9a   : > { %883 = vrot.lane.b32.xlu0 %v2303_v3, %s2243_s4  ;;  %v339_v38 = vsel %vm337_vm2, %v330_v36, %v332_v37 }
  0x9b   : > { %885 = vrot.lane.b32.xlu1 %v2177_v35, %s2243_s4  ;;  %1641 = vmatprep.subr.bf16.mxu0 %v339_v38 }
  0x9c   : > { %v328_v39 = vpop.permute.xlu0 %327 }
  0x9d   : > { %v334_v40 = vpop.permute.xlu1 %333  ;;  %v338_v41 = vsel %vm337_vm2, %v328_v39, %v330_v36  ;;  %v2183_v36 = vld [vmem:[%s2290_s17 + $0x10] ss:$20 sps:$4 sm:$0xff]  }
  0x9e   : > { %929 = vrot.lane.b32.xlu0 %v2293_v0, %s2244_s7  ;;  %1642 = vmatpush1.bf16.msra.mxu0 %v338_v41  ;;  %v340_v46 = vsel %vm337_vm2, %v332_v37, %v334_v40 }
  0x9f   : > { %931 = vrot.lane.b32.xlu1 %v2300_v2, %s2244_s7 }
  0xa0   : > { %v336_v43 = vpop.permute.xlu0 %335 }
  0xa1   : > { %v380_v44 = vpop.permute.xlu1 %379  ;;  %v341_v45 = vsel %vm337_vm2, %v334_v40, %v336_v43  ;;  %vm1087_vm2 = vcmask 244736  }
  0xa2   : > { %927 = vrot.lane.b32.xlu0 %v2296_v1, %s2244_s7  ;;  %1727 = vmatprep.subr.bf16.mxu1 %v341_v45 }
  0xa3   : > { %933 = vrot.lane.b32.xlu1 %v2303_v3, %s2244_s7  ;;  %1728 = vmatpush1.bf16.msra.mxu1 %v340_v46 }
  0xa4   : > { %v382_v48 = vpop.permute.xlu0 %381 }
  0xa5   : > { %v378_v49 = vpop.permute.xlu1 %377  ;;  %v389_v50 = vsel %vm387_vm3, %v380_v44, %v382_v48 }
  0xa6   : > { %935 = vrot.lane.b32.xlu0 %v2178_v47, %s2244_s7  ;;  %1643 = vmatprep.subr.bf16.mxu0 %v389_v50  ;;  %v388_v51 = vsel %vm387_vm3, %v378_v49, %v380_v44  ;;  %v2184_v47 = vld [vmem:[%s2290_s17 + $0x10] ss:$20 sps:$4 sm:$0xff]  }
  0xa7   : > { %979 = vrot.lane.b32.xlu1 %v2293_v0, %s2245_s8  ;;  %1644 = vmatpush1.bf16.msra.mxu0 %v388_v51 }
  0xa8   : > { %v384_v52 = vpop.permute.xlu0 %383 }
  0xa9   : > { %v386_v53 = vpop.permute.xlu1 %385  ;;  %v390_v54 = vsel %vm387_vm3, %v382_v48, %v384_v52 }
  0xaa   : > { %981 = vrot.lane.b32.xlu0 %v2300_v2, %s2245_s8  ;;  %v391_v55 = vsel %vm387_vm3, %v384_v52, %v386_v53  ;;  %vm1137_vm3 = vcmask 236544  }
  0xab   : > { %977 = vrot.lane.b32.xlu1 %v2296_v1, %s2245_s8  ;;  %1729 = vmatprep.subr.bf16.mxu1 %v391_v55 }
  0xac   : > { %1730 = vmatpush1.bf16.msra.mxu1 %v390_v54  ;;  %v430_v57 = vpop.permute.xlu0 %429 }
  0xad   : > { %v432_v58 = vpop.permute.xlu1 %431 }
  0xae   : > { %983 = vrot.lane.b32.xlu0 %v2303_v3, %s2245_s8  ;;  %v439_v59 = vsel %vm437_vm4, %v430_v57, %v432_v58 }
  0xaf   : > { %985 = vrot.lane.b32.xlu1 %v2179_v56, %s2245_s8  ;;  %1645 = vmatprep.subr.bf16.mxu0 %v439_v59  ;;  %v2185_v56 = vld [vmem:[%s2290_s17 + $0x10] ss:$20 sps:$4 sm:$0xff]  }
  0xb0   : > { %v428_v60 = vpop.permute.xlu0 %427  ;;  %v2459_v59 = vld [vmem:[%s2290_s17 + $0x4] ss:$20 sps:$4 sm:$0xff]  }
  0xb1   : > { %v434_v61 = vpop.permute.xlu1 %433  ;;  %v438_v62 = vsel %vm437_vm4, %v428_v60, %v430_v57 }
  0xb2   : > { %1029 = vrot.lane.b32.xlu0 %v2293_v0, %s2246_s9  ;;  %1646 = vmatpush1.bf16.msra.mxu0 %v438_v62  ;;  %v440_v6 = vsel %vm437_vm4, %v432_v58, %v434_v61  ;;  %v2467_v62 = vld [vmem:[%s2290_s17] ss:$20 sps:$4 sm:$0xff]  }
  0xb3   : > { %1031 = vrot.lane.b32.xlu1 %v2300_v2, %s2246_s9 }
  0xb4   : > { %v436_v63 = vpop.permute.xlu0 %435 }
  0xb5   : > { %v480_v4 = vpop.permute.xlu1 %479  ;;  %v441_v5 = vsel %vm437_vm4, %v434_v61, %v436_v63  ;;  %vm1187_vm4 = vcmask 228352  }
  0xb6   : > { %1027 = vrot.lane.b32.xlu0 %v2296_v1, %s2246_s9  ;;  %1731 = vmatprep.subr.bf16.mxu1 %v441_v5 }
  0xb7   : > { %1033 = vrot.lane.b32.xlu1 %v2303_v3, %s2246_s9  ;;  %1732 = vmatpush1.bf16.msra.mxu1 %v440_v6 }
  0xb8   : > { %v482_v8 = vpop.permute.xlu0 %481 }
  0xb9   : > { %v478_v9 = vpop.permute.xlu1 %477  ;;  %v489_v10 = vsel %vm487_vm5, %v480_v4, %v482_v8 }
  0xba   : > { %1035 = vrot.lane.b32.xlu0 %v2180_v7, %s2246_s9  ;;  %1647 = vmatprep.subr.bf16.mxu0 %v489_v10  ;;  %v488_v11 = vsel %vm487_vm5, %v478_v9, %v480_v4  ;;  %v2192_v7 = vld [vmem:[%s2290_s17 + $0x10] ss:$20 sps:$4 sm:$0xff]  }
  0xbb   : > { %1079 = vrot.lane.b32.xlu1 %v2293_v0, %s2247_s10  ;;  %1648 = vmatpush1.bf16.msra.mxu0 %v488_v11 }
  0xbc   : > { %v484_v12 = vpop.permute.xlu0 %483 }
  0xbd   : > { %v486_v13 = vpop.permute.xlu1 %485  ;;  %v490_v14 = vsel %vm487_vm5, %v482_v8, %v484_v12 }
  0xbe   : > { %1081 = vrot.lane.b32.xlu0 %v2300_v2, %s2247_s10  ;;  %v491_v15 = vsel %vm487_vm5, %v484_v12, %v486_v13  ;;  %vm1237_vm5 = vcmask 187392  }
  0xbf   : > { %1077 = vrot.lane.b32.xlu1 %v2296_v1, %s2247_s10  ;;  %1733 = vmatprep.subr.bf16.mxu1 %v491_v15 }
  0xc0   : > { %1734 = vmatpush1.bf16.msra.mxu1 %v490_v14  ;;  %v530_v17 = vpop.permute.xlu0 %529 }
  0xc1   : > { %v532_v18 = vpop.permute.xlu1 %531 }
  0xc2   : > { %1083 = vrot.lane.b32.xlu0 %v2303_v3, %s2247_s10  ;;  %v539_v19 = vsel %vm537_vm6, %v530_v17, %v532_v18 }
  0xc3   : > { %1085 = vrot.lane.b32.xlu1 %v2181_v16, %s2247_s10  ;;  %1649 = vmatprep.subr.bf16.mxu0 %v539_v19  ;;  %v2193_v16 = vld [vmem:[%s2290_s17 + $0x10] ss:$20 sps:$4 sm:$0xff]  }
  0xc4   : > { %v528_v20 = vpop.permute.xlu0 %527 }
  0xc5   : > { %v534_v21 = vpop.permute.xlu1 %533  ;;  %v538_v22 = vsel %vm537_vm6, %v528_v20, %v530_v17 }
  0xc6   : > { %1129 = vrot.lane.b32.xlu0 %v2293_v0, %s2248_s11  ;;  %1650 = vmatpush1.bf16.msra.mxu0 %v538_v22  ;;  %v540_v26 = vsel %vm537_vm6, %v532_v18, %v534_v21 }
  0xc7   : > { %1131 = vrot.lane.b32.xlu1 %v2300_v2, %s2248_s11 }
  0xc8   : > { %v536_v23 = vpop.permute.xlu0 %535 }
  0xc9   : > { %v580_v24 = vpop.permute.xlu1 %579  ;;  %v541_v25 = vsel %vm537_vm6, %v534_v21, %v536_v23  ;;  %vm1287_vm6 = vcmask 179200  }
  0xca   : > { %1127 = vrot.lane.b32.xlu0 %v2296_v1, %s2248_s11  ;;  %1735 = vmatprep.subr.bf16.mxu1 %v541_v25 }
  0xcb   : > { %1133 = vrot.lane.b32.xlu1 %v2303_v3, %s2248_s11  ;;  %1736 = vmatpush1.bf16.msra.mxu1 %v540_v26 }
  0xcc   : > { %v582_v28 = vpop.permute.xlu0 %581 }
  0xcd   : > { %v578_v29 = vpop.permute.xlu1 %577  ;;  %v589_v30 = vsel %vm587_vm7, %v580_v24, %v582_v28 }
  0xce   : > { %1135 = vrot.lane.b32.xlu0 %v2182_v27, %s2248_s11  ;;  %1651 = vmatprep.subr.bf16.mxu0 %v589_v30  ;;  %v588_v31 = vsel %vm587_vm7, %v578_v29, %v580_v24  ;;  %v2194_v27 = vld [vmem:[%s2290_s17 + $0x10] ss:$20 sps:$4 sm:$0xff]  }
  0xcf   : > { %1179 = vrot.lane.b32.xlu1 %v2293_v0, %s2249_s14  ;;  %1652 = vmatpush1.bf16.msra.mxu0 %v588_v31 }
  0xd0   : > { %v584_v32 = vpop.permute.xlu0 %583 }
  0xd1   : > { %v586_v33 = vpop.permute.xlu1 %585  ;;  %v590_v34 = vsel %vm587_vm7, %v582_v28, %v584_v32 }
  0xd2   : > { %1181 = vrot.lane.b32.xlu0 %v2300_v2, %s2249_s14  ;;  %v591_v35 = vsel %vm587_vm7, %v584_v32, %v586_v33  ;;  %vm1337_vm7 = vcmask 171008  }
  0xd3   : > { %1177 = vrot.lane.b32.xlu1 %v2296_v1, %s2249_s14  ;;  %1737 = vmatprep.subr.bf16.mxu1 %v591_v35 }
  0xd4   : > { %1738 = vmatpush1.bf16.msra.mxu1 %v590_v34  ;;  %v630_v37 = vpop.permute.xlu0 %629 }
  0xd5   : > { %v632_v38 = vpop.permute.xlu1 %631 }
  0xd6   : > { %1183 = vrot.lane.b32.xlu0 %v2303_v3, %s2249_s14  ;;  %v639_v39 = vsel %vm637_vm8, %v630_v37, %v632_v38 }
  0xd7   : > { %1185 = vrot.lane.b32.xlu1 %v2183_v36, %s2249_s14  ;;  %1653 = vmatprep.subr.bf16.mxu0 %v639_v39  ;;  %v2195_v36 = vld [vmem:[%s2290_s17 + $0x10] ss:$20 sps:$4 sm:$0xff]  }
  0xd8   : > { %v628_v40 = vpop.permute.xlu0 %627 }
  0xd9   : > { %v634_v41 = vpop.permute.xlu1 %633  ;;  %v638_v42 = vsel %vm637_vm8, %v628_v40, %v630_v37 }
  0xda   : > { %1229 = vrot.lane.b32.xlu0 %v2293_v0, %s2250_s15  ;;  %1654 = vmatpush1.bf16.msra.mxu0 %v638_v42  ;;  %v640_v46 = vsel %vm637_vm8, %v632_v38, %v634_v41 }
  0xdb   : > { %1231 = vrot.lane.b32.xlu1 %v2300_v2, %s2250_s15 }
  0xdc   : > { %v636_v43 = vpop.permute.xlu0 %635 }
  0xdd   : > { %v680_v44 = vpop.permute.xlu1 %679  ;;  %v641_v45 = vsel %vm637_vm8, %v634_v41, %v636_v43  ;;  %v2196_v43 = vld [vmem:[%s2547_s1] ss:$16 sps:$4 sm:$0xff]   ;;  %vm1387_vm8 = vcmask 130048  }
  0xde   : > { %1227 = vrot.lane.b32.xlu0 %v2296_v1, %s2250_s15  ;;  %1739 = vmatprep.subr.bf16.mxu1 %v641_v45 }
  0xdf   : > { %1233 = vrot.lane.b32.xlu1 %v2303_v3, %s2250_s15  ;;  %1740 = vmatpush1.bf16.msra.mxu1 %v640_v46 }
  0xe0   : > { %v682_v48 = vpop.permute.xlu0 %681 }
  0xe1   : > { %v678_v49 = vpop.permute.xlu1 %677  ;;  %v689_v50 = vsel %vm687_vm9, %v680_v44, %v682_v48 }
  0xe2   : > { %1235 = vrot.lane.b32.xlu0 %v2184_v47, %s2250_s15  ;;  %1655 = vmatprep.subr.bf16.mxu0 %v689_v50  ;;  %v688_v51 = vsel %vm687_vm9, %v678_v49, %v680_v44  ;;  %v2199_v44 = vld [vmem:[%s2547_s1 + $0xc] ss:$16 sps:$4 sm:$0xff]  }
  0xe3   : > { %1279 = vrot.lane.b32.xlu1 %v2293_v0, %s2251_s16  ;;  %1656 = vmatpush1.bf16.msra.mxu0 %v688_v51 }
  0xe4   : > { %v684_v52 = vpop.permute.xlu0 %683 }
  0xe5   : > { %v686_v53 = vpop.permute.xlu1 %685  ;;  %v690_v54 = vsel %vm687_vm9, %v682_v48, %v684_v52 }
  0xe6   : > { %1281 = vrot.lane.b32.xlu0 %v2300_v2, %s2251_s16  ;;  %v691_v55 = vsel %vm687_vm9, %v684_v52, %v686_v53  ;;  %v2462_v2 = vld [vmem:[%s2290_s17 + $0x8] ss:$20 sps:$4 sm:$0xff]   ;;  %vm1437_vm9 = vcmask 121856  }
  0xe7   : > { %1277 = vrot.lane.b32.xlu1 %v2296_v1, %s2251_s16  ;;  %1741 = vmatprep.subr.bf16.mxu1 %v691_v55 }
  0xe8   : > { %1742 = vmatpush1.bf16.msra.mxu1 %v690_v54  ;;  %v730_v57 = vpop.permute.xlu0 %729 }
  0xe9   : > { %v732_v0 = vpop.permute.xlu1 %731 }
  0xea   : > { %1283 = vrot.lane.b32.xlu0 %v2303_v3, %s2251_s16  ;;  %v739_v58 = vsel %vm737_vm10, %v730_v57, %v732_v0  ;;  %v2471_v3 = vld [vmem:[%s2290_s17 + $0xc] ss:$20 sps:$4 sm:$0xff]  }
  0xeb   : > { %1285 = vrot.lane.b32.xlu1 %v2185_v56, %s2251_s16  ;;  %1657 = vmatprep.subr.bf16.mxu0 %v739_v58 }
  0xec   : > { %v728_v1 = vpop.permute.xlu0 %727 }
  0xed   : > { %v734_v60 = vpop.permute.xlu1 %733  ;;  %v738_v61 = vsel %vm737_vm10, %v728_v1, %v730_v57 }
  0xee   : > { %1329 = vrot.lane.b32.xlu0 %v2459_v59, %s2252_s18  ;;  %1658 = vmatpush1.bf16.msra.mxu0 %v738_v61  ;;  %v740_v6 = vsel %vm737_vm10, %v732_v0, %v734_v60 }
  0xef   : > { %1331 = vrot.lane.b32.xlu1 %v2462_v2, %s2252_s18 }
  0xf0   : > { %v736_v63 = vpop.permute.xlu0 %735 }
  0xf1   : > { %v780_v4 = vpop.permute.xlu1 %779  ;;  %v741_v5 = vsel %vm737_vm10, %v734_v60, %v736_v63  ;;  %vm1487_vm10 = vcmask 113664  }
  0xf2   : > { %1327 = vrot.lane.b32.xlu0 %v2467_v62, %s2252_s18  ;;  %1743 = vmatprep.subr.bf16.mxu1 %v741_v5 }
  0xf3   : > { %1333 = vrot.lane.b32.xlu1 %v2471_v3, %s2252_s18  ;;  %1744 = vmatpush1.bf16.msra.mxu1 %v740_v6 }
  0xf4   : > { %v782_v8 = vpop.permute.xlu0 %781 }
  0xf5   : > { %v778_v9 = vpop.permute.xlu1 %777  ;;  %v789_v10 = vsel %vm787_vm11, %v780_v4, %v782_v8 }
  0xf6   : > { %1335 = vrot.lane.b32.xlu0 %v2192_v7, %s2252_s18  ;;  %1659 = vmatprep.subr.bf16.mxu0 %v789_v10  ;;  %v788_v11 = vsel %vm787_vm11, %v778_v9, %v780_v4 }
  0xf7   : > { %1379 = vrot.lane.b32.xlu1 %v2459_v59, %s2253_s19  ;;  %1660 = vmatpush1.bf16.msra.mxu0 %v788_v11 }
  0xf8   : > { %v784_v12 = vpop.permute.xlu0 %783 }
  0xf9   : > { %v786_v13 = vpop.permute.xlu1 %785  ;;  %v790_v14 = vsel %vm787_vm11, %v782_v8, %v784_v12 }
  0xfa   : > { %1381 = vrot.lane.b32.xlu0 %v2462_v2, %s2253_s19  ;;  %v791_v15 = vsel %vm787_vm11, %v784_v12, %v786_v13 }
  0xfb   : > { %1377 = vrot.lane.b32.xlu1 %v2467_v62, %s2253_s19  ;;  %1745 = vmatprep.subr.bf16.mxu1 %v791_v15 }
  0xfc   : > { %1746 = vmatpush1.bf16.msra.mxu1 %v790_v14  ;;  %v830_v17 = vpop.permute.xlu0 %829 }
  0xfd   : > { %v832_v18 = vpop.permute.xlu1 %831 }
  0xfe   : > { %1383 = vrot.lane.b32.xlu0 %v2471_v3, %s2253_s19  ;;  %v839_v19 = vsel %vm837_vm12, %v830_v17, %v832_v18 }
  0xff   : > { %1385 = vrot.lane.b32.xlu1 %v2193_v16, %s2253_s19  ;;  %1661 = vmatprep.subr.bf16.mxu0 %v839_v19 }
 0x100   : > { %v828_v20 = vpop.permute.xlu0 %827 }
 0x101   : > { %v834_v21 = vpop.permute.xlu1 %833  ;;  %v838_v22 = vsel %vm837_vm12, %v828_v20, %v830_v17 }
 0x102   : > { %1429 = vrot.lane.b32.xlu0 %v2459_v59, %s2254_s20  ;;  %1662 = vmatpush1.bf16.msra.mxu0 %v838_v22  ;;  %v840_v26 = vsel %vm837_vm12, %v832_v18, %v834_v21 }
 0x103   : > { %1431 = vrot.lane.b32.xlu1 %v2462_v2, %s2254_s20 }
 0x104   : > { %v836_v23 = vpop.permute.xlu0 %835 }
 0x105   : > { %v880_v24 = vpop.permute.xlu1 %879  ;;  %v841_v25 = vsel %vm837_vm12, %v834_v21, %v836_v23 }
 0x106   : > { %1427 = vrot.lane.b32.xlu0 %v2467_v62, %s2254_s20  ;;  %1747 = vmatprep.subr.bf16.mxu1 %v841_v25 }
 0x107   : > { %1433 = vrot.lane.b32.xlu1 %v2471_v3, %s2254_s20  ;;  %1748 = vmatpush1.bf16.msra.mxu1 %v840_v26 }
 0x108   : > { %v882_v28 = vpop.permute.xlu0 %881 }
 0x109   : > { %v878_v29 = vpop.permute.xlu1 %877  ;;  %v889_v30 = vsel %vm887_vm13, %v880_v24, %v882_v28 }
 0x10a   : > { %1435 = vrot.lane.b32.xlu0 %v2194_v27, %s2254_s20  ;;  %1663 = vmatprep.subr.bf16.mxu0 %v889_v30  ;;  %v888_v31 = vsel %vm887_vm13, %v878_v29, %v880_v24 }
 0x10b   : > { %1479 = vrot.lane.b32.xlu1 %v2459_v59, %s2255_s21  ;;  %1664 = vmatpush1.bf16.msra.mxu0 %v888_v31 }
 0x10c   : > { %v884_v32 = vpop.permute.xlu0 %883 }
 0x10d   : > { %v886_v33 = vpop.permute.xlu1 %885  ;;  %v890_v34 = vsel %vm887_vm13, %v882_v28, %v884_v32 }
 0x10e   : > { %1481 = vrot.lane.b32.xlu0 %v2462_v2, %s2255_s21  ;;  %v891_v35 = vsel %vm887_vm13, %v884_v32, %v886_v33 }
 0x10f   : > { %1477 = vrot.lane.b32.xlu1 %v2467_v62, %s2255_s21  ;;  %1749 = vmatprep.subr.bf16.mxu1 %v891_v35 }
 0x110   : > { %1750 = vmatpush1.bf16.msra.mxu1 %v890_v34  ;;  %v930_v37 = vpop.permute.xlu0 %929 }
 0x111   : > { %v932_v38 = vpop.permute.xlu1 %931 }
 0x112   : > { %1483 = vrot.lane.b32.xlu0 %v2471_v3, %s2255_s21  ;;  %v939_v39 = vsel %vm937_vm14, %v930_v37, %v932_v38 }
 0x113   : > { %1485 = vrot.lane.b32.xlu1 %v2195_v36, %s2255_s21  ;;  %1665 = vmatprep.subr.bf16.mxu0 %v939_v39 }
 0x114   : > { %v928_v40 = vpop.permute.xlu0 %927 }
 0x115   : > { %v934_v41 = vpop.permute.xlu1 %933  ;;  %v938_v42 = vsel %vm937_vm14, %v928_v40, %v930_v37 }
 0x116   : > { %1666 = vmatpush1.bf16.msra.mxu0 %v938_v42  ;;  %v940_v48 = vsel %vm937_vm14, %v932_v38, %v934_v41 }
 0x118   : > { %v936_v45 = vpop.permute.xlu0 %935 }
 0x119   : > { %v980_v46 = vpop.permute.xlu1 %979  ;;  %v941_v47 = vsel %vm937_vm14, %v934_v41, %v936_v45  ;;  %1668 = vmatmul.mubr.bf16.vlgmr.msra.gmra.mrb[0].mxu0 %v2196_v43 }
 0x11a   : > { %1751 = vmatprep.subr.bf16.mxu1 %v941_v47  ;;  %2110 = vmatprep.mubr.msk.bf16.mxu0 %vm1631_vm15, %v2199_v44 }
 0x11b   : > { %1752 = vmatpush1.bf16.msra.mxu1 %v940_v48 }
 0x11c   : > { %v982_v49 = vpop.permute.xlu0 %981 }
 0x11d   : > { %v978_v50 = vpop.permute.xlu1 %977  ;;  %v989_v51 = vsel %vm987_vm0, %v980_v46, %v982_v49 }
 0x11e   : > { %v988_v52 = vsel %vm987_vm0, %v978_v50, %v980_v46  ;;  %1678 = vmatprep.subr.bf16.mxu0 %v989_v51  ;;  %1754 = vmatmul.mubr.bf16.vlgmr.msra.gmra.mrb[0].mxu1 %v2196_v43 }
 0x11f   : > { %1679 = vmatpush1.bf16.msra.mxu0 %v988_v52  ;;  %2111 = vmatprep.mubr.msk.bf16.mxu1 %vm1631_vm15, %v2199_v44 }
 0x120   : > { %v984_v53 = vpop.permute.xlu0 %983 }
 0x121   : > { %v990_v54 = vsel %vm987_vm0, %v982_v49, %v984_v53  ;;  %v986_v55 = vpop.permute.xlu1 %985 }
 0x122   : > { %v991_v56 = vsel %vm987_vm0, %v984_v53, %v986_v55 }
 0x123   : > { %1764 = vmatprep.subr.bf16.mxu1 %v991_v56 }
 0x124   : > { %1765 = vmatpush1.bf16.msra.mxu1 %v990_v54  ;;  %v1030_v57 = vpop.permute.xlu0 %1029 }
 0x125   : > { %v1032_v0 = vpop.permute.xlu1 %1031 }
 0x126   : > { %v1039_v58 = vsel %vm1037_vm1, %v1030_v57, %v1032_v0 }
 0x127   : > { %1680 = vmatprep.subr.bf16.mxu0 %v1039_v58 }
 0x128   : > { %v1028_v59 = vpop.permute.xlu0 %1027 }
 0x129   : > { %v1038_v2 = vsel %vm1037_vm1, %v1028_v59, %v1030_v57  ;;  %v1034_v1 = vpop.permute.xlu1 %1033 }
 0x12a   : > { %1681 = vmatpush1.bf16.msra.mxu0 %v1038_v2  ;;  %v1040_v3 = vsel %vm1037_vm1, %v1032_v0, %v1034_v1 }
 0x12c   : > { %v1036_v60 = vpop.permute.xlu0 %1035 }
 0x12d   : > { %v1080_v61 = vpop.permute.xlu1 %1079  ;;  %v1041_v62 = vsel %vm1037_vm1, %v1034_v1, %v1036_v60 }
 0x12e   : > { %1766 = vmatprep.subr.bf16.mxu1 %v1041_v62 }
 0x12f   : > { %1767 = vmatpush1.bf16.msra.mxu1 %v1040_v3 }
 0x130   : > { %v1082_v63 = vpop.permute.xlu0 %1081 }
 0x131   : > { %v1078_v4 = vpop.permute.xlu1 %1077  ;;  %v1089_v5 = vsel %vm1087_vm2, %v1080_v61, %v1082_v63 }
 0x132   : > { %v1088_v6 = vsel %vm1087_vm2, %v1078_v4, %v1080_v61  ;;  %1682 = vmatprep.subr.bf16.mxu0 %v1089_v5 }
 0x133   : > { %1683 = vmatpush1.bf16.msra.mxu0 %v1088_v6 }
 0x134   : > { %v1084_v7 = vpop.permute.xlu0 %1083 }
 0x135   : > { %v1090_v8 = vsel %vm1087_vm2, %v1082_v63, %v1084_v7  ;;  %v1086_v9 = vpop.permute.xlu1 %1085 }
 0x136   : > { %v1091_v10 = vsel %vm1087_vm2, %v1084_v7, %v1086_v9 }
 0x137   : > { %1768 = vmatprep.subr.bf16.mxu1 %v1091_v10 }
 0x138   : > { %1769 = vmatpush1.bf16.msra.mxu1 %v1090_v8  ;;  %v1130_v11 = vpop.permute.xlu0 %1129 }
 0x139   : > { %v1132_v12 = vpop.permute.xlu1 %1131 }
 0x13a   : > { %v1139_v13 = vsel %vm1137_vm3, %v1130_v11, %v1132_v12 }
 0x13b   : > { %1684 = vmatprep.subr.bf16.mxu0 %v1139_v13 }
 0x13c   : > { %v1128_v14 = vpop.permute.xlu0 %1127 }
 0x13d   : > { %v1138_v15 = vsel %vm1137_vm3, %v1128_v14, %v1130_v11  ;;  %v1134_v16 = vpop.permute.xlu1 %1133 }
 0x13e   : > { %1685 = vmatpush1.bf16.msra.mxu0 %v1138_v15  ;;  %v1140_v20 = vsel %vm1137_vm3, %v1132_v12, %v1134_v16  ;;  %v2201_v15 = vld [vmem:[%s2547_s1 + $0x8] ss:$16 sps:$4 sm:$0xff]  }
 0x140   : > { %v1136_v17 = vpop.permute.xlu0 %1135 }
 0x141   : > { %v1180_v18 = vpop.permute.xlu1 %1179  ;;  %v1141_v19 = vsel %vm1137_vm3, %v1134_v16, %v1136_v17 }
 0x142   : > { %1770 = vmatprep.subr.bf16.mxu1 %v1141_v19 }
 0x143   : > { %1771 = vmatpush1.bf16.msra.mxu1 %v1140_v20  ;;  %v1817_v20 = vlaneseq }
 0x144   : > { %v1182_v21 = vpop.permute.xlu0 %1181 }
 0x145   : > { %v1178_v22 = vpop.permute.xlu1 %1177  ;;  %v1189_v23 = vsel %vm1187_vm4, %v1180_v18, %v1182_v21 }
 0x146   : > { %v1188_v24 = vsel %vm1187_vm4, %v1178_v22, %v1180_v18  ;;  %1686 = vmatprep.subr.bf16.mxu0 %v1189_v23  ;;  %v1818_v22 = vshrl.u32 %v1817_v20, 7 }
 0x147   : > { %1687 = vmatpush1.bf16.msra.mxu0 %v1188_v24 }
 0x148   : > { %v1184_v25 = vpop.permute.xlu0 %1183 }
 0x149   : > { %v1190_v26 = vsel %vm1187_vm4, %v1182_v21, %v1184_v25  ;;  %v1186_v27 = vpop.permute.xlu1 %1185 }
 0x14a   : > { %v1191_v28 = vsel %vm1187_vm4, %v1184_v25, %v1186_v27 }
 0x14b   : > { %1772 = vmatprep.subr.bf16.mxu1 %v1191_v28  ;;  %v1815_v28 = vld [vmem:[%s2548_s2] sm:$0xf] }
 0x14c   : > { %1773 = vmatpush1.bf16.msra.mxu1 %v1190_v26  ;;  %v1230_v29 = vpop.permute.xlu0 %1229  ;;  %v1819_v26 = vsub.s32 0, %v1818_v22 }
 0x14d   : > { %v1232_v30 = vpop.permute.xlu1 %1231 }
 0x14e   : > { %v1239_v31 = vsel %vm1237_vm5, %v1230_v29, %v1232_v30 }
 0x14f   : > { %1688 = vmatprep.subr.bf16.mxu0 %v1239_v31 }
 0x150   : > { %v1228_v32 = vpop.permute.xlu0 %1227 }
 0x151   : > { %v1238_v33 = vsel %vm1237_vm5, %v1228_v32, %v1230_v29  ;;  %v1234_v34 = vpop.permute.xlu1 %1233  ;;  %v1823_v29 = vsub.s32 1, %v1818_v22 }
 0x152   : > { %1689 = vmatpush1.bf16.msra.mxu0 %v1238_v33  ;;  %v1240_v38 = vsel %vm1237_vm5, %v1232_v30, %v1234_v34  ;;  %v1820_v33 = vrot.slane %v1815_v28, %v1819_v26 }
 0x154   : > { %v1236_v35 = vpop.permute.xlu0 %1235 }
 0x155   : > { %v1280_v36 = vpop.permute.xlu1 %1279  ;;  %v1241_v37 = vsel %vm1237_vm5, %v1234_v34, %v1236_v35  ;;  %v1824_v34 = vrot.slane %v1815_v28, %v1823_v29  ;;  %v1827_v35 = vsub.s32 2, %v1818_v22 }
 0x156   : > { %1774 = vmatprep.subr.bf16.mxu1 %v1241_v37 }
 0x157   : > { %1775 = vmatpush1.bf16.msra.mxu1 %v1240_v38 }
 0x158   : > { %v1282_v39 = vpop.permute.xlu0 %1281 }
 0x159   : > { %v1278_v40 = vpop.permute.xlu1 %1277  ;;  %v1289_v41 = vsel %vm1287_vm6, %v1280_v36, %v1282_v39 }
 0x15a   : > { %v1288_v42 = vsel %vm1287_vm6, %v1278_v40, %v1280_v36  ;;  %1690 = vmatprep.subr.bf16.mxu0 %v1289_v41  ;;  %v1831_v36 = vsub.s32 3, %v1818_v22  ;;  %v1828_v41 = vrot.slane %v1815_v28, %v1827_v35 }
 0x15b   : > { %1691 = vmatpush1.bf16.msra.mxu0 %v1288_v42 }
 0x15c   : > { %v1284_v43 = vpop.permute.xlu0 %1283 }
 0x15d   : > { %v1290_v44 = vsel %vm1287_vm6, %v1282_v39, %v1284_v43  ;;  %v1286_v45 = vpop.permute.xlu1 %1285 }
 0x15e   : > { %v1291_v46 = vsel %vm1287_vm6, %v1284_v43, %v1286_v45 }
 0x15f   : > { %1776 = vmatprep.subr.bf16.mxu1 %v1291_v46 }
 0x160   : > { %1777 = vmatpush1.bf16.msra.mxu1 %v1290_v44  ;;  %v1330_v47 = vpop.permute.xlu0 %1329  ;;  %v1832_v44 = vrot.slane %v1815_v28, %v1831_v36 }
 0x161   : > { %v1332_v48 = vpop.permute.xlu1 %1331 }
 0x162   : > { %v1339_v49 = vsel %vm1337_vm7, %v1330_v47, %v1332_v48 }
 0x163   : > { %1692 = vmatprep.subr.bf16.mxu0 %v1339_v49 }
 0x164   : > { %v1328_v50 = vpop.permute.xlu0 %1327 }
 0x165   : > { %v1338_v51 = vsel %vm1337_vm7, %v1328_v50, %v1330_v47  ;;  %v1334_v52 = vpop.permute.xlu1 %1333 }
 0x166   : > { %1693 = vmatpush1.bf16.msra.mxu0 %v1338_v51  ;;  %v1340_v56 = vsel %vm1337_vm7, %v1332_v48, %v1334_v52 }
 0x168   : > { %v1336_v53 = vpop.permute.xlu0 %1335 }
 0x169   : > { %v1380_v54 = vpop.permute.xlu1 %1379  ;;  %v1341_v55 = vsel %vm1337_vm7, %v1334_v52, %v1336_v53 }
 0x16a   : > { %1778 = vmatprep.subr.bf16.mxu1 %v1341_v55 }
 0x16b   : > { %1779 = vmatpush1.bf16.msra.mxu1 %v1340_v56 }
 0x16c   : > { %v1382_v57 = vpop.permute.xlu0 %1381 }
 0x16d   : > { %v1378_v0 = vpop.permute.xlu1 %1377  ;;  %v1389_v58 = vsel %vm1387_vm8, %v1380_v54, %v1382_v57 }
 0x16e   : > { %v1388_v59 = vsel %vm1387_vm8, %v1378_v0, %v1380_v54  ;;  %1694 = vmatprep.subr.bf16.mxu0 %v1389_v58 }
 0x16f   : > { %1695 = vmatpush1.bf16.msra.mxu0 %v1388_v59 }
 0x170   : > { %v1384_v2 = vpop.permute.xlu0 %1383 }
 0x171   : > { %v1390_v1 = vsel %vm1387_vm8, %v1382_v57, %v1384_v2  ;;  %v1386_v60 = vpop.permute.xlu1 %1385 }
 0x172   : > { %v1391_v61 = vsel %vm1387_vm8, %v1384_v2, %v1386_v60 }
 0x173   : > { %1780 = vmatprep.subr.bf16.mxu1 %v1391_v61 }
 0x174   : > { %1781 = vmatpush1.bf16.msra.mxu1 %v1390_v1  ;;  %v1430_v62 = vpop.permute.xlu0 %1429 }
 0x175   : > { %v1432_v3 = vpop.permute.xlu1 %1431 }
 0x176   : > { %v1439_v63 = vsel %vm1437_vm9, %v1430_v62, %v1432_v3 }
 0x177   : > { %1696 = vmatprep.subr.bf16.mxu0 %v1439_v63 }
 0x178   : > { %v1428_v4 = vpop.permute.xlu0 %1427 }
 0x179   : > { %v1438_v5 = vsel %vm1437_vm9, %v1428_v4, %v1430_v62  ;;  %v1434_v6 = vpop.permute.xlu1 %1433 }
 0x17a   : > { %1697 = vmatpush1.bf16.msra.mxu0 %v1438_v5  ;;  %v1440_v10 = vsel %vm1437_vm9, %v1432_v3, %v1434_v6 }
 0x17c   : > { %v1436_v7 = vpop.permute.xlu0 %1435 }
 0x17d   : > { %v1480_v8 = vpop.permute.xlu1 %1479  ;;  %v1441_v9 = vsel %vm1437_vm9, %v1434_v6, %v1436_v7 }
 0x17e   : > { %1782 = vmatprep.subr.bf16.mxu1 %v1441_v9 }
 0x17f   : > { %1783 = vmatpush1.bf16.msra.mxu1 %v1440_v10 }
 0x180   : > { %v1482_v11 = vpop.permute.xlu0 %1481 }
 0x181   : > { %v1478_v12 = vpop.permute.xlu1 %1477  ;;  %v1489_v13 = vsel %vm1487_vm10, %v1480_v8, %v1482_v11 }
 0x182   : > { %v1488_v14 = vsel %vm1487_vm10, %v1478_v12, %v1480_v8  ;;  %1698 = vmatprep.subr.bf16.mxu0 %v1489_v13 }
 0x183   : > { %1699 = vmatpush1.bf16.msra.mxu0 %v1488_v14 }
 0x184   : > { %v1484_v16 = vpop.permute.xlu0 %1483 }
 0x185   : > { %v1490_v17 = vsel %vm1487_vm10, %v1482_v11, %v1484_v16  ;;  %v1486_v18 = vpop.permute.xlu1 %1485 }
 0x186   : > { %1711 = vmatmul.mubr.bf16.vlgmr.msra.gmra.mrb[0].mxu0 %v2201_v15  ;;  %v1491_v19 = vsel %vm1487_vm10, %v1484_v16, %v1486_v18 }
 0x187   : > { %1784 = vmatprep.subr.bf16.mxu1 %v1491_v19 }
 0x188   : > { %1785 = vmatpush1.bf16.msra.mxu1 %v1490_v17 }
 0x18b   : > { %1797 = vmatmul.mubr.bf16.vlgmr.msra.gmra.mrb[0].mxu1 %v2201_v15 }
 0x259   : > { %v1712_v21 = vpop.f32.mrb[0].mxu0 }
 0x25a   : > { %2202 = vtanh.f32 %v1712_v21  ;;  %v1714_v23 = vpop.f32.mrb[1].mxu0 }
 0x25b   : > { %2204 = vtanh.f32 %v1714_v23  ;;  %v1716_v24 = vpop.f32.mrb[2].mxu0 }
 0x25c   : > { %2206 = vtanh.f32 %v1716_v24  ;;  %v1718_v25 = vpop.f32.mrb[3].mxu0 }
 0x25d   : > { %2208 = vtanh.f32 %v1718_v25 }
 0x25e   : > { %v1798_v27 = vpop.f32.mrb[0].mxu1 }
 0x25f   : > { %2210 = vtanh.f32 %v1798_v27  ;;  %v1800_v30 = vpop.f32.mrb[1].mxu1 }
 0x260   : > { %2212 = vtanh.f32 %v1800_v30  ;;  %v1802_v31 = vpop.f32.mrb[2].mxu1 }
 0x261   : > { %2214 = vtanh.f32 %v1802_v31  ;;  %v1804_v32 = vpop.f32.mrb[3].mxu1 }
 0x262   : > { %2216 = vtanh.f32 %v1804_v32 }
 0x264   : > { %v2523_v37 = vpop.eup %2202 }
 0x265   : > { %v2525_v38 = vpop.eup %2204  ;;  %v1837_v39 = vmul.f32 %v2523_v37, %v1820_v33 }
 0x266   : > { %v2528_v40 = vpop.eup %2206  ;;  %v1838_v42 = vmul.f32 %v2525_v38, %v1824_v34 }
 0x267   : > { %v2531_v43 = vpop.eup %2208  ;;  %v1841_v45 = vmul.f32 %v2528_v40, %v1820_v33  ;;  %v1857_v46 = vmul.f32 %v1837_v39, %v1837_v39 }
 0x268   : > { %v1845_v47 = vadd.f32 %v1838_v42, %v1837_v39  ;;  %v1842_v48 = vmul.f32 %v2531_v43, %v1824_v34  ;;  %v1858_v49 = vmul.f32 %v1838_v42, %v1838_v42 }
 0x269   : > { %v2211_v50 = vpop.eup %2210  ;;  %v1861_v51 = vmul.f32 %v1841_v45, %v1841_v45 }
 0x26a   : > { %v2213_v52 = vpop.eup %2212  ;;  %v1839_v53 = vmul.f32 %v2211_v50, %v1828_v41  ;;  %v1850_v54 = vadd.f32 %v1842_v48, %v1841_v45  ;;  %v1865_v55 = vadd.f32 %v1858_v49, %v1857_v46  ;;  %v1862_v56 = vmul.f32 %v1842_v48, %v1842_v48 }
 0x26b   : > { %v2215_v57 = vpop.eup %2214  ;;  %v1840_v0 = vmul.f32 %v2213_v52, %v1832_v44 }
 0x26c   : > { %v2217_v58 = vpop.eup %2216  ;;  %v1846_v59 = vadd.f32 %v1845_v47, %v1839_v53  ;;  %v1843_v2 = vmul.f32 %v2215_v57, %v1828_v41  ;;  %v1859_v1 = vmul.f32 %v1839_v53, %v1839_v53  ;;  %v1870_v62 = vadd.f32 %v1862_v56, %v1861_v51 }
 0x26d   : > { %v1844_v60 = vmul.f32 %v2217_v58, %v1832_v44  ;;  %v1860_v61 = vmul.f32 %v1840_v0, %v1840_v0 }
 0x26e   : > { %v1847_v3 = vadd.f32 %v1846_v59, %v1840_v0  ;;  %v1851_v63 = vadd.f32 %v1850_v54, %v1843_v2  ;;  %v1866_v4 = vadd.f32 %v1865_v55, %v1859_v1  ;;  %v1863_v5 = vmul.f32 %v1843_v2, %v1843_v2 }
 0x26f   : > { %v1864_v8 = vmul.f32 %v1844_v60, %v1844_v60 }
 0x270   : > { %1848 = vadd.xlane.f32.xlu0 %v1847_v3  ;;  %v1852_v6 = vadd.f32 %v1851_v63, %v1844_v60  ;;  %v1867_v7 = vadd.f32 %v1866_v4, %v1860_v61  ;;  %v1871_v9 = vadd.f32 %v1870_v62, %v1863_v5 }
 0x272   : > { %1853 = vadd.xlane.f32.xlu1 %v1852_v6  ;;  %v1872_v10 = vadd.f32 %v1871_v9, %v1864_v8 }
 0x274   : > { %1868 = vadd.xlane.f32.xlu0 %v1867_v7 }
 0x278   : > { %1873 = vadd.xlane.f32.xlu0 %v1872_v10 }
 0x2fd   : > { %v1849_v11 = vpop.xlane.xlu0 %1848 }
 0x2fe   : > { %v1855_v12 = vmul.f32 0.005, %v1849_v11 }
 0x2ff   : > { %v1854_v13 = vpop.xlane.xlu1 %1853 }
 0x300   : > { %v1856_v15 = vmul.f32 0.005, %v1854_v13  ;;  %v1877_v16 = vmul.f32 %v1855_v12, %v1855_v12  ;;  %v1881_v25 = vsub.f32 %v2523_v37, %v1855_v12  ;;  %v1882_v26 = vsub.f32 %v2525_v38, %v1855_v12 }
 0x301   : > { %v1869_v14 = vpop.xlane.xlu0 %1868  ;;  %v1883_v27 = vsub.f32 %v2211_v50, %v1855_v12  ;;  %v1884_v28 = vsub.f32 %v2213_v52, %v1855_v12 }
 0x302   : > { %v1875_v17 = vmul.f32 0.005, %v1869_v14  ;;  %v1878_v22 = vmul.f32 %v1856_v15, %v1856_v15  ;;  %v1885_v34 = vsub.f32 %v2528_v40, %v1856_v15  ;;  %v1886_v35 = vsub.f32 %v2531_v43, %v1856_v15 }
 0x303   : > { %v1887_v36 = vsub.f32 %v2215_v57, %v1856_v15  ;;  %v1888_v39 = vsub.f32 %v2217_v58, %v1856_v15 }
 0x304   : > { %v1879_v18 = vsub.f32 %v1875_v17, %v1877_v16 }
 0x305   : > { %v1874_v19 = vpop.xlane.xlu0 %1873 }
 0x306   : > { %v1889_v20 = vadd.f32 1e-05, %v1879_v18  ;;  %v1876_v21 = vmul.f32 0.005, %v1874_v19 }
 0x308   : > { %2218 = vrsqrt.f32 %v1889_v20  ;;  %v1880_v23 = vsub.f32 %v1876_v21, %v1878_v22 }
 0x30a   : > { %v1890_v24 = vadd.f32 1e-05, %v1880_v23 }
 0x30c   : > { %2220 = vrsqrt.f32 %v1890_v24 }
 0x312   : > { %v2219_v29 = vpop.eup %2218 }
 0x313   : > { %v1893_v30 = vmul.f32 %v2219_v29, %v1881_v25  ;;  %v1894_v31 = vmul.f32 %v2219_v29, %v1882_v26  ;;  %v1895_v32 = vmul.f32 %v2219_v29, %v1883_v27  ;;  %v1896_v33 = vmul.f32 %v2219_v29, %v1884_v28 }
 0x315   : > { %1901 = vst [vmem:[%s170_s5] sm:$0xff] %v1893_v30  ;;  %1902 = vst [vmem:[%s170_s5 + $0x8] sm:$0xff] %v1894_v31 }
 0x316   : > { %1903 = vst [vmem:[%s170_s5 + $0x10] sm:$0xff] %v1895_v32  ;;  %1904 = vst [vmem:[%s170_s5 + $0x18] sm:$0xff] %v1896_v33  ;;  %v2221_v37 = vpop.eup %2220 }
 0x317   : > { %v1897_v38 = vmul.f32 %v2221_v37, %v1885_v34  ;;  %v1898_v41 = vmul.f32 %v2221_v37, %v1886_v35  ;;  %v1899_v42 = vmul.f32 %v2221_v37, %v1887_v36  ;;  %v1900_v44 = vmul.f32 %v2221_v37, %v1888_v39 }
 0x319   : > { %1905 = vst [vmem:[%s170_s5 + $0x20] sm:$0xff] %v1897_v38  ;;  %1906 = vst [vmem:[%s170_s5 + $0x28] sm:$0xff] %v1898_v41 }
 0x31a   : > { %1907 = vst [vmem:[%s170_s5 + $0x30] sm:$0xff] %v1899_v42  ;;  %1908 = vst [vmem:[%s170_s5 + $0x38] sm:$0xff] %v1900_v44 }
 0x31b PF: > { %s13_s12 = sadd.s32 1, %s2228_s12  }
 0x31c   : > { %p10_p4 = scmp.ge.s32.totalorder %s13_s12, 4  }
 0x31e   :  { %12 = sbr.rel (!%p10_p4) target bundleno = 1 (0x1), region = 62 }

// kernel: thermal_bvp_feature_extractor.5
= control target key start
LH: loop header
LB: loop body
LE: loop exit
PB: predicated region body
PF: predicated region fallthrough
CT: control target
= control target key end

     0   :  { %s1484_s12 = smov 0   ;;  %s1612_s0 = inlined_call_operand.vmem [shape: bf16[2,1,16,384], index: 0, kind: input, shape index: {}]   ;;  %s1613_s1 = inlined_call_operand.vmem [shape: bf16[16,432], index: 1, kind: input, shape index: {}]   ;;  %s1614_s2 = inlined_call_operand.vmem [shape: f32[1,256], index: 2, kind: input, shape index: {}]   ;;  %s1615_s3 = inlined_call_operand.vmem [shape: f32[2,16,256], index: 3, kind: output, shape index: {}]  }
   0x1 LB: > { %s1248_s13 = sadd.s32 4294967295, %s1436_s12   ;;  %p1252_p0 = scmp.ge.s32.totalorder %s1436_s12, 1  ;;  %s1436_s12 = sphi %s1484_s12, %s13_s12  }
   0x2   : > { %p137_p1 = scmp.lt.s32.totalorder %s1436_s12, 3 }
   0x4   : > { %p138_p2 = pnand %p1252_p0, %p137_p1 }
   0x5   : > { %p161_p3 = scmp.lt.s32.totalorder (!%p138_p2), %s1248_s13, 1  ;;  %s1438_s18 = smov (!%p138_p2), 127   ;;  %vm209_vm0 = vcmask (!%p138_p2), 1039360   ;;  %vm239_vm1 = vcmask (!%p138_p2), 1031168   ;;  %vm269_vm2 = vcmask (!%p138_p2), 1006592   ;;  %vm299_vm3 = vcmask (!%p138_p2), 998400  }
   0x6   : > { %141 = sbr.rel (%p138_p2) target bundleno = 690 (0x2b2), region = 32  ;;  %s1439_s19 = smov (!%p138_p2), 126   ;;  %vm329_vm4 = vcmask (!%p138_p2), 990208   ;;  %vm659_vm5 = vcmask (!%p138_p2), 752640   ;;  %v1414_v50 = vld [vmem:[%s1613_s1 + $0x4] ss:$16 sps:$4 sm:$0xff] (!%p138_p2)  }
   0x7   : > { %s1440_s20 = smov (!%p138_p2), 123   ;;  %s1441_s21 = smov (!%p138_p2), 122   ;;  %v1417_v52 = vld [vmem:[%s1613_s1 + $0xc] ss:$16 sps:$4 sm:$0xff] (!%p138_p2)   ;;  %vm1043_vm6 = vcmask (!%p138_p2), 392192   ;;  %1079 = vmatprep.mubr.bf16.mxu1 (!%p138_p2), %v1414_v50  ;;  %vm359_vm7 = vcmask (!%p138_p2), 965632  }
   0x8   : > { %s1442_s22 = smov (!%p138_p2), 121   ;;  %s1443_s23 = smov (!%p138_p2), 92   ;;  %1340 = vmatprep.mubr.msk.bf16.mxu0 (!%p138_p2), %vm1043_vm6, %v1417_v52  ;;  %vm689_vm8 = vcmask (!%p138_p2), 744448   ;;  %vm389_vm9 = vcmask (!%p138_p2), 957440   ;;  %vm719_vm10 = vcmask (!%p138_p2), 637952   ;;  %vm419_vm11 = vcmask (!%p138_p2), 949248  }
   0x9   : > { %s1444_s24 = smov (!%p138_p2), 118   ;;  %s1445_s25 = smov (!%p138_p2), 91   ;;  %vm749_vm12 = vcmask (!%p138_p2), 629760   ;;  %vm449_vm13 = vcmask (!%p138_p2), 842752   ;;  %vm779_vm14 = vcmask (!%p138_p2), 621568   ;;  %vm479_vm15 = vcmask (!%p138_p2), 834560  }
   0xa   : > { %s1446_s26 = smov (!%p138_p2), 117   ;;  %s1447_s27 = smov (!%p138_p2), 78   ;;  %vm899_vm6 = vcmask (!%p138_p2), 556032  }
   0xb   : > { %s1448_s28 = smov (!%p138_p2), 116   ;;  %s1449_s29 = smov (!%p138_p2), 77  }
   0xc   : > { %s1450_s30 = smov (!%p138_p2), 103   ;;  %s1451_s4 = smov (!%p138_p2), 76  }
   0xd   : > { %s1617_s13 = smov (!%p161_p3, %s1248_s13), 1  ;;  %s1452_s5 = smov 102  }
   0xe   : > { %s1348_s14 = smul.u32 24, %s1617_s13  ;;  %s1453_s6 = smov 73  }
   0xf   : > { %s1454_s7 = smov 101   ;;  %s1455_s8 = smov 72  }
  0x10   : > { %s1498_s17 = scalar_lea.vmem %s1612_s0, %s1348_s14  ;;  %s1456_s9 = smov 98  }
  0x11   : > { %v1501_v0 = vld [vmem:[%s1498_s17 + $0x4] ss:$12 sps:$4 sm:$0xff]   ;;  %v1504_v1 = vld [vmem:[%s1498_s17] ss:$12 sps:$4 sm:$0xff]   ;;  %v1386_v2 = vld [vmem:[%s1498_s17 + $0x8] ss:$12 sps:$4 sm:$0xff]  }
  0x12   : > { %205 = vrot.lane.b32.xlu0 %v1501_v0, %s1438_s18  ;;  %1047 = vmatprep.subr.bf16.mxu1 %v1501_v0  ;;  %v1387_v3 = vld [vmem:[%s1498_s17 + $0x8] ss:$12 sps:$4 sm:$0xff]   ;;  %s1457_s10 = smov 71   ;;  %s1458_s11 = smov 97  }
  0x13   : > { %203 = vrot.lane.b32.xlu1 %v1504_v1, %s1438_s18  ;;  %1048 = vmatpush1.bf16.msra.mxu1 %v1504_v1  ;;  %v1388_v4 = vld [vmem:[%s1498_s17 + $0x8] ss:$12 sps:$4 sm:$0xff]   ;;  %s1459_s14 = smov 68   ;;  %s1460_s15 = smov 96  }
  0x14   : > { %v1389_v5 = vld [vmem:[%s1498_s17 + $0x8] ss:$12 sps:$4 sm:$0xff]   ;;  %s1461_s16 = smov 67  }
  0x15   : > { %v1390_v6 = vld [vmem:[%s1498_s17 + $0x8] ss:$12 sps:$4 sm:$0xff]  }
  0x16   : > { %207 = vrot.lane.b32.xlu0 %v1386_v2, %s1438_s18  ;;  %v1391_v7 = vld [vmem:[%s1498_s17 + $0x8] ss:$12 sps:$4 sm:$0xff]  }
  0x17   : > { %235 = vrot.lane.b32.xlu1 %v1501_v0, %s1439_s19  ;;  %v1392_v8 = vld [vmem:[%s1498_s17 + $0x8] ss:$12 sps:$4 sm:$0xff]  }
  0x18   : > { %v1393_v9 = vld [vmem:[%s1498_s17 + $0x8] ss:$12 sps:$4 sm:$0xff]  }
  0x19   : > { %v1394_v10 = vld [vmem:[%s1498_s17 + $0x8] ss:$12 sps:$4 sm:$0xff]  }
  0x1a   : > { %237 = vrot.lane.b32.xlu0 %v1387_v3, %s1439_s19  ;;  %v1395_v11 = vld [vmem:[%s1498_s17 + $0x8] ss:$12 sps:$4 sm:$0xff]  }
  0x1b   : > { %233 = vrot.lane.b32.xlu1 %v1504_v1, %s1439_s19  ;;  %v1396_v12 = vld [vmem:[%s1498_s17 + $0x8] ss:$12 sps:$4 sm:$0xff]  }
  0x1c   : > { %v1397_v13 = vld [vmem:[%s1498_s17 + $0x8] ss:$12 sps:$4 sm:$0xff]  }
  0x1d   : > { %v1398_v14 = vld [vmem:[%s1498_s17 + $0x8] ss:$12 sps:$4 sm:$0xff]  }
  0x1e   : > { %265 = vrot.lane.b32.xlu0 %v1501_v0, %s1440_s20  ;;  %v1399_v15 = vld [vmem:[%s1498_s17 + $0x8] ss:$12 sps:$4 sm:$0xff]  }
  0x1f   : > { %267 = vrot.lane.b32.xlu1 %v1388_v4, %s1440_s20  ;;  %v1400_v16 = vld [vmem:[%s1498_s17 + $0x8] ss:$12 sps:$4 sm:$0xff]  }
  0x20   : > { %v1401_v17 = vld [vmem:[%s1498_s17 + $0x8] ss:$12 sps:$4 sm:$0xff]  }
  0x21   : > { %v1402_v18 = vld [vmem:[%s1498_s17 + $0x8] ss:$12 sps:$4 sm:$0xff]  }
  0x22   : > { %263 = vrot.lane.b32.xlu0 %v1504_v1, %s1440_s20  ;;  %v1403_v19 = vld [vmem:[%s1498_s17 + $0x8] ss:$12 sps:$4 sm:$0xff]  }
  0x23   : > { %295 = vrot.lane.b32.xlu1 %v1501_v0, %s1441_s21  ;;  %v1404_v20 = vld [vmem:[%s1498_s17 + $0x8] ss:$12 sps:$4 sm:$0xff]  }
  0x24   : > { %v1405_v21 = vld [vmem:[%s1498_s17 + $0x8] ss:$12 sps:$4 sm:$0xff]  }
  0x25   : > { %v1406_v24 = vld [vmem:[%s1498_s17 + $0x8] ss:$12 sps:$4 sm:$0xff]  }
  0x26   : > { %297 = vrot.lane.b32.xlu0 %v1389_v5, %s1441_s21  ;;  %v1407_v29 = vld [vmem:[%s1498_s17 + $0x8] ss:$12 sps:$4 sm:$0xff]  }
  0x27   : > { %293 = vrot.lane.b32.xlu1 %v1504_v1, %s1441_s21  ;;  %v1408_v37 = vld [vmem:[%s1498_s17 + $0x8] ss:$12 sps:$4 sm:$0xff]  }
  0x28   : > { %v1409_v41 = vld [vmem:[%s1498_s17 + $0x8] ss:$12 sps:$4 sm:$0xff]  }
  0x29   : > { %v1410_v49 = vld [vmem:[%s1498_s17 + $0x8] ss:$12 sps:$4 sm:$0xff]  }
  0x2a   : > { %325 = vrot.lane.b32.xlu0 %v1501_v0, %s1442_s22  ;;  %v1411_v55 = vld [vmem:[%s1498_s17 + $0x8] ss:$12 sps:$4 sm:$0xff]  }
  0x2b   : > { %327 = vrot.lane.b32.xlu1 %v1390_v6, %s1442_s22 }
  0x2e   : > { %655 = vrot.lane.b32.xlu0 %v1501_v0, %s1443_s23 }
  0x2f   : > { %657 = vrot.lane.b32.xlu1 %v1391_v7, %s1443_s23 }
  0x32   : > { %323 = vrot.lane.b32.xlu0 %v1504_v1, %s1442_s22  ;;  %s1462_s22 = smov 93  }
  0x33   : > { %653 = vrot.lane.b32.xlu1 %v1504_v1, %s1443_s23  ;;  %s1463_s23 = smov 66  }
  0x36   : > { %355 = vrot.lane.b32.xlu0 %v1501_v0, %s1444_s24 }
  0x37   : > { %357 = vrot.lane.b32.xlu1 %v1392_v8, %s1444_s24 }
  0x3a   : > { %685 = vrot.lane.b32.xlu0 %v1501_v0, %s1445_s25 }
  0x3b   : > { %687 = vrot.lane.b32.xlu1 %v1393_v9, %s1445_s25 }
  0x3e   : > { %353 = vrot.lane.b32.xlu0 %v1504_v1, %s1444_s24 }
  0x3f   : > { %683 = vrot.lane.b32.xlu1 %v1504_v1, %s1445_s25 }
  0x42   : > { %385 = vrot.lane.b32.xlu0 %v1501_v0, %s1446_s26 }
  0x43   : > { %387 = vrot.lane.b32.xlu1 %v1394_v10, %s1446_s26 }
  0x46   : > { %715 = vrot.lane.b32.xlu0 %v1501_v0, %s1447_s27 }
  0x47   : > { %717 = vrot.lane.b32.xlu1 %v1395_v11, %s1447_s27 }
  0x4a   : > { %383 = vrot.lane.b32.xlu0 %v1504_v1, %s1446_s26 }
  0x4b   : > { %713 = vrot.lane.b32.xlu1 %v1504_v1, %s1447_s27 }
  0x4e   : > { %415 = vrot.lane.b32.xlu0 %v1501_v0, %s1448_s28 }
  0x4f   : > { %417 = vrot.lane.b32.xlu1 %v1396_v12, %s1448_s28 }
  0x52   : > { %745 = vrot.lane.b32.xlu0 %v1501_v0, %s1449_s29 }
  0x53   : > { %747 = vrot.lane.b32.xlu1 %v1397_v13, %s1449_s29 }
  0x56   : > { %413 = vrot.lane.b32.xlu0 %v1504_v1, %s1448_s28 }
  0x57   : > { %743 = vrot.lane.b32.xlu1 %v1504_v1, %s1449_s29  ;;  %s1343_s29 = sshll.u32 %s1617_s13, 5 }
  0x5a   : > { %445 = vrot.lane.b32.xlu0 %v1501_v0, %s1450_s30 }
  0x5b   : > { %447 = vrot.lane.b32.xlu1 %v1398_v14, %s1450_s30 }
  0x5e   : > { %775 = vrot.lane.b32.xlu0 %v1501_v0, %s1451_s4 }
  0x5f   : > { %777 = vrot.lane.b32.xlu1 %v1399_v15, %s1451_s4 }
  0x62   : > { %443 = vrot.lane.b32.xlu0 %v1504_v1, %s1450_s30 }
  0x63   : > { %773 = vrot.lane.b32.xlu1 %v1504_v1, %s1451_s4 }
  0x66   : > { %475 = vrot.lane.b32.xlu0 %v1501_v0, %s1452_s5 }
  0x67   : > { %477 = vrot.lane.b32.xlu1 %v1400_v16, %s1452_s5 }
  0x6a   : > { %805 = vrot.lane.b32.xlu0 %v1501_v0, %s1453_s6 }
  0x6b   : > { %807 = vrot.lane.b32.xlu1 %v1401_v17, %s1453_s6 }
  0x6e   : > { %473 = vrot.lane.b32.xlu0 %v1504_v1, %s1452_s5  ;;  %s170_s5 = scalar_lea.vmem %s1615_s3, %s1343_s29 }
  0x6f   : > { %803 = vrot.lane.b32.xlu1 %v1504_v1, %s1453_s6 }
  0x72   : > { %505 = vrot.lane.b32.xlu0 %v1501_v0, %s1454_s7 }
  0x73   : > { %507 = vrot.lane.b32.xlu1 %v1402_v18, %s1454_s7 }
  0x76   : > { %835 = vrot.lane.b32.xlu0 %v1501_v0, %s1455_s8 }
  0x77   : > { %837 = vrot.lane.b32.xlu1 %v1403_v19, %s1455_s8 }
  0x7a   : > { %503 = vrot.lane.b32.xlu0 %v1504_v1, %s1454_s7 }
  0x7b   : > { %833 = vrot.lane.b32.xlu1 %v1504_v1, %s1455_s8 }
  0x7e   : > { %535 = vrot.lane.b32.xlu0 %v1501_v0, %s1456_s9 }
  0x7f   : > { %537 = vrot.lane.b32.xlu1 %v1404_v20, %s1456_s9 }
  0x82   : > { %865 = vrot.lane.b32.xlu0 %v1501_v0, %s1457_s10 }
  0x83   : > { %867 = vrot.lane.b32.xlu1 %v1405_v21, %s1457_s10 }
  0x84   : > { %v206_v22 = vpop.permute.xlu0 %205 }
  0x85   : > { %v204_v23 = vpop.permute.xlu1 %203 }
  0x86   : > { %533 = vrot.lane.b32.xlu0 %v1504_v1, %s1456_s9  ;;  %v210_v28 = vsel %vm209_vm0, %v204_v23, %v206_v22 }
  0x87   : > { %863 = vrot.lane.b32.xlu1 %v1504_v1, %s1457_s10 }
  0x88   : > { %v208_v25 = vpop.permute.xlu0 %207 }
  0x89   : > { %v236_v26 = vpop.permute.xlu1 %235  ;;  %v211_v27 = vsel %vm209_vm0, %v206_v22, %v208_v25  ;;  %vm809_vm0 = vcmask 596992  }
  0x8a   : > { %565 = vrot.lane.b32.xlu0 %v1501_v0, %s1458_s11  ;;  %1049 = vmatprep.subr.bf16.mxu1 %v211_v27 }
  0x8b   : > { %567 = vrot.lane.b32.xlu1 %v1406_v24, %s1458_s11  ;;  %1050 = vmatpush1.bf16.msra.mxu1 %v210_v28 }
  0x8c   : > { %v238_v30 = vpop.permute.xlu0 %237 }
  0x8d   : > { %v234_v31 = vpop.permute.xlu1 %233  ;;  %v241_v32 = vsel %vm239_vm1, %v236_v26, %v238_v30 }
  0x8e   : > { %895 = vrot.lane.b32.xlu0 %v1501_v0, %s1459_s14  ;;  %1051 = vmatprep.subr.bf16.mxu1 %v241_v32  ;;  %v240_v33 = vsel %vm239_vm1, %v234_v31, %v236_v26  ;;  %vm509_vm1 = vcmask 826368  }
  0x8f   : > { %897 = vrot.lane.b32.xlu1 %v1407_v29, %s1459_s14  ;;  %1052 = vmatpush1.bf16.msra.mxu1 %v240_v33 }
  0x90   : > { %v266_v34 = vpop.permute.xlu0 %265 }
  0x91   : > { %v268_v35 = vpop.permute.xlu1 %267 }
  0x92   : > { %563 = vrot.lane.b32.xlu0 %v1504_v1, %s1458_s11  ;;  %v271_v36 = vsel %vm269_vm2, %v266_v34, %v268_v35 }
  0x93   : > { %893 = vrot.lane.b32.xlu1 %v1504_v1, %s1459_s14  ;;  %1053 = vmatprep.subr.bf16.mxu1 %v271_v36 }
  0x94   : > { %v264_v38 = vpop.permute.xlu0 %263 }
  0x95   : > { %v296_v39 = vpop.permute.xlu1 %295  ;;  %v270_v40 = vsel %vm269_vm2, %v264_v38, %v266_v34  ;;  %vm839_vm2 = vcmask 588800  }
  0x96   : > { %595 = vrot.lane.b32.xlu0 %v1501_v0, %s1460_s15  ;;  %1054 = vmatpush1.bf16.msra.mxu1 %v270_v40 }
  0x97   : > { %597 = vrot.lane.b32.xlu1 %v1408_v37, %s1460_s15 }
  0x98   : > { %v298_v42 = vpop.permute.xlu0 %297 }
  0x99   : > { %v294_v43 = vpop.permute.xlu1 %293  ;;  %v301_v44 = vsel %vm299_vm3, %v296_v39, %v298_v42 }
  0x9a   : > { %925 = vrot.lane.b32.xlu0 %v1501_v0, %s1461_s16  ;;  %1055 = vmatprep.subr.bf16.mxu1 %v301_v44  ;;  %v300_v45 = vsel %vm299_vm3, %v294_v43, %v296_v39  ;;  %vm539_vm3 = vcmask 801792  }
  0x9b   : > { %927 = vrot.lane.b32.xlu1 %v1409_v41, %s1461_s16  ;;  %1056 = vmatpush1.bf16.msra.mxu1 %v300_v45 }
  0x9c   : > { %v326_v46 = vpop.permute.xlu0 %325 }
  0x9d   : > { %v328_v47 = vpop.permute.xlu1 %327 }
  0x9e   : > { %593 = vrot.lane.b32.xlu0 %v1504_v1, %s1460_s15  ;;  %v331_v48 = vsel %vm329_vm4, %v326_v46, %v328_v47 }
  0x9f   : > { %923 = vrot.lane.b32.xlu1 %v1504_v1, %s1461_s16  ;;  %1057 = vmatprep.subr.bf16.mxu1 %v331_v48 }
  0xa0   : > { %v656_v51 = vpop.permute.xlu0 %655 }
  0xa1   : > { %v658_v53 = vpop.permute.xlu1 %657 }
  0xa2   : > { %625 = vrot.lane.b32.xlu0 %v1501_v0, %s1462_s22  ;;  %v661_v54 = vsel %vm659_vm5, %v656_v51, %v658_v53 }
  0xa3   : > { %627 = vrot.lane.b32.xlu1 %v1410_v49, %s1462_s22  ;;  %1090 = vmatprep.subr.bf16.mxu0 %v661_v54 }
  0xa4   : > { %v324_v56 = vpop.permute.xlu0 %323 }
  0xa5   : > { %v654_v57 = vpop.permute.xlu1 %653  ;;  %v330_v58 = vsel %vm329_vm4, %v324_v56, %v326_v46  ;;  %vm869_vm4 = vcmask 580608  }
  0xa6   : > { %955 = vrot.lane.b32.xlu0 %v1501_v0, %s1463_s23  ;;  %1058 = vmatpush1.bf16.msra.mxu1 %v330_v58  ;;  %v660_v59 = vsel %vm659_vm5, %v654_v57, %v656_v51  ;;  %vm569_vm5 = vcmask 793600  }
  0xa7   : > { %957 = vrot.lane.b32.xlu1 %v1411_v55, %s1463_s23  ;;  %1091 = vmatpush1.bf16.msra.mxu0 %v660_v59 }
  0xa8   : > { %v356_v60 = vpop.permute.xlu0 %355 }
  0xa9   : > { %v358_v61 = vpop.permute.xlu1 %357 }
  0xaa   : > { %623 = vrot.lane.b32.xlu0 %v1504_v1, %s1462_s22  ;;  %v361_v62 = vsel %vm359_vm7, %v356_v60, %v358_v61 }
  0xab   : > { %953 = vrot.lane.b32.xlu1 %v1504_v1, %s1463_s23  ;;  %1059 = vmatprep.subr.bf16.mxu1 %v361_v62 }
  0xac   : > { %v686_v63 = vpop.permute.xlu0 %685 }
  0xad   : > { %v688_v2 = vpop.permute.xlu1 %687 }
  0xae   : > { %v691_v3 = vsel %vm689_vm8, %v686_v63, %v688_v2 }
  0xaf   : > { %1092 = vmatprep.subr.bf16.mxu0 %v691_v3 }
  0xb0   : > { %v354_v0 = vpop.permute.xlu0 %353 }
  0xb1   : > { %v684_v4 = vpop.permute.xlu1 %683  ;;  %v360_v5 = vsel %vm359_vm7, %v354_v0, %v356_v60  ;;  %vm599_vm7 = vcmask 785408  }
  0xb2   : > { %1060 = vmatpush1.bf16.msra.mxu1 %v360_v5  ;;  %v690_v6 = vsel %vm689_vm8, %v684_v4, %v686_v63  ;;  %vm929_vm8 = vcmask 547840  }
  0xb3   : > { %1093 = vmatpush1.bf16.msra.mxu0 %v690_v6 }
  0xb4   : > { %v386_v7 = vpop.permute.xlu0 %385 }
  0xb5   : > { %v388_v8 = vpop.permute.xlu1 %387 }
  0xb6   : > { %v391_v9 = vsel %vm389_vm9, %v386_v7, %v388_v8 }
  0xb7   : > { %1061 = vmatprep.subr.bf16.mxu1 %v391_v9 }
  0xb8   : > { %v716_v10 = vpop.permute.xlu0 %715 }
  0xb9   : > { %v718_v1 = vpop.permute.xlu1 %717 }
  0xba   : > { %v721_v11 = vsel %vm719_vm10, %v716_v10, %v718_v1 }
  0xbb   : > { %1094 = vmatprep.subr.bf16.mxu0 %v721_v11 }
  0xbc   : > { %v384_v12 = vpop.permute.xlu0 %383 }
  0xbd   : > { %v714_v13 = vpop.permute.xlu1 %713  ;;  %v390_v14 = vsel %vm389_vm9, %v384_v12, %v386_v7  ;;  %vm629_vm9 = vcmask 760832  }
  0xbe   : > { %1062 = vmatpush1.bf16.msra.mxu1 %v390_v14  ;;  %v720_v15 = vsel %vm719_vm10, %v714_v13, %v716_v10  ;;  %vm959_vm10 = vcmask 539648  }
  0xbf   : > { %1095 = vmatpush1.bf16.msra.mxu0 %v720_v15 }
  0xc0   : > { %v416_v16 = vpop.permute.xlu0 %415 }
  0xc1   : > { %v418_v17 = vpop.permute.xlu1 %417 }
  0xc2   : > { %v421_v18 = vsel %vm419_vm11, %v416_v16, %v418_v17 }
  0xc3   : > { %1063 = vmatprep.subr.bf16.mxu1 %v421_v18 }
  0xc4   : > { %v746_v19 = vpop.permute.xlu0 %745 }
  0xc5   : > { %v748_v20 = vpop.permute.xlu1 %747 }
  0xc6   : > { %v751_v21 = vsel %vm749_vm12, %v746_v19, %v748_v20 }
  0xc7   : > { %1096 = vmatprep.subr.bf16.mxu0 %v751_v21 }
  0xc8   : > { %v414_v22 = vpop.permute.xlu0 %413 }
  0xc9   : > { %v744_v23 = vpop.permute.xlu1 %743  ;;  %v420_v24 = vsel %vm419_vm11, %v414_v22, %v416_v16 }
  0xca   : > { %1064 = vmatpush1.bf16.msra.mxu1 %v420_v24  ;;  %v750_v25 = vsel %vm749_vm12, %v744_v23, %v746_v19 }
  0xcb   : > { %1097 = vmatpush1.bf16.msra.mxu0 %v750_v25 }
  0xcc   : > { %v446_v26 = vpop.permute.xlu0 %445 }
  0xcd   : > { %v448_v27 = vpop.permute.xlu1 %447 }
  0xce   : > { %v451_v28 = vsel %vm449_vm13, %v446_v26, %v448_v27 }
  0xcf   : > { %1065 = vmatprep.subr.bf16.mxu1 %v451_v28 }
  0xd0   : > { %v776_v29 = vpop.permute.xlu0 %775 }
  0xd1   : > { %v778_v30 = vpop.permute.xlu1 %777 }
  0xd2   : > { %v781_v31 = vsel %vm779_vm14, %v776_v29, %v778_v30 }
  0xd3   : > { %1098 = vmatprep.subr.bf16.mxu0 %v781_v31  ;;  %v1412_v31 = vld [vmem:[%s1613_s1] ss:$16 sps:$4 sm:$0xff]  }
  0xd4   : > { %v444_v32 = vpop.permute.xlu0 %443 }
  0xd5   : > { %v774_v33 = vpop.permute.xlu1 %773  ;;  %v450_v34 = vsel %vm449_vm13, %v444_v32, %v446_v26 }
  0xd6   : > { %1066 = vmatpush1.bf16.msra.mxu1 %v450_v34  ;;  %v780_v35 = vsel %vm779_vm14, %v774_v33, %v776_v29  ;;  %v1415_v33 = vld [vmem:[%s1613_s1 + $0x8] ss:$16 sps:$4 sm:$0xff]   ;;  %v1139_v34 = vlaneseq }
  0xd7   : > { %1099 = vmatpush1.bf16.msra.mxu0 %v780_v35 }
  0xd8   : > { %v476_v36 = vpop.permute.xlu0 %475 }
  0xd9   : > { %v478_v37 = vpop.permute.xlu1 %477 }
  0xda   : > { %v481_v38 = vsel %vm479_vm15, %v476_v36, %v478_v37 }
  0xdb   : > { %1067 = vmatprep.subr.bf16.mxu1 %v481_v38 }
  0xdc   : > { %v806_v39 = vpop.permute.xlu0 %805 }
  0xdd   : > { %v808_v40 = vpop.permute.xlu1 %807 }
  0xde   : > { %v811_v41 = vsel %vm809_vm0, %v806_v39, %v808_v40 }
  0xdf   : > { %1100 = vmatprep.subr.bf16.mxu0 %v811_v41 }
  0xe0   : > { %v474_v42 = vpop.permute.xlu0 %473 }
  0xe1   : > { %v804_v43 = vpop.permute.xlu1 %803  ;;  %v480_v44 = vsel %vm479_vm15, %v474_v42, %v476_v36 }
  0xe2   : > { %1068 = vmatpush1.bf16.msra.mxu1 %v480_v44  ;;  %v810_v45 = vsel %vm809_vm0, %v804_v43, %v806_v39  ;;  %v1140_v44 = vshrl.u32 %v1139_v34, 7 }
  0xe3   : > { %1101 = vmatpush1.bf16.msra.mxu0 %v810_v45 }
  0xe4   : > { %v506_v46 = vpop.permute.xlu0 %505 }
  0xe5   : > { %v508_v47 = vpop.permute.xlu1 %507 }
  0xe6   : > { %v511_v48 = vsel %vm509_vm1, %v506_v46, %v508_v47 }
  0xe7   : > { %1069 = vmatprep.subr.bf16.mxu1 %v511_v48  ;;  %v1141_v48 = vsub.s32 0, %v1140_v44 }
  0xe8   : > { %v836_v49 = vpop.permute.xlu0 %835 }
  0xe9   : > { %v838_v50 = vpop.permute.xlu1 %837 }
  0xea   : > { %v841_v51 = vsel %vm839_vm2, %v836_v49, %v838_v50  ;;  %v1145_v50 = vsub.s32 1, %v1140_v44 }
  0xeb   : > { %1102 = vmatprep.subr.bf16.mxu0 %v841_v51 }
  0xec   : > { %v504_v52 = vpop.permute.xlu0 %503 }
  0xed   : > { %v834_v53 = vpop.permute.xlu1 %833  ;;  %v510_v54 = vsel %vm509_vm1, %v504_v52, %v506_v46 }
  0xee   : > { %1070 = vmatpush1.bf16.msra.mxu1 %v510_v54  ;;  %v840_v55 = vsel %vm839_vm2, %v834_v53, %v836_v49  ;;  %v1137_v49 = vld [vmem:[%s1614_s2] sm:$0x3] }
  0xef   : > { %1103 = vmatpush1.bf16.msra.mxu0 %v840_v55  ;;  %v1142_v51 = vrot.slane %v1137_v49, %v1141_v48  ;;  %v1146_v52 = vrot.slane %v1137_v49, %v1145_v50 }
  0xf0   : > { %v536_v56 = vpop.permute.xlu0 %535 }
  0xf1   : > { %v538_v57 = vpop.permute.xlu1 %537 }
  0xf2   : > { %v541_v58 = vsel %vm539_vm3, %v536_v56, %v538_v57 }
  0xf3   : > { %1071 = vmatprep.subr.bf16.mxu1 %v541_v58 }
  0xf4   : > { %v866_v59 = vpop.permute.xlu0 %865 }
  0xf5   : > { %v868_v60 = vpop.permute.xlu1 %867 }
  0xf6   : > { %v871_v61 = vsel %vm869_vm4, %v866_v59, %v868_v60 }
  0xf7   : > { %1104 = vmatprep.subr.bf16.mxu0 %v871_v61 }
  0xf8   : > { %v534_v62 = vpop.permute.xlu0 %533 }
  0xf9   : > { %v864_v63 = vpop.permute.xlu1 %863  ;;  %v540_v2 = vsel %vm539_vm3, %v534_v62, %v536_v56 }
  0xfa   : > { %1072 = vmatpush1.bf16.msra.mxu1 %v540_v2  ;;  %v870_v3 = vsel %vm869_vm4, %v864_v63, %v866_v59 }
  0xfb   : > { %1105 = vmatpush1.bf16.msra.mxu0 %v870_v3 }
  0xfc   : > { %v566_v0 = vpop.permute.xlu0 %565 }
  0xfd   : > { %v568_v4 = vpop.permute.xlu1 %567 }
  0xfe   : > { %v571_v5 = vsel %vm569_vm5, %v566_v0, %v568_v4 }
  0xff   : > { %1073 = vmatprep.subr.bf16.mxu1 %v571_v5 }
 0x100   : > { %v896_v6 = vpop.permute.xlu0 %895 }
 0x101   : > { %v898_v7 = vpop.permute.xlu1 %897 }
 0x102   : > { %v901_v8 = vsel %vm899_vm6, %v896_v6, %v898_v7 }
 0x103   : > { %1106 = vmatprep.subr.bf16.mxu0 %v901_v8 }
 0x104   : > { %v564_v9 = vpop.permute.xlu0 %563 }
 0x105   : > { %v894_v10 = vpop.permute.xlu1 %893  ;;  %v570_v1 = vsel %vm569_vm5, %v564_v9, %v566_v0 }
 0x106   : > { %1074 = vmatpush1.bf16.msra.mxu1 %v570_v1  ;;  %v900_v11 = vsel %vm899_vm6, %v894_v10, %v896_v6 }
 0x107   : > { %1107 = vmatpush1.bf16.msra.mxu0 %v900_v11 }
 0x108   : > { %v596_v12 = vpop.permute.xlu0 %595 }
 0x109   : > { %v598_v13 = vpop.permute.xlu1 %597 }
 0x10a   : > { %v601_v14 = vsel %vm599_vm7, %v596_v12, %v598_v13 }
 0x10b   : > { %1075 = vmatprep.subr.bf16.mxu1 %v601_v14 }
 0x10c   : > { %v926_v15 = vpop.permute.xlu0 %925 }
 0x10d   : > { %v928_v16 = vpop.permute.xlu1 %927 }
 0x10e   : > { %v931_v17 = vsel %vm929_vm8, %v926_v15, %v928_v16 }
 0x10f   : > { %1108 = vmatprep.subr.bf16.mxu0 %v931_v17 }
 0x110   : > { %v594_v18 = vpop.permute.xlu0 %593 }
 0x111   : > { %v924_v19 = vpop.permute.xlu1 %923  ;;  %v600_v20 = vsel %vm599_vm7, %v594_v18, %v596_v12 }
 0x112   : > { %1076 = vmatpush1.bf16.msra.mxu1 %v600_v20  ;;  %v930_v21 = vsel %vm929_vm8, %v924_v19, %v926_v15 }
 0x113   : > { %1109 = vmatpush1.bf16.msra.mxu0 %v930_v21 }
 0x114   : > { %v626_v22 = vpop.permute.xlu0 %625 }
 0x115   : > { %v628_v23 = vpop.permute.xlu1 %627 }
 0x116   : > { %v631_v24 = vsel %vm629_vm9, %v626_v22, %v628_v23 }
 0x117   : > { %1077 = vmatprep.subr.bf16.mxu1 %v631_v24 }
 0x118   : > { %v956_v25 = vpop.permute.xlu0 %955 }
 0x119   : > { %v958_v26 = vpop.permute.xlu1 %957 }
 0x11a   : > { %v961_v27 = vsel %vm959_vm10, %v956_v25, %v958_v26 }
 0x11b   : > { %1110 = vmatprep.subr.bf16.mxu0 %v961_v27 }
 0x11c   : > { %v624_v28 = vpop.permute.xlu0 %623 }
 0x11d   : > { %v954_v29 = vpop.permute.xlu1 %953  ;;  %v630_v30 = vsel %vm629_vm9, %v624_v28, %v626_v22 }
 0x11e   : > { %1078 = vmatpush1.bf16.msra.mxu1 %v630_v30  ;;  %v960_v32 = vsel %vm959_vm10, %v954_v29, %v956_v25 }
 0x11f   : > { %1111 = vmatpush1.bf16.msra.mxu0 %v960_v32 }
 0x121   : > { %1080 = vmatmul.mubr.bf16.vlgmr.msra.gmra.mrb[0].mxu1 %v1412_v31 }
 0x122   : > { %1123 = vmatmul.mubr.bf16.vlgmr.msra.gmra.mrb[0].mxu0 %v1415_v33 }
 0x1f4   : > { %v1081_v35 = vpop.f32.mrb[0].mxu1 }
 0x1f5   : > { %v1124_v36 = vpop.f32.mrb[0].mxu0  ;;  %v1083_v37 = vpop.f32.mrb[1].mxu1 }
 0x1f6   : > { %v1125_v38 = vadd.f32 %v1124_v36, %v1081_v35  ;;  %v1126_v39 = vpop.f32.mrb[1].mxu0  ;;  %v1085_v40 = vpop.f32.mrb[2].mxu1 }
 0x1f7   : > { %v1127_v41 = vadd.f32 %v1126_v39, %v1083_v37  ;;  %v1128_v42 = vpop.f32.mrb[2].mxu0  ;;  %v1087_v43 = vpop.f32.mrb[3].mxu1 }
 0x1f8   : > { %1418 = vtanh.f32 %v1125_v38  ;;  %v1129_v45 = vadd.f32 %v1128_v42, %v1085_v40  ;;  %v1130_v46 = vpop.f32.mrb[3].mxu0 }
 0x1f9   : > { %1420 = vtanh.f32 %v1127_v41  ;;  %v1131_v47 = vadd.f32 %v1130_v46, %v1087_v43 }
 0x1fa   : > { %1422 = vtanh.f32 %v1129_v45 }
 0x1fb   : > { %1424 = vtanh.f32 %v1131_v47 }
 0x202   : > { %v1419_v53 = vpop.eup %1418 }
 0x203   : > { %v1421_v54 = vpop.eup %1420  ;;  %v1149_v55 = vmul.f32 %v1419_v53, %v1142_v51 }
 0x204   : > { %v1423_v56 = vpop.eup %1422  ;;  %v1150_v57 = vmul.f32 %v1421_v54, %v1146_v52 }
 0x205   : > { %v1425_v58 = vpop.eup %1424  ;;  %v1151_v59 = vmul.f32 %v1423_v56, %v1142_v51  ;;  %v1161_v62 = vmul.f32 %v1149_v55, %v1149_v55 }
 0x206   : > { %v1153_v60 = vadd.f32 %v1150_v57, %v1149_v55  ;;  %v1152_v61 = vmul.f32 %v1425_v58, %v1146_v52  ;;  %v1162_v63 = vmul.f32 %v1150_v57, %v1150_v57 }
 0x207   : > { %v1163_v0 = vmul.f32 %v1151_v59, %v1151_v59 }
 0x208   : > { %1154 = vadd.xlane.f32.xlu0 %v1153_v60  ;;  %v1156_v2 = vadd.f32 %v1152_v61, %v1151_v59  ;;  %v1165_v3 = vadd.f32 %v1162_v63, %v1161_v62  ;;  %v1164_v4 = vmul.f32 %v1152_v61, %v1152_v61 }
 0x20a   : > { %1157 = vadd.xlane.f32.xlu1 %v1156_v2  ;;  %v1168_v5 = vadd.f32 %v1164_v4, %v1163_v0 }
 0x20c   : > { %1166 = vadd.xlane.f32.xlu0 %v1165_v3 }
 0x210   : > { %1169 = vadd.xlane.f32.xlu0 %v1168_v5 }
 0x295   : > { %v1155_v6 = vpop.xlane.xlu0 %1154 }
 0x296   : > { %v1159_v7 = vmul.f32 0.013888889, %v1155_v6 }
 0x297   : > { %v1158_v8 = vpop.xlane.xlu1 %1157 }
 0x298   : > { %v1160_v10 = vmul.f32 0.013888889, %v1158_v8  ;;  %v1173_v1 = vmul.f32 %v1159_v7, %v1159_v7  ;;  %v1177_v19 = vsub.f32 %v1419_v53, %v1159_v7  ;;  %v1178_v20 = vsub.f32 %v1421_v54, %v1159_v7 }
 0x299   : > { %v1167_v9 = vpop.xlane.xlu0 %1166 }
 0x29a   : > { %v1171_v11 = vmul.f32 0.013888889, %v1167_v9  ;;  %v1174_v16 = vmul.f32 %v1160_v10, %v1160_v10  ;;  %v1179_v24 = vsub.f32 %v1423_v56, %v1160_v10  ;;  %v1180_v25 = vsub.f32 %v1425_v58, %v1160_v10 }
 0x29c   : > { %v1175_v12 = vsub.f32 %v1171_v11, %v1173_v1 }
 0x29d   : > { %v1170_v13 = vpop.xlane.xlu0 %1169 }
 0x29e   : > { %v1181_v14 = vadd.f32 1e-05, %v1175_v12  ;;  %v1172_v15 = vmul.f32 0.013888889, %v1170_v13 }
 0x2a0   : > { %1426 = vrsqrt.f32 %v1181_v14  ;;  %v1176_v17 = vsub.f32 %v1172_v15, %v1174_v16 }
 0x2a2   : > { %v1182_v18 = vadd.f32 1e-05, %v1176_v17 }
 0x2a4   : > { %1428 = vrsqrt.f32 %v1182_v18 }
 0x2aa   : > { %v1427_v21 = vpop.eup %1426 }
 0x2ab   : > { %v1185_v22 = vmul.f32 %v1427_v21, %v1177_v19  ;;  %v1186_v23 = vmul.f32 %v1427_v21, %v1178_v20 }
 0x2ad   : > { %1189 = vst [vmem:[%s170_s5] sm:$0xff] %v1185_v22  ;;  %1190 = vst [vmem:[%s170_s5 + $0x8] sm:$0xff] %v1186_v23 }
 0x2ae   : > { %v1429_v26 = vpop.eup %1428 }
 0x2af   : > { %v1187_v27 = vmul.f32 %v1429_v26, %v1179_v24  ;;  %v1188_v28 = vmul.f32 %v1429_v26, %v1180_v25 }
 0x2b1   : > { %1191 = vst [vmem:[%s170_s5 + $0x10] sm:$0xff] %v1187_v27  ;;  %1192 = vst [vmem:[%s170_s5 + $0x18] sm:$0xff] %v1188_v28 }
 0x2b2 PF: > { %s13_s12 = sadd.s32 1, %s1436_s12  }
 0x2b3   : > { %p10_p4 = scmp.ge.s32.totalorder %s13_s12, 4  }
 0x2b5   :  { %12 = sbr.rel (!%p10_p4) target bundleno = 1 (0x1), region = 62 }

</bundles_post_ra>
